<compile_context>
chip_gen: v5e
topology: v5e:2x2
jax: 0.10.0
libtpu: 0.0.40
codegen_flags: <defaults>
</compile_context>

<pallas_src>
import jax
import jax.numpy as jnp
from jax.experimental import pallas as pl
from jax.experimental.pallas import tpu as pltpu


def _round_up(v, m):
    return (v + m - 1) // m * m


def mlp_kernel(x_ref,
               w1_ref, b1_ref,
               w2_ref, b2_ref,
               w3_ref, b3_ref,
               w4_ref, b4_ref,
               w5_ref, b5_ref,
               out_ref):
    """One batch tile of the fused 5-layer MLP.

    x_ref:  (TB, 150)  f32   (cast to bf16 in-kernel; no padded HBM copy)
    w*_ref: [in, out]  bf16  (VMEM-resident across all grid steps)
    b*_ref: [1, out]   f32
    out_ref:(TB, 128)  bf16  (lane-dense padded logits; sliced/upcast outside)
    All matmuls run on the bf16 MXU path with f32 accumulation.
    """
    def layer(h, w_ref, b_ref, relu):
        y = jnp.dot(h, w_ref[...], preferred_element_type=jnp.float32) + b_ref[...]
        if relu:
            y = jnp.maximum(y, 0.0).astype(jnp.bfloat16)
        return y

    h = x_ref[...].astype(jnp.bfloat16)
    h = layer(h, w1_ref, b1_ref, True)
    h = layer(h, w2_ref, b2_ref, True)
    h = layer(h, w3_ref, b3_ref, True)
    h = layer(h, w4_ref, b4_ref, True)
    y = layer(h, w5_ref, b5_ref, False)          # final layer: no ReLU
    out_ref[...] = y.astype(out_ref.dtype)       # bf16 store


def prepare_params(params):
    """One-time prep: cast weights to bf16, pad the final layer's output to 128 lanes.

    params: list of (W[in, out] f32, b[1, out] f32).  Call once and cache the result;
    the forward path reuses it (no per-call padding / casting of ~2 MiB of weights).
    """
    prepared = []
    last = len(params) - 1
    for li, (w, b) in enumerate(params):
        k, n = w.shape
        n_p = _round_up(n, 128) if li == last else n
        if n_p == n:
            w_p = w.astype(jnp.bfloat16)
            b_p = b.astype(jnp.float32).reshape(1, n)
        else:
            w_p = jnp.zeros((k, n_p), jnp.bfloat16).at[:, :n].set(w.astype(jnp.bfloat16))
            b_p = jnp.zeros((1, n_p), jnp.float32).at[:, :n].set(
                b.astype(jnp.float32).reshape(1, n))
        prepared.append((w_p, b_p))
    return prepared


def _choose_tb(B, preferred_tb=512):
    """Batch tile: big enough to beat the ~0.35us grid-step overhead, but split into
    >=2 grid steps when B permits so both v7x TensorCores get work."""
    if B <= 128:
        return _round_up(max(B, 16), 16)          # single tile, bf16-friendly sublanes
    return min(preferred_tb, _round_up(pl.cdiv(B, 2), 128))


def classification_model_forward(x, prepared_params, num_classes, *, preferred_tb=512):
    """x: [B, input_dim] float32; prepared_params: output of prepare_params()."""
    B, D = x.shape
    n_pad = prepared_params[-1][0].shape[1]       # padded logits width (128)
    tb = _choose_tb(B, preferred_tb)
    grid = (pl.cdiv(B, tb),)

    # x / out tiled over batch; weights & biases VMEM-resident (constant index_map).
    flat_args = [x]
    in_specs = [pl.BlockSpec((tb, D), lambda i: (i, 0))]
    for (w_p, b_p) in prepared_params:
        flat_args.extend([w_p, b_p])
        in_specs.append(pl.BlockSpec(w_p.shape, lambda i: (0, 0)))
        in_specs.append(pl.BlockSpec(b_p.shape, lambda i: (0, 0)))

    flops = 2 * B * sum(w.shape[0] * w.shape[1] for w, _ in prepared_params)
    bytes_accessed = (x.size * 4 + B * n_pad * 2
                      + sum(w.size * 2 + b.size * 4 for w, b in prepared_params))

    out_p = pl.pallas_call(
        mlp_kernel,
        out_shape=jax.ShapeDtypeStruct((B, n_pad), jnp.bfloat16),
        grid=grid,
        in_specs=in_specs,
        out_specs=pl.BlockSpec((tb, n_pad), lambda i: (i, 0)),
        compiler_params=pltpu.CompilerParams(
            dimension_semantics=("parallel",)),
        cost_estimate=pl.CostEstimate(
            flops=flops, transcendentals=0, bytes_accessed=bytes_accessed),
    )(*flat_args)

    return out_p[:, :num_classes].astype(jnp.float32)


def init_params(key, input_dim=150, num_classes=3):
    """Deterministic init mimicking PyTorch nn.Linear default (uniform +-1/sqrt(fan_in))."""
    dims = [input_dim, 1024, 512, 256, 128, num_classes]
    params = []
    for i in range(len(dims) - 1):
        fan_in, fan_out = dims[i], dims[i + 1]
        key, kw, kb = jax.random.split(key, 3)
        bound = 1.0 / (fan_in ** 0.5)
        w = jax.random.uniform(kw, (fan_in, fan_out), jnp.float32, -bound, bound)
        b = jax.random.uniform(kb, (1, fan_out), jnp.float32, -bound, bound)
        params.append((w, b))
    return params


if __name__ == "__main__":
    key = jax.random.PRNGKey(0)
    key, kx = jax.random.split(key)

    input_dim = 150
    num_classes = 3
    batch = 8

    x = jax.random.normal(kx, (batch, input_dim), dtype=jnp.float32)
    params = init_params(key, input_dim=input_dim, num_classes=num_classes)

    # One-time weight prep (cached across calls).
    prepared = prepare_params(params)

    out = classification_model_forward(x, prepared, num_classes)
    out = jax.block_until_ready(out)

    # Reference with the same bf16 weight/activation quantization, f32 accumulation,
    # and bf16 logit store.
    h = x.astype(jnp.bfloat16)
    ref = None
    for i, (w, b) in enumerate(params):
        y = jnp.dot(h, w.astype(jnp.bfloat16), preferred_element_type=jnp.float32) + b
        if i < len(params) - 1:
            h = jnp.maximum(y, 0.0).astype(jnp.bfloat16)
        else:
            ref = y.astype(jnp.bfloat16).astype(jnp.float32)

    assert out.shape == (batch, num_classes)
    assert bool(jnp.all(jnp.isfinite(out)))
    assert jnp.allclose(out, ref, atol=5e-2, rtol=5e-2)

    print("KERNEL_OK")
</pallas_src>

<mosaic_0001>
module attributes {stable_mosaic.version = 11 : i64} {
  func.func @mlp_kernel(%arg0: i32, %arg1: memref<16x150xf32, #tpu.memory_space<vmem>>, %arg2: memref<150x1024xbf16, #tpu.memory_space<vmem>>, %arg3: memref<1x1024xf32, #tpu.memory_space<vmem>>, %arg4: memref<1024x512xbf16, #tpu.memory_space<vmem>>, %arg5: memref<1x512xf32, #tpu.memory_space<vmem>>, %arg6: memref<512x256xbf16, #tpu.memory_space<vmem>>, %arg7: memref<1x256xf32, #tpu.memory_space<vmem>>, %arg8: memref<256x128xbf16, #tpu.memory_space<vmem>>, %arg9: memref<1x128xf32, #tpu.memory_space<vmem>>, %arg10: memref<128x128xbf16, #tpu.memory_space<vmem>>, %arg11: memref<1x128xf32, #tpu.memory_space<vmem>>, %arg12: memref<16x128xbf16, #tpu.memory_space<vmem>>) attributes {dimension_semantics = [#tpu.dimension_semantics<parallel>], iteration_bounds = array<i64: 1>, scalar_prefetch = 0 : i64, scratch_operands = 0 : i64, tpu.core_type = #tpu.core_type<tc>, window_params = [{transform_indices = @transform_0, window_bounds = array<i64: 16, 150>}, {pipeline_mode = #tpu.pipeline_mode<synchronous>, transform_indices = @transform_1, window_bounds = array<i64: 150, 1024>}, {pipeline_mode = #tpu.pipeline_mode<synchronous>, transform_indices = @transform_2, window_bounds = array<i64: 1, 1024>}, {pipeline_mode = #tpu.pipeline_mode<synchronous>, transform_indices = @transform_3, window_bounds = array<i64: 1024, 512>}, {pipeline_mode = #tpu.pipeline_mode<synchronous>, transform_indices = @transform_4, window_bounds = array<i64: 1, 512>}, {pipeline_mode = #tpu.pipeline_mode<synchronous>, transform_indices = @transform_5, window_bounds = array<i64: 512, 256>}, {pipeline_mode = #tpu.pipeline_mode<synchronous>, transform_indices = @transform_6, window_bounds = array<i64: 1, 256>}, {pipeline_mode = #tpu.pipeline_mode<synchronous>, transform_indices = @transform_7, window_bounds = array<i64: 256, 128>}, {pipeline_mode = #tpu.pipeline_mode<synchronous>, transform_indices = @transform_8, window_bounds = array<i64: 1, 128>}, {pipeline_mode = #tpu.pipeline_mode<synchronous>, transform_indices = @transform_9, window_bounds = array<i64: 128, 128>}, {pipeline_mode = #tpu.pipeline_mode<synchronous>, transform_indices = @transform_10, window_bounds = array<i64: 1, 128>}, {transform_indices = @transform_11, window_bounds = array<i64: 16, 128>}]} {
    %c0 = arith.constant 0 : index
    %c0_0 = arith.constant 0 : index
    %0 = vector.load %arg1[%c0, %c0_0] : memref<16x150xf32, #tpu.memory_space<vmem>>, vector<16x150xf32>
    %1 = arith.truncf %0 : vector<16x150xf32> to vector<16x150xbf16>
    %c0_1 = arith.constant 0 : index
    %c0_2 = arith.constant 0 : index
    %2 = vector.load %arg2[%c0_1, %c0_2] : memref<150x1024xbf16, #tpu.memory_space<vmem>>, vector<150x1024xbf16>
    %cst = arith.constant dense<0.000000e+00> : vector<16x1024xf32>
    %3 = tpu.matmul %1, %2, %cst {dimension_numbers = #tpu.dot_dimension_numbers<[1], [0], [0], [1], [0, 0, 1, 1], [], []>} : vector<16x150xbf16>, vector<150x1024xbf16>, vector<16x1024xf32> -> vector<16x1024xf32>
    %c0_3 = arith.constant 0 : index
    %c0_4 = arith.constant 0 : index
    %4 = vector.load %arg3[%c0_3, %c0_4] : memref<1x1024xf32, #tpu.memory_space<vmem>>, vector<1x1024xf32>
    %5 = vector.broadcast %4 : vector<1x1024xf32> to vector<16x1024xf32>
    %6 = arith.addf %3, %5 : vector<16x1024xf32>
    %cst_5 = arith.constant 0.000000e+00 : f32
    %7 = vector.broadcast %cst_5 : f32 to vector<16x1024xf32>
    %8 = arith.maximumf %6, %7 : vector<16x1024xf32>
    %9 = arith.truncf %8 : vector<16x1024xf32> to vector<16x1024xbf16>
    %c0_6 = arith.constant 0 : index
    %c0_7 = arith.constant 0 : index
    %10 = vector.load %arg4[%c0_6, %c0_7] : memref<1024x512xbf16, #tpu.memory_space<vmem>>, vector<1024x512xbf16>
    %cst_8 = arith.constant dense<0.000000e+00> : vector<16x512xf32>
    %11 = tpu.matmul %9, %10, %cst_8 {dimension_numbers = #tpu.dot_dimension_numbers<[1], [0], [0], [1], [0, 0, 1, 1], [], []>} : vector<16x1024xbf16>, vector<1024x512xbf16>, vector<16x512xf32> -> vector<16x512xf32>
    %c0_9 = arith.constant 0 : index
    %c0_10 = arith.constant 0 : index
    %12 = vector.load %arg5[%c0_9, %c0_10] : memref<1x512xf32, #tpu.memory_space<vmem>>, vector<1x512xf32>
    %13 = vector.broadcast %12 : vector<1x512xf32> to vector<16x512xf32>
    %14 = arith.addf %11, %13 : vector<16x512xf32>
    %cst_11 = arith.constant 0.000000e+00 : f32
    %15 = vector.broadcast %cst_11 : f32 to vector<16x512xf32>
    %16 = arith.maximumf %14, %15 : vector<16x512xf32>
    %17 = arith.truncf %16 : vector<16x512xf32> to vector<16x512xbf16>
    %c0_12 = arith.constant 0 : index
    %c0_13 = arith.constant 0 : index
    %18 = vector.load %arg6[%c0_12, %c0_13] : memref<512x256xbf16, #tpu.memory_space<vmem>>, vector<512x256xbf16>
    %cst_14 = arith.constant dense<0.000000e+00> : vector<16x256xf32>
    %19 = tpu.matmul %17, %18, %cst_14 {dimension_numbers = #tpu.dot_dimension_numbers<[1], [0], [0], [1], [0, 0, 1, 1], [], []>} : vector<16x512xbf16>, vector<512x256xbf16>, vector<16x256xf32> -> vector<16x256xf32>
    %c0_15 = arith.constant 0 : index
    %c0_16 = arith.constant 0 : index
    %20 = vector.load %arg7[%c0_15, %c0_16] : memref<1x256xf32, #tpu.memory_space<vmem>>, vector<1x256xf32>
    %21 = vector.broadcast %20 : vector<1x256xf32> to vector<16x256xf32>
    %22 = arith.addf %19, %21 : vector<16x256xf32>
    %cst_17 = arith.constant 0.000000e+00 : f32
    %23 = vector.broadcast %cst_17 : f32 to vector<16x256xf32>
    %24 = arith.maximumf %22, %23 : vector<16x256xf32>
    %25 = arith.truncf %24 : vector<16x256xf32> to vector<16x256xbf16>
    %c0_18 = arith.constant 0 : index
    %c0_19 = arith.constant 0 : index
    %26 = vector.load %arg8[%c0_18, %c0_19] : memref<256x128xbf16, #tpu.memory_space<vmem>>, vector<256x128xbf16>
    %cst_20 = arith.constant dense<0.000000e+00> : vector<16x128xf32>
    %27 = tpu.matmul %25, %26, %cst_20 {dimension_numbers = #tpu.dot_dimension_numbers<[1], [0], [0], [1], [0, 0, 1, 1], [], []>} : vector<16x256xbf16>, vector<256x128xbf16>, vector<16x128xf32> -> vector<16x128xf32>
    %c0_21 = arith.constant 0 : index
    %c0_22 = arith.constant 0 : index
    %28 = vector.load %arg9[%c0_21, %c0_22] : memref<1x128xf32, #tpu.memory_space<vmem>>, vector<1x128xf32>
    %29 = vector.broadcast %28 : vector<1x128xf32> to vector<16x128xf32>
    %30 = arith.addf %27, %29 : vector<16x128xf32>
    %cst_23 = arith.constant 0.000000e+00 : f32
    %31 = vector.broadcast %cst_23 : f32 to vector<16x128xf32>
    %32 = arith.maximumf %30, %31 : vector<16x128xf32>
    %33 = arith.truncf %32 : vector<16x128xf32> to vector<16x128xbf16>
    %c0_24 = arith.constant 0 : index
    %c0_25 = arith.constant 0 : index
    %34 = vector.load %arg10[%c0_24, %c0_25] : memref<128x128xbf16, #tpu.memory_space<vmem>>, vector<128x128xbf16>
    %cst_26 = arith.constant dense<0.000000e+00> : vector<16x128xf32>
    %35 = tpu.matmul %33, %34, %cst_26 {dimension_numbers = #tpu.dot_dimension_numbers<[1], [0], [0], [1], [0, 0, 1, 1], [], []>} : vector<16x128xbf16>, vector<128x128xbf16>, vector<16x128xf32> -> vector<16x128xf32>
    %c0_27 = arith.constant 0 : index
    %c0_28 = arith.constant 0 : index
    %36 = vector.load %arg11[%c0_27, %c0_28] : memref<1x128xf32, #tpu.memory_space<vmem>>, vector<1x128xf32>
    %37 = vector.broadcast %36 : vector<1x128xf32> to vector<16x128xf32>
    %38 = arith.addf %35, %37 : vector<16x128xf32>
    %39 = arith.truncf %38 : vector<16x128xf32> to vector<16x128xbf16>
    %c0_29 = arith.constant 0 : index
    %c0_30 = arith.constant 0 : index
    %40 = vector.load %arg12[%c0_29, %c0_30] : memref<16x128xbf16, #tpu.memory_space<vmem>>, vector<16x128xbf16>
    tpu.vector_store %arg12[%c0_29, %c0_30], %39 {strides = array<i32>} : memref<16x128xbf16, #tpu.memory_space<vmem>>, vector<16x128xbf16>,
    return
  }
  func.func @transform_0(%arg0: i32) -> (i32, i32) {
    %c0_i32 = arith.constant 0 : i32
    %c0_i32_0 = arith.constant 0 : i32
    return %arg0, %c0_i32 : i32, i32
  }
  func.func @transform_1(%arg0: i32) -> (i32, i32) {
    %c0_i32 = arith.constant 0 : i32
    %c0_i32_0 = arith.constant 0 : i32
    %c0_i32_1 = arith.constant 0 : i32
    return %c0_i32, %c0_i32_0 : i32, i32
  }
  func.func @transform_2(%arg0: i32) -> (i32, i32) {
    %c0_i32 = arith.constant 0 : i32
    %c0_i32_0 = arith.constant 0 : i32
    %c0_i32_1 = arith.constant 0 : i32
    return %c0_i32, %c0_i32_0 : i32, i32
  }
  func.func @transform_3(%arg0: i32) -> (i32, i32) {
    %c0_i32 = arith.constant 0 : i32
    %c0_i32_0 = arith.constant 0 : i32
    %c0_i32_1 = arith.constant 0 : i32
    return %c0_i32, %c0_i32_0 : i32, i32
  }
  func.func @transform_4(%arg0: i32) -> (i32, i32) {
    %c0_i32 = arith.constant 0 : i32
    %c0_i32_0 = arith.constant 0 : i32
    %c0_i32_1 = arith.constant 0 : i32
    return %c0_i32, %c0_i32_0 : i32, i32
  }
  func.func @transform_5(%arg0: i32) -> (i32, i32) {
    %c0_i32 = arith.constant 0 : i32
    %c0_i32_0 = arith.constant 0 : i32
    %c0_i32_1 = arith.constant 0 : i32
    return %c0_i32, %c0_i32_0 : i32, i32
  }
  func.func @transform_6(%arg0: i32) -> (i32, i32) {
    %c0_i32 = arith.constant 0 : i32
    %c0_i32_0 = arith.constant 0 : i32
    %c0_i32_1 = arith.constant 0 : i32
    return %c0_i32, %c0_i32_0 : i32, i32
  }
  func.func @transform_7(%arg0: i32) -> (i32, i32) {
    %c0_i32 = arith.constant 0 : i32
    %c0_i32_0 = arith.constant 0 : i32
    %c0_i32_1 = arith.constant 0 : i32
    return %c0_i32, %c0_i32_0 : i32, i32
  }
  func.func @transform_8(%arg0: i32) -> (i32, i32) {
    %c0_i32 = arith.constant 0 : i32
    %c0_i32_0 = arith.constant 0 : i32
    %c0_i32_1 = arith.constant 0 : i32
    return %c0_i32, %c0_i32_0 : i32, i32
  }
  func.func @transform_9(%arg0: i32) -> (i32, i32) {
    %c0_i32 = arith.constant 0 : i32
    %c0_i32_0 = arith.constant 0 : i32
    %c0_i32_1 = arith.constant 0 : i32
    return %c0_i32, %c0_i32_0 : i32, i32
  }
  func.func @transform_10(%arg0: i32) -> (i32, i32) {
    %c0_i32 = arith.constant 0 : i32
    %c0_i32_0 = arith.constant 0 : i32
    %c0_i32_1 = arith.constant 0 : i32
    return %c0_i32, %c0_i32_0 : i32, i32
  }
  func.func @transform_11(%arg0: i32) -> (i32, i32) {
    %c0_i32 = arith.constant 0 : i32
    %c0_i32_0 = arith.constant 0 : i32
    return %arg0, %c0_i32 : i32, i32
  }
}

</mosaic_0001>

<bundles_post_ra>
// kernel: tpu_custom_call.1
= control target key start
LH: loop header
LB: loop body
LE: loop exit
PB: predicated region body
PF: predicated region fallthrough
CT: control target
= control target key end

     0   :  { %16 = vsyncpa [#allocation3], 0  ;;  %s6323_s0 = inlined_call_operand.hbm [shape: f32[8,150], index: 0, kind: input, shape index: {}]   ;;  %s6324_s1 = inlined_call_operand.hbm [shape: bf16[150,1024], index: 1, kind: input, shape index: {}]   ;;  %s6325_s2 = inlined_call_operand.hbm [shape: f32[1,1024], index: 2, kind: input, shape index: {}]   ;;  %s6326_s3 = inlined_call_operand.hbm [shape: bf16[1024,512], index: 3, kind: input, shape index: {}]   ;;  %s6327_s4 = inlined_call_operand.hbm [shape: f32[1,512], index: 4, kind: input, shape index: {}]   ;;  %s6328_s5 = inlined_call_operand.hbm [shape: bf16[512,256], index: 5, kind: input, shape index: {}]   ;;  %s6329_s6 = inlined_call_operand.vmem [shape: f32[1,256], index: 6, kind: input, shape index: {}]   ;;  %s6330_s7 = inlined_call_operand.hbm [shape: bf16[256,128], index: 7, kind: input, shape index: {}]   ;;  %s6331_s8 = inlined_call_operand.vmem [shape: f32[1,128], index: 8, kind: input, shape index: {}]   ;;  %s6332_s9 = inlined_call_operand.hbm [shape: bf16[128,128], index: 9, kind: input, shape index: {}]   ;;  %s6333_s10 = inlined_call_operand.vmem [shape: f32[1,128], index: 10, kind: input, shape index: {}]   ;;  %s6334_s11 = inlined_call_operand.hbm [shape: bf16[8,128], index: 11, kind: output, shape index: {}]  }
   0x1   :  { %17 = vsyncpa [#allocation6], 0 }
   0x2   :  { %18 = vsyncpa [#allocation9], 0 }
   0x3   :  { %19 = vsyncpa [#allocation12], 0 }
   0x4   :  { %20 = vsyncpa [#allocation15], 0 }
   0x5   :  { %21 = vsyncpa [#allocation4], 0  ;;  %s39_s19 = sshll.u32 %s6324_s1, 4  ;;  %s40_s19 = int_to_ptr.hbm [resolvable:$true] %s39_s19 }
   0x6   :  { %25 = vsyncadd [#allocation3], 256  ;;  %s6044_s20 = smov [#allocation5]   ;;  %s6045_s22 = smov 512  }
   0x7   :  { %s41_s21 = sshll.u32 %s6044_s20, 4  ;;  %s6046_s23 = smov 32   ;;  %s42_s21 = int_to_ptr.vmem [resolvable:$true] %s41_s21 }
   0x8   :  { %47 = dma.hbm_to_vmem [thread:$0]  %s40_s19, 9728, %s42_s21, [#allocation6], %s6045_s22, %s6045_s22, %s6046_s23  }
   0x9   :  { %s63_s26 = sshll.u32 %s6326_s3, 4  ;;  %s6047_s27 = smov [#allocation8]   ;;  %s64_s26 = int_to_ptr.hbm [resolvable:$true] %s63_s26 }
   0xa   :  { %s65_s28 = sshll.u32 %s6047_s27, 4  ;;  %s87_s12 = sshll.u32 %s6328_s5, 4  ;;  %s66_s28 = int_to_ptr.vmem [resolvable:$true] %s65_s28  ;;  %s88_s12 = int_to_ptr.hbm [resolvable:$true] %s87_s12 }
   0xb   :  { %s6048_s1 = smov 256   ;;  %s6049_s13 = smov 16  }
   0xc   :  { %71 = dma.hbm_to_vmem [thread:$0]  %s64_s26, 32768, %s66_s28, [#allocation9], %s6048_s1, %s6048_s1, %s6049_s13  }
   0xd   :  { %s6050_s14 = smov [#allocation11]   ;;  %s26_s18 = sshll.u32 %s6323_s0, 4  ;;  %s27_s18 = int_to_ptr.hbm [resolvable:$true] %s26_s18 }
   0xe   :  { %s89_s15 = sshll.u32 %s6050_s14, 4  ;;  %s6051_s3 = smov 128   ;;  %s90_s15 = int_to_ptr.vmem [resolvable:$true] %s89_s15 }
   0xf   :  { %s6052_s19 = smov 8   ;;  %s6053_s20 = smov [#allocation2]  }
  0x10   :  { %95 = dma.hbm_to_vmem [thread:$0]  %s88_s12, 8192, %s90_s15, [#allocation12], %s6051_s3, %s6051_s3, %s6052_s19  }
  0x11   :  { %s28_s21 = sshll.u32 %s6053_s20, 4  ;;  %s53_s23 = sshll.u32 %s6325_s2, 4  ;;  %s29_s21 = int_to_ptr.vmem [resolvable:$true] %s28_s21  ;;  %s54_s23 = int_to_ptr.hbm [resolvable:$true] %s53_s23 }
  0x12   :  { %34 = dma.hbm_to_vmem [thread:$0]  %s27_s18, 256, %s29_s21, [#allocation3], %s6048_s1, %s6048_s1, %s6049_s13  }
  0x13   :  { %s77_s26 = sshll.u32 %s6327_s4, 4  ;;  %s6054_s27 = smov [#allocation7]   ;;  %s78_s26 = int_to_ptr.hbm [resolvable:$true] %s77_s26 }
  0x14   :  { %s55_s28 = sshll.u32 %s6054_s27, 4  ;;  %s6055_s0 = smov [#allocation10]   ;;  %s56_s28 = int_to_ptr.vmem [resolvable:$true] %s55_s28 }
  0x15   :  { %58 = dma.hbm_to_vmem [thread:$0]  %s54_s23, 128, %s56_s28, [#allocation6]  }
  0x16   :  { %s79_s29 = sshll.u32 %s6055_s0, 4  ;;  %s102_s14 = sshll.u32 %s6330_s7, 4  ;;  %s80_s29 = int_to_ptr.vmem [resolvable:$true] %s79_s29  ;;  %s103_s14 = int_to_ptr.hbm [resolvable:$true] %s102_s14 }
  0x17   :  { %82 = dma.hbm_to_vmem [thread:$0]  %s78_s26, 64, %s80_s29, [#allocation9]  }
  0x18   :  { %s6056_s2 = smov [#allocation13]   ;;  %s117_s4 = sshll.u32 %s6332_s9, 4  ;;  %s118_s4 = int_to_ptr.hbm [resolvable:$true] %s117_s4 }
  0x19   :  { %s104_s1 = sshll.u32 %s6056_s2, 4  ;;  %s6057_s16 = smov 64   ;;  %s105_s1 = int_to_ptr.vmem [resolvable:$true] %s104_s1 }
  0x1a   :  { %s6058_s17 = smov 4   ;;  %s6059_s18 = smov [#allocation14]  }
  0x1b   :  { %110 = dma.hbm_to_vmem [thread:$0]  %s103_s14, 2048, %s105_s1, [#allocation12], %s6057_s16, %s6057_s16, %s6058_s17  }
  0x1c   :  { %s119_s3 = sshll.u32 %s6059_s18, 4  ;;  %s120_s3 = int_to_ptr.vmem [resolvable:$true] %s119_s3 }
  0x1d   :  { %125 = dma.hbm_to_vmem [thread:$0]  %s118_s4, 1024, %s120_s3, [#allocation15], %s6057_s16, %s6057_s16, %s6058_s17  }
  0x1e   :  { %6032 = dma.done.wait [#allocation3], 512  }
  0x1f   :  { %6033 = vsyncadd [#allocation3], 4294966784 }
  0x20   :  { %6034 = dma.done.wait [#allocation6], 9856  }
  0x21   :  { %6035 = vsyncadd [#allocation6], 4294957440 }
  0x22   :  { %6036 = dma.done.wait [#allocation9], 32832  }
  0x23   :  { %6037 = vsyncadd [#allocation9], 4294934464 }
  0x24   :  { %6038 = dma.done.wait [#allocation12], 10240  }
  0x25   :  { %6039 = vsyncadd [#allocation12], 4294957056 }
  0x26   :  { %6040 = dma.done.wait [#allocation15], 1024  }
  0x27   :  { %6041 = vsyncadd [#allocation15], 4294966272  ;;  %vm645_vm0 = vcmask 1042432   ;;  %v3930_v0 = vld [vmem:[#allocation5 + $0x1c0] sm:$0xf]  ;;  %v162_v43 = vld [vmem:[#allocation2 + $0x8] sm:$0xff] }
  0x28   :  { %v5436_v1 = vld [vmem:[#allocation5 + $0x1dc] sm:$0xf0]  ;;  %v5432_v2 = vld [vmem:[#allocation5 + $0x1c4] sm:$0xf]  ;;  %v3938_v25 = vld [vmem:[#allocation5 + $0x1c8] sm:$0xf] }
  0x29   :  { %v3931_v3 = vor.u32 %v5436_v1, %v3930_v0  ;;  %v3932_v4 = vld [vmem:[#allocation5 + $0x1e0] sm:$0xf0]  ;;  %v3898_v6 = vld [vmem:[#allocation5 + $0x180] sm:$0xf]  ;;  %v5437_v28 = vld [vmem:[#allocation5 + $0x1e4] sm:$0xf0] }
  0x2a   :  { %v239_v5 = vld [vmem:[#allocation5 + $0x240] sm:$0x77]  ;;  %v3935_v7 = vor.u32 %v5432_v2, %v3932_v4  ;;  %v6153_v29 = vld [vmem:[#allocation5 + $0x248] sm:$0x77]  ;;  %v3939_v39 = vor.u32 %v5437_v28, %v3938_v25  ;;  %v164_v46 = vld [vmem:[#allocation2 + $0x18] sm:$0xff]  ;;  %vm641_vm1 = vcmask 179200  }
  0x2b   :  { %v481_v8 = vunpack.c.l.b16 %v239_v5  ;;  %v5428_v9 = vld [vmem:[#allocation5 + $0x19c] sm:$0xf0]  ;;  %v5424_v10 = vld [vmem:[#allocation5 + $0x184] sm:$0xf]  ;;  %v482_v12 = vunpack.c.h.b16 %v239_v5  ;;  %670 = vmatpush.bf16.msra.mxu0 %v3931_v3  ;;  %v483_v32 = vunpack.c.l.b16 %v6153_v29  ;;  %v3906_v41 = vld [vmem:[#allocation5 + $0x188] sm:$0xf]  ;;  %v6157_v49 = vpack.c.bf16 %v164_v46, %v162_v43 }
  0x2c   :  { %v3900_v11 = vld [vmem:[#allocation5 + $0x1a0] sm:$0xf0]  ;;  %v3899_v13 = vor.u32 %v5428_v9, %v3898_v6  ;;  %v3962_v14 = vld [vmem:[#allocation5 + $0x200] sm:$0xf]  ;;  %698 = vmatpush.bf16.msra.mxu2 %v3935_v7  ;;  %v5429_v42 = vld [vmem:[#allocation5 + $0x1a4] sm:$0xf0]  ;;  %v484_v43 = vunpack.c.h.b16 %v6153_v29 }
  0x2d   :  { %v5444_v15 = vld [vmem:[#allocation5 + $0x21c] sm:$0xf0]  ;;  %v561_v17 = vpack.c.b16 %v481_v8, %v481_v8  ;;  %v3903_v18 = vor.u32 %v5424_v10, %v3900_v11  ;;  %v562_v19 = vpack.c.b16 %v482_v12, %v482_v12  ;;  %v5416_v21 = vld [vmem:[#allocation5 + $0x144] sm:$0xf]  ;;  %v563_v40 = vpack.c.b16 %v483_v32, %v483_v32  ;;  %v3970_v44 = vld [vmem:[#allocation5 + $0x208] sm:$0xf] }
  0x2e   :  { %v3866_v16 = vld [vmem:[#allocation5 + $0x140] sm:$0xf]  ;;  %v3868_v22 = vld [vmem:[#allocation5 + $0x160] sm:$0xf0]  ;;  %v3963_v30 = vor.u32 %v5444_v15, %v3962_v14  ;;  %v5445_v45 = vld [vmem:[#allocation5 + $0x224] sm:$0xf0]  ;;  %v3907_v55 = vor.u32 %v5429_v42, %v3906_v41 }
  0x2f   :  { %v5420_v20 = vld [vmem:[#allocation5 + $0x15c] sm:$0xf0]  ;;  %v5440_v23 = vld [vmem:[#allocation5 + $0x204] sm:$0xf]  ;;  %v647_v26 = vsel %vm645_vm0, %v561_v17, 0  ;;  %v650_v27 = vsel %vm645_vm0, %v562_v19, 0  ;;  %671 = vmatpush.bf16.msra.mxu0 %v3899_v13  ;;  %v3871_v34 = vor.u32 %v5416_v21, %v3868_v22  ;;  %v3971_v56 = vor.u32 %v5445_v45, %v3970_v44 }
  0x30   :  { %v3964_v24 = vld [vmem:[#allocation5 + $0x220] sm:$0xf0]  ;;  %690 = vmatpush.bf16.msra.mxu1 %v647_v26  ;;  %v3867_v31 = vor.u32 %v5420_v20, %v3866_v16  ;;  %v3834_v33 = vld [vmem:[#allocation5 + $0x100] sm:$0xf]  ;;  %699 = vmatpush.bf16.msra.mxu2 %v3903_v18  ;;  %v653_v47 = vsel %vm645_vm0, %v563_v40, 0  ;;  %v163_v41 = vld [vmem:[#allocation2 + $0x10] sm:$0xff] }
  0x31   :  { %718 = vmatpush.bf16.msra.mxu3 %v650_v27  ;;  %v3967_v35 = vor.u32 %v5440_v23, %v3964_v24  ;;  %v5412_v36 = vld [vmem:[#allocation5 + $0x11c] sm:$0xf0]  ;;  %v5408_v37 = vld [vmem:[#allocation5 + $0x104] sm:$0xf]  ;;  %v5433_v50 = vld [vmem:[#allocation5 + $0x1cc] sm:$0xf] }
  0x32   :  { %v3836_v38 = vld [vmem:[#allocation5 + $0x120] sm:$0xf0]  ;;  %v3835_v48 = vor.u32 %v5412_v36, %v3834_v33  ;;  %v3940_v51 = vld [vmem:[#allocation5 + $0x1e8] sm:$0xf0]  ;;  %v3802_v53 = vld [vmem:[#allocation5 + $0xc0] sm:$0xf] }
  0x33   :  { %672 = vmatpush.bf16.msra.mxu0 %v3867_v31  ;;  %v3839_v52 = vor.u32 %v5408_v37, %v3836_v38  ;;  %v5404_v54 = vld [vmem:[#allocation5 + $0xdc] sm:$0xf0]  ;;  %v5400_v57 = vld [vmem:[#allocation5 + $0xc4] sm:$0xf]  ;;  %v3943_v59 = vor.u32 %v5433_v50, %v3940_v51  ;;  %v3874_v60 = vld [vmem:[#allocation5 + $0x148] sm:$0xf] }
  0x34   :  { %691 = vmatpush.bf16.msra.mxu1 %v3963_v30  ;;  %700 = vmatpush.bf16.msra.mxu2 %v3871_v34  ;;  %v3804_v58 = vld [vmem:[#allocation5 + $0xe0] sm:$0xf0]  ;;  %v5421_v61 = vld [vmem:[#allocation5 + $0x164] sm:$0xf0]  ;;  %v3803_v62 = vor.u32 %v5404_v54, %v3802_v53  ;;  %v5425_v63 = vld [vmem:[#allocation5 + $0x18c] sm:$0xf] }
  0x35   :  { %719 = vmatpush.bf16.msra.mxu3 %v3967_v35  ;;  %v3908_v0 = vld [vmem:[#allocation5 + $0x1a8] sm:$0xf0]  ;;  %v3807_v1 = vor.u32 %v5400_v57, %v3804_v58  ;;  %v3770_v2 = vld [vmem:[#allocation5 + $0x80] sm:$0xf]  ;;  %v3875_v4 = vor.u32 %v5421_v61, %v3874_v60  ;;  %v5392_v5 = vld [vmem:[#allocation5 + $0x84] sm:$0xf]  ;;  %v564_v61 = vpack.c.b16 %v484_v43, %v484_v43 }
  0x36   :  { %v5396_v3 = vld [vmem:[#allocation5 + $0x9c] sm:$0xf0]  ;;  %v3772_v6 = vld [vmem:[#allocation5 + $0xa0] sm:$0xf0]  ;;  %v3911_v7 = vor.u32 %v5425_v63, %v3908_v0  ;;  %v3842_v8 = vld [vmem:[#allocation5 + $0x108] sm:$0xf] }
  0x37   :  { %3992 = vmatmul.msk.bf16.vlgmr.msra.gmra.mxu1 %vm641_vm1, %v6157_v49  ;;  %673 = vmatpush.bf16.msra.mxu0 %v3835_v48  ;;  %v5413_v9 = vld [vmem:[#allocation5 + $0x124] sm:$0xf0]  ;;  %v3771_v10 = vor.u32 %v5396_v3, %v3770_v2  ;;  %v5417_v11 = vld [vmem:[#allocation5 + $0x14c] sm:$0xf]  ;;  %v3775_v13 = vor.u32 %v5392_v5, %v3772_v6  ;;  %v3738_v14 = vld [vmem:[#allocation5 + $0x40] sm:$0xf] }
  0x38   :  { %726 = vmatpush.bf16.msrb.mxu1 %v3939_v39  ;;  %3993 = vmatmul.msk.bf16.vlgmr.msra.gmra.mxu3 %vm641_vm1, %v6157_v49  ;;  %v3876_v12 = vld [vmem:[#allocation5 + $0x168] sm:$0xf0]  ;;  %v5388_v15 = vld [vmem:[#allocation5 + $0x5c] sm:$0xf0]  ;;  %v3843_v16 = vor.u32 %v5413_v9, %v3842_v8  ;;  %v5384_v17 = vld [vmem:[#allocation5 + $0x44] sm:$0xf] }
  0x39   :  { %746 = vmatpush.bf16.msrb.mxu3 %v653_v47  ;;  %701 = vmatpush.bf16.msra.mxu2 %v3839_v52  ;;  %v3740_v18 = vld [vmem:[#allocation5 + $0x60] sm:$0xf0]  ;;  %v3879_v19 = vor.u32 %v5417_v11, %v3876_v12  ;;  %v3810_v20 = vld [vmem:[#allocation5 + $0xc8] sm:$0xf]  ;;  %v3739_v22 = vor.u32 %v5388_v15, %v3738_v14  ;;  %v5409_v23 = vld [vmem:[#allocation5 + $0x10c] sm:$0xf] }
  0x3a   :  { %v5405_v21 = vld [vmem:[#allocation5 + $0xe4] sm:$0xf0]  ;;  %v3844_v24 = vld [vmem:[#allocation5 + $0x128] sm:$0xf0]  ;;  %v3743_v25 = vor.u32 %v5384_v17, %v3740_v18  ;;  %v3706_v26 = vld [vmem:[#allocation5] sm:$0xf] }
  0x3b   :  { %674 = vmatpush.bf16.msra.mxu0 %v3803_v62  ;;  %v5380_v27 = vld [vmem:[#allocation5 + $0x1c] sm:$0xf0]  ;;  %v3811_v28 = vor.u32 %v5405_v21, %v3810_v20  ;;  %v5376_v30 = vld [vmem:[#allocation5 + $0x4] sm:$0xf]  ;;  %v3778_v32 = vld [vmem:[#allocation5 + $0x88] sm:$0xf]  ;;  %v3847_v34 = vor.u32 %v5409_v23, %v3844_v24 }
  0x3c   :  { %727 = vmatpush.bf16.msrb.mxu1 %v3907_v55  ;;  %v3708_v31 = vld [vmem:[#allocation5 + $0x20] sm:$0xf0]  ;;  %v5397_v35 = vld [vmem:[#allocation5 + $0xa4] sm:$0xf0]  ;;  %v3946_v36 = vld [vmem:[#allocation5 + $0x1d0] sm:$0xf]  ;;  %v3707_v38 = vor.u32 %v5380_v27, %v3706_v26 }
  0x3d   :  { %747 = vmatpush.bf16.msrb.mxu3 %v3971_v56  ;;  %702 = vmatpush.bf16.msra.mxu2 %v3807_v1  ;;  %v161_v33 = vld [vmem:[#allocation2] sm:$0xff]  ;;  %v5438_v37 = vld [vmem:[#allocation5 + $0x1ec] sm:$0xf0]  ;;  %v5401_v39 = vld [vmem:[#allocation5 + $0xcc] sm:$0xf]  ;;  %v3711_v42 = vor.u32 %v5376_v30, %v3708_v31  ;;  %v3779_v44 = vor.u32 %v5397_v35, %v3778_v32 }
  0x3e   :  { %v3812_v40 = vld [vmem:[#allocation5 + $0xe8] sm:$0xf0]  ;;  %v3947_v45 = vor.u32 %v5438_v37, %v3946_v36  ;;  %v3746_v46 = vld [vmem:[#allocation5 + $0x48] sm:$0xf]  ;;  %v6164_v50 = vpack.c.bf16 %v163_v41, %v161_v33  ;;  %v3914_v51 = vld [vmem:[#allocation5 + $0x190] sm:$0xf] }
  0x3f   :  { %675 = vmatpush.bf16.msra.mxu0 %v3771_v10  ;;  %v5389_v47 = vld [vmem:[#allocation5 + $0x64] sm:$0xf0]  ;;  %v3815_v48 = vor.u32 %v5401_v39, %v3812_v40  ;;  %v5430_v52 = vld [vmem:[#allocation5 + $0x1ac] sm:$0xf0]  ;;  %v5393_v53 = vld [vmem:[#allocation5 + $0x8c] sm:$0xf] }
  0x40   :  { %728 = vmatpush.bf16.msrb.mxu1 %v3875_v4  ;;  %v3780_v54 = vld [vmem:[#allocation5 + $0xa8] sm:$0xf0]  ;;  %v5434_v55 = vld [vmem:[#allocation5 + $0x1d4] sm:$0xf]  ;;  %v3747_v57 = vor.u32 %v5389_v47, %v3746_v46  ;;  %v3915_v58 = vor.u32 %v5430_v52, %v3914_v51  ;;  %v5381_v60 = vld [vmem:[#allocation5 + $0x24] sm:$0xf0] }
  0x41   :  { %754 = vmatpush.bf16.msra.mxu3 %v3943_v59  ;;  %703 = vmatpush.bf16.msra.mxu2 %v3775_v13  ;;  %v3948_v56 = vld [vmem:[#allocation5 + $0x1f0] sm:$0xf0]  ;;  %v3714_v59 = vld [vmem:[#allocation5 + $0x8] sm:$0xf]  ;;  %v3783_v63 = vor.u32 %v5393_v53, %v3780_v54  ;;  %v3882_v0 = vld [vmem:[#allocation5 + $0x150] sm:$0xf] }
  0x42   :  { %v3951_v29 = vor.u32 %v5434_v55, %v3948_v56  ;;  %v5426_v62 = vld [vmem:[#allocation5 + $0x194] sm:$0xf]  ;;  %v5422_v1 = vld [vmem:[#allocation5 + $0x16c] sm:$0xf0]  ;;  %v5385_v3 = vld [vmem:[#allocation5 + $0x4c] sm:$0xf]  ;;  %v3715_v8 = vor.u32 %v5381_v60, %v3714_v59 }
  0x43   :  { %676 = vmatpush.bf16.msra.mxu0 %v3739_v22  ;;  %v3916_v2 = vld [vmem:[#allocation5 + $0x1b0] sm:$0xf0]  ;;  %v3748_v4 = vld [vmem:[#allocation5 + $0x68] sm:$0xf0]  ;;  %v3883_v9 = vor.u32 %v5422_v1, %v3882_v0  ;;  %v656_v10 = vsel %vm645_vm0, %v564_v61, 0 }
  0x44   :  { %729 = vmatpush.bf16.msrb.mxu1 %v3843_v16  ;;  %v3919_v5 = vor.u32 %v5426_v62, %v3916_v2  ;;  %v5418_v6 = vld [vmem:[#allocation5 + $0x154] sm:$0xf]  ;;  %v3751_v12 = vor.u32 %v5385_v3, %v3748_v4  ;;  %v3850_v13 = vld [vmem:[#allocation5 + $0x110] sm:$0xf]  ;;  %v5377_v15 = vld [vmem:[#allocation5 + $0xc] sm:$0xf] }
  0x45   :  { %755 = vmatpush.bf16.msra.mxu3 %v3911_v7  ;;  %704 = vmatpush.bf16.msra.mxu2 %v3743_v25  ;;  %v3884_v7 = vld [vmem:[#allocation5 + $0x170] sm:$0xf0]  ;;  %v5414_v14 = vld [vmem:[#allocation5 + $0x12c] sm:$0xf0]  ;;  %v3716_v17 = vld [vmem:[#allocation5 + $0x28] sm:$0xf0] }
  0x46   :  { %v6171_v11 = vld [vmem:[#allocation5 + $0x250] sm:$0x77]  ;;  %v5441_v18 = vld [vmem:[#allocation5 + $0x20c] sm:$0xf]  ;;  %v3887_v20 = vor.u32 %v5418_v6, %v3884_v7  ;;  %v3954_v21 = vld [vmem:[#allocation5 + $0x1d8] sm:$0xf]  ;;  %v3851_v24 = vor.u32 %v5414_v14, %v3850_v13  ;;  %v3719_v27 = vor.u32 %v5377_v15, %v3716_v17 }
  0x47   :  { %677 = vmatpush.bf16.msra.mxu0 %v3707_v38  ;;  %v485_v16 = vunpack.c.l.b16 %v6171_v11  ;;  %v5439_v22 = vld [vmem:[#allocation5 + $0x1f4] sm:$0xf0]  ;;  %v5410_v25 = vld [vmem:[#allocation5 + $0x114] sm:$0xf]  ;;  %v5406_v30 = vld [vmem:[#allocation5 + $0xec] sm:$0xf0] }
  0x48   :  { %730 = vmatpush.bf16.msrb.mxu1 %v3811_v28  ;;  %3994 = vmatmul.msk.bf16.vlgmr.msrb.gmra.mxu3 %vm641_vm1, %v6157_v49  ;;  %v3852_v26 = vld [vmem:[#allocation5 + $0x130] sm:$0xf0]  ;;  %v3818_v28 = vld [vmem:[#allocation5 + $0xd0] sm:$0xf]  ;;  %v3955_v32 = vor.u32 %v5439_v22, %v3954_v21  ;;  %v3922_v33 = vld [vmem:[#allocation5 + $0x198] sm:$0xf] }
  0x49   :  { %756 = vmatpush.bf16.msra.mxu3 %v3879_v19  ;;  %705 = vmatpush.bf16.msra.mxu2 %v3711_v42  ;;  %v3972_v19 = vld [vmem:[#allocation5 + $0x228] sm:$0xf0]  ;;  %v565_v23 = vpack.c.b16 %v485_v16, %v485_v16  ;;  %v3855_v36 = vor.u32 %v5410_v25, %v3852_v26  ;;  %v3978_v37 = vld [vmem:[#allocation5 + $0x210] sm:$0xf]  ;;  %v3819_v39 = vor.u32 %v5406_v30, %v3818_v28  ;;  %v5402_v40 = vld [vmem:[#allocation5 + $0xd4] sm:$0xf] }
  0x4a   :  { %678 = vmatmul.bf16.vlgmr.msra.gmra.mxu0 %v6164_v50  ;;  %v3975_v31 = vor.u32 %v5441_v18, %v3972_v19  ;;  %v5446_v38 = vld [vmem:[#allocation5 + $0x22c] sm:$0xf0]  ;;  %v3820_v41 = vld [vmem:[#allocation5 + $0xf0] sm:$0xf0]  ;;  %v3890_v46 = vld [vmem:[#allocation5 + $0x158] sm:$0xf] }
  0x4b   :  { %810 = vmatpush.bf16.msrb.mxu0 %v3951_v29  ;;  %v659_v35 = vsel %vm645_vm0, %v565_v23, 0  ;;  %v3786_v42 = vld [vmem:[#allocation5 + $0x90] sm:$0xf]  ;;  %v5423_v47 = vld [vmem:[#allocation5 + $0x174] sm:$0xf0]  ;;  %v486_v29 = vunpack.c.h.b16 %v6171_v11 }
  0x4c   :  { %731 = vmatpush.bf16.msrb.mxu1 %v3779_v44  ;;  %706 = vmatmul.bf16.vlgmr.msra.gmra.mxu2 %v6164_v50  ;;  %v5398_v43 = vld [vmem:[#allocation5 + $0xac] sm:$0xf0]  ;;  %v242_v51 = vld [vmem:[#allocation5 + $0x258] sm:$0x77]  ;;  %v5394_v53 = vld [vmem:[#allocation5 + $0x94] sm:$0xf] }
  0x4d   :  { %757 = vmatpush.bf16.msra.mxu3 %v3847_v34  ;;  %782 = vmatpush.bf16.msrb.mxu2 %v3947_v45  ;;  %v5431_v34 = vld [vmem:[#allocation5 + $0x1b4] sm:$0xf0]  ;;  %v3979_v45 = vor.u32 %v5446_v38, %v3978_v37  ;;  %v3787_v52 = vor.u32 %v5398_v43, %v3786_v42  ;;  %v3788_v54 = vld [vmem:[#allocation5 + $0xb0] sm:$0xf0]  ;;  %v3754_v55 = vld [vmem:[#allocation5 + $0x50] sm:$0xf]  ;;  %v566_v3 = vpack.c.b16 %v486_v29, %v486_v29  ;;  %v488_v15 = vunpack.c.h.b16 %v242_v51 }
  0x4e   :  { %v3923_v44 = vor.u32 %v5431_v34, %v3922_v33  ;;  %v5390_v56 = vld [vmem:[#allocation5 + $0x6c] sm:$0xf0]  ;;  %v3858_v59 = vld [vmem:[#allocation5 + $0x118] sm:$0xf]  ;;  %v3791_v61 = vor.u32 %v5394_v53, %v3788_v54  ;;  %v3756_v0 = vld [vmem:[#allocation5 + $0x70] sm:$0xf0] }
  0x4f   :  { %811 = vmatpush.bf16.msrb.mxu0 %v3919_v5  ;;  %v5415_v60 = vld [vmem:[#allocation5 + $0x134] sm:$0xf0]  ;;  %v3755_v62 = vor.u32 %v5390_v56, %v3754_v55  ;;  %v3722_v1 = vld [vmem:[#allocation5 + $0x10] sm:$0xf]  ;;  %v3724_v11 = vld [vmem:[#allocation5 + $0x30] sm:$0xf0]  ;;  %v568_v23 = vpack.c.b16 %v488_v15, %v488_v15 }
  0x50   :  { %732 = vmatpush.bf16.msrb.mxu1 %v3747_v57  ;;  %v3891_v57 = vor.u32 %v5423_v47, %v3890_v46  ;;  %v5382_v2 = vld [vmem:[#allocation5 + $0x2c] sm:$0xf0]  ;;  %v3859_v4 = vor.u32 %v5415_v60, %v3858_v59  ;;  %v3826_v6 = vld [vmem:[#allocation5 + $0xd8] sm:$0xf]  ;;  %v5442_v13 = vld [vmem:[#allocation5 + $0x214] sm:$0xf] }
  0x51   :  { %758 = vmatpush.bf16.msra.mxu3 %v3815_v48  ;;  %783 = vmatpush.bf16.msrb.mxu2 %v3915_v58  ;;  %v3823_v48 = vor.u32 %v5402_v40, %v3820_v41  ;;  %v487_v58 = vunpack.c.l.b16 %v242_v51  ;;  %v5407_v7 = vld [vmem:[#allocation5 + $0xf4] sm:$0xf0]  ;;  %v3980_v14 = vld [vmem:[#allocation5 + $0x230] sm:$0xf0]  ;;  %v668_v26 = vsel %vm645_vm0, %v568_v23, 0 }
  0x52   :  { %v3827_v16 = vor.u32 %v5407_v7, %v3826_v6  ;;  %v3986_v18 = vld [vmem:[#allocation5 + $0x218] sm:$0xf]  ;;  %v5435_v37 = vld [vmem:[#allocation5 + $0x1dc] sm:$0xf]  ;;  %v4114_v43 = vld [vmem:[#allocation8 + $0xe0] sm:$0xf] }
  0x53   :  { %812 = vmatpush.bf16.msrb.mxu0 %v3887_v20  ;;  %v567_v5 = vpack.c.b16 %v487_v58, %v487_v58  ;;  %v5447_v19 = vld [vmem:[#allocation5 + $0x234] sm:$0xf0]  ;;  %v3956_v38 = vld [vmem:[#allocation5 + $0x1f8] sm:$0xf0]  ;;  %v4370_v53 = vld [vmem:[#allocation8 + $0x2e0] sm:$0xf] }
  0x54   :  { %733 = vmatpush.bf16.msrb.mxu1 %v3715_v8  ;;  %v3794_v20 = vld [vmem:[#allocation5 + $0x98] sm:$0xf]  ;;  %v3987_v25 = vor.u32 %v5447_v19, %v3986_v18  ;;  %v3959_v40 = vor.u32 %v5435_v37, %v3956_v38  ;;  %v5427_v41 = vld [vmem:[#allocation5 + $0x19c] sm:$0xf]  ;;  %v4354_v29 = vld [vmem:[#allocation8 + $0x2c0] sm:$0xf] }
  0x55   :  { %759 = vmatpush.bf16.msra.mxu3 %v3783_v63  ;;  %784 = vmatpush.bf16.msrb.mxu2 %v3883_v9  ;;  %v5386_v63 = vld [vmem:[#allocation5 + $0x54] sm:$0xf]  ;;  %v3723_v9 = vor.u32 %v5382_v2, %v3722_v1  ;;  %v665_v17 = vsel %vm645_vm0, %v567_v5, 0  ;;  %v5399_v21 = vld [vmem:[#allocation5 + $0xb4] sm:$0xf0] }
  0x56   :  { %v3759_v8 = vor.u32 %v5386_v63, %v3756_v0  ;;  %v3762_v28 = vld [vmem:[#allocation5 + $0x58] sm:$0xf]  ;;  %v3924_v42 = vld [vmem:[#allocation5 + $0x1b8] sm:$0xf0]  ;;  %v4082_v58 = vld [vmem:[#allocation8 + $0xa0] sm:$0xf] }
  0x57   :  { %734 = vmatmul.bf16.vlgmr.msrb.gmra.mxu1 %v6164_v50  ;;  %813 = vmatpush.bf16.msrb.mxu0 %v3855_v36  ;;  %v5391_v30 = vld [vmem:[#allocation5 + $0x74] sm:$0xf0]  ;;  %v3927_v46 = vor.u32 %v5427_v41, %v3924_v42  ;;  %v5419_v47 = vld [vmem:[#allocation5 + $0x15c] sm:$0xf]  ;;  %v4066_v1 = vld [vmem:[#allocation8 + $0x80] sm:$0xf] }
  0x58   :  { %774 = vmatpush.bf16.msra.mxu1 %v656_v10  ;;  %v5378_v10 = vld [vmem:[#allocation5 + $0x14] sm:$0xf]  ;;  %v3763_v34 = vor.u32 %v5391_v30, %v3762_v28  ;;  %v5383_v36 = vld [vmem:[#allocation5 + $0x34] sm:$0xf0]  ;;  %v3860_v63 = vld [vmem:[#allocation5 + $0x138] sm:$0xf0] }
  0x59   :  { %760 = vmatpush.bf16.msra.mxu3 %v3751_v12  ;;  %785 = vmatpush.bf16.msrb.mxu2 %v3851_v24  ;;  %v662_v12 = vsel %vm645_vm0, %v566_v3, 0  ;;  %v3727_v22 = vor.u32 %v5378_v10, %v3724_v11  ;;  %v3983_v24 = vor.u32 %v5442_v13, %v3980_v14  ;;  %v5474_v51 = vld [vmem:[#allocation8 + $0xcc] sm:$0xf0]  ;;  %v3828_v5 = vld [vmem:[#allocation5 + $0xf8] sm:$0xf0] }
  0x5a   :  { %v5542_v54 = vld [vmem:[#allocation8 + $0x2ec] sm:$0xf0]  ;;  %v5387_v11 = vld [vmem:[#allocation5 + $0x5c] sm:$0xf]  ;;  %v4242_v19 = vld [vmem:[#allocation8 + $0x1e0] sm:$0xf] }
  0x5b   :  { %814 = vmatpush.bf16.msrb.mxu0 %v3823_v48  ;;  %v4371_v56 = vor.u32 %v5542_v54, %v4370_v53  ;;  %v5470_v59 = vld [vmem:[#allocation8 + $0xac] sm:$0xf0]  ;;  %v5379_v14 = vld [vmem:[#allocation5 + $0x1c] sm:$0xf]  ;;  %v4290_v54 = vld [vmem:[#allocation8 + $0x240] sm:$0xf] }
  0x5c   :  { %775 = vmatpush.bf16.msra.mxu1 %v3975_v31  ;;  %v5443_v31 = vld [vmem:[#allocation5 + $0x21c] sm:$0xf]  ;;  %v4083_v0 = vor.u32 %v5470_v59, %v4082_v58  ;;  %v5466_v2 = vld [vmem:[#allocation8 + $0x8c] sm:$0xf0]  ;;  %v4610_v59 = vld [vmem:[#allocation8 + $0x4c0] sm:$0xf] }
  0x5d   :  { %761 = vmatpush.bf16.msra.mxu3 %v3719_v27  ;;  %786 = vmatpush.bf16.msrb.mxu2 %v3819_v39  ;;  %v3795_v27 = vor.u32 %v5399_v21, %v3794_v20  ;;  %v4067_v6 = vor.u32 %v5466_v2, %v4066_v1  ;;  %v3732_v15 = vld [vmem:[#allocation5 + $0x38] sm:$0xf0]  ;;  %v5462_v18 = vld [vmem:[#allocation8 + $0x6c] sm:$0xf0]  ;;  %v4274_v1 = vld [vmem:[#allocation8 + $0x220] sm:$0xf] }
  0x5e   :  { %v5510_v21 = vld [vmem:[#allocation8 + $0x1ec] sm:$0xf0] }
  0x5f   :  { %815 = vmatpush.bf16.msrb.mxu0 %v3791_v61  ;;  %v4243_v23 = vor.u32 %v5510_v21, %v4242_v19  ;;  %v5506_v30 = vld [vmem:[#allocation8 + $0x1cc] sm:$0xf0]  ;;  %v4578_v21 = vld [vmem:[#allocation8 + $0x480] sm:$0xf] }
  0x60   :  { %802 = vmatpush.bf16.msrb.mxu1 %v659_v35  ;;  %762 = vmatmul.bf16.vlgmr.msra.gmra.mxu3 %v6164_v50  ;;  %v3730_v35 = vld [vmem:[#allocation5 + $0x18] sm:$0xf] }
  0x61   :  { %838 = vmatpush.bf16.msrb.mxu3 %v3955_v32  ;;  %787 = vmatpush.bf16.msrb.mxu2 %v3787_v52  ;;  %v3988_v32 = vld [vmem:[#allocation5 + $0x238] sm:$0xf0]  ;;  %v3731_v39 = vor.u32 %v5383_v36, %v3730_v35  ;;  %v5454_v35 = vld [vmem:[#allocation8 + $0x2c] sm:$0xf0]  ;;  %v4210_v36 = vld [vmem:[#allocation8 + $0x1a0] sm:$0xf] }
  0x62   :  { %v3991_v33 = vor.u32 %v5443_v31, %v3988_v32  ;;  %v3892_v52 = vld [vmem:[#allocation5 + $0x178] sm:$0xf0]  ;;  %v4322_v32 = vld [vmem:[#allocation8 + $0x280] sm:$0xf]  ;;  %v5502_v38 = vld [vmem:[#allocation8 + $0x1ac] sm:$0xf0] }
  0x63   :  { %816 = vmatpush.bf16.msrb.mxu0 %v3759_v8  ;;  %v3895_v60 = vor.u32 %v5419_v47, %v3892_v52  ;;  %v5395_v8 = vld [vmem:[#allocation5 + $0x9c] sm:$0xf]  ;;  %v4211_v41 = vor.u32 %v5502_v38, %v4210_v36  ;;  %v5498_v47 = vld [vmem:[#allocation8 + $0x18c] sm:$0xf0]  ;;  %v4754_v36 = vld [vmem:[#allocation8 + $0x5e0] sm:$0xf] }
  0x64   :  { %803 = vmatpush.bf16.msrb.mxu1 %v3979_v45  ;;  %v4098_v45 = vld [vmem:[#allocation8 + $0xc0] sm:$0xf]  ;;  %v5518_v2 = vld [vmem:[#allocation8 + $0x22c] sm:$0xf0] }
  0x65   :  { %839 = vmatpush.bf16.msrb.mxu3 %v3923_v44  ;;  %788 = vmatpush.bf16.msrb.mxu2 %v3755_v62  ;;  %v5478_v44 = vld [vmem:[#allocation8 + $0xec] sm:$0xf0]  ;;  %v4099_v55 = vor.u32 %v5474_v51, %v4098_v45  ;;  %v5411_v62 = vld [vmem:[#allocation5 + $0x11c] sm:$0xf]  ;;  %v4194_v45 = vld [vmem:[#allocation8 + $0x180] sm:$0xf] }
  0x66   :  { %v4115_v48 = vor.u32 %v5478_v44, %v4114_v43  ;;  %v3863_v3 = vor.u32 %v5411_v62, %v3860_v63  ;;  %v4002_v43 = vld [vmem:[#allocation8] sm:$0xf]  ;;  %v5450_v44 = vld [vmem:[#allocation8 + $0xc] sm:$0xf0]  ;;  %v4195_v52 = vor.u32 %v5498_v47, %v4194_v45 }
  0x67   :  { %3995 = vmatmul.msk.bf16.vlgmr.msra.gmra.mxu1 %vm641_vm1, %v6157_v49  ;;  %817 = vmatpush.bf16.msrb.mxu0 %v3727_v22  ;;  %v4338_v22 = vld [vmem:[#allocation8 + $0x2a0] sm:$0xf]  ;;  %v5606_v51 = vld [vmem:[#allocation8 + $0x4ec] sm:$0xf0] }
  0x68   :  { %830 = vmatpush.bf16.msra.mxu1 %v662_v12  ;;  %v3764_v12 = vld [vmem:[#allocation5 + $0x78] sm:$0xf0]  ;;  %v4498_v62 = vld [vmem:[#allocation8 + $0x3e0] sm:$0xf]  ;;  %v5574_v63 = vld [vmem:[#allocation8 + $0x3ec] sm:$0xf0] }
  0x69   :  { %840 = vmatpush.bf16.msrb.mxu3 %v3891_v57  ;;  %789 = vmatpush.bf16.msrb.mxu2 %v3723_v9  ;;  %v5538_v57 = vld [vmem:[#allocation8 + $0x2cc] sm:$0xf0]  ;;  %v3796_v9 = vld [vmem:[#allocation5 + $0xb8] sm:$0xf0]  ;;  %v3767_v13 = vor.u32 %v5387_v11, %v3764_v12  ;;  %v4450_v38 = vld [vmem:[#allocation8 + $0x380] sm:$0xf] }
  0x6a   :  { %818 = vmatmul.bf16.vlgmr.msrb.gmra.mxu0 %v6164_v50  ;;  %v4355_v61 = vor.u32 %v5538_v57, %v4354_v29  ;;  %v3799_v10 = vor.u32 %v5395_v8, %v3796_v9  ;;  %v4178_v29 = vld [vmem:[#allocation8 + $0x160] sm:$0xf]  ;;  %v5494_v57 = vld [vmem:[#allocation8 + $0x16c] sm:$0xf0] }
  0x6b   :  { %886 = vmatpush.bf16.msra.mxu0 %v668_v26  ;;  %v5458_v26 = vld [vmem:[#allocation8 + $0x4c] sm:$0xf0]  ;;  %v4179_v58 = vor.u32 %v5494_v57, %v4178_v29  ;;  %v4546_v45 = vld [vmem:[#allocation8 + $0x440] sm:$0xf] }
  0x6c   :  { %790 = vmatmul.bf16.vlgmr.msrb.gmra.mxu2 %v6164_v50  ;;  %831 = vmatpush.bf16.msra.mxu1 %v3983_v24  ;;  %v5598_v8 = vld [vmem:[#allocation8 + $0x4ac] sm:$0xf0]  ;;  %v4738_v47 = vld [vmem:[#allocation8 + $0x5c0] sm:$0xf] }
  0x6d   :  { %841 = vmatpush.bf16.msrb.mxu3 %v3859_v4  ;;  %858 = vmatpush.bf16.msra.mxu2 %v665_v17  ;;  %v5403_v4 = vld [vmem:[#allocation5 + $0xdc] sm:$0xf]  ;;  %v4050_v17 = vld [vmem:[#allocation8 + $0x60] sm:$0xf]  ;;  %v5570_v11 = vld [vmem:[#allocation8 + $0x3cc] sm:$0xf0] }
  0x6e   :  { %v3831_v7 = vor.u32 %v5403_v4, %v3828_v5  ;;  %v4051_v20 = vor.u32 %v5462_v18, %v4050_v17  ;;  %v4162_v4 = vld [vmem:[#allocation8 + $0x140] sm:$0xf]  ;;  %v5490_v5 = vld [vmem:[#allocation8 + $0x14c] sm:$0xf0] }
  0x6f   :  { %887 = vmatpush.bf16.msra.mxu0 %v3991_v33  ;;  %v5530_v33 = vld [vmem:[#allocation8 + $0x28c] sm:$0xf0]  ;;  %v4882_v18 = vld [vmem:[#allocation8 + $0x6e0] sm:$0xf] }
  0x70   :  { %v5486_v17 = vld [vmem:[#allocation8 + $0x12c] sm:$0xf0]  ;;  %v4834_v29 = vld [vmem:[#allocation8 + $0x680] sm:$0xf] }
  0x71   :  { %842 = vmatpush.bf16.msrb.mxu3 %v3827_v16  ;;  %859 = vmatpush.bf16.msra.mxu2 %v3987_v25  ;;  %v3735_v16 = vor.u32 %v5379_v14, %v3732_v15  ;;  %v4034_v25 = vld [vmem:[#allocation8 + $0x40] sm:$0xf]  ;;  %v5514_v14 = vld [vmem:[#allocation8 + $0x20c] sm:$0xf0] }
  0x72   :  { %v4035_v28 = vor.u32 %v5458_v26, %v4034_v25  ;;  %v5566_v25 = vld [vmem:[#allocation8 + $0x3ac] sm:$0xf0] }
  0x73   :  { %2492 = vmatpush.bf16.msrb.mxu0 %v4371_v56  ;;  %v5658_v57 = vld [vmem:[#allocation8 + $0x68c] sm:$0xf0] }
  0x75   :  { %843 = vmatpush.bf16.msrb.mxu3 %v3795_v27  ;;  %2464 = vmatpush.bf16.msrb.mxu2 %v4115_v48  ;;  %v4226_v27 = vld [vmem:[#allocation8 + $0x1c0] sm:$0xf] }
  0x76   :  { %v4227_v31 = vor.u32 %v5506_v30, %v4226_v27  ;;  %v4626_v48 = vld [vmem:[#allocation8 + $0x4e0] sm:$0xf] }
  0x77   :  { %3996 = vmatmul.msk.bf16.vlgmr.msrb.gmra.mxu1 %vm641_vm1, %v6157_v49  ;;  %2493 = vmatpush.bf16.msrb.mxu0 %v4355_v61  ;;  %v4627_v53 = vor.u32 %v5606_v51, %v4626_v48  ;;  %v4130_v27 = vld [vmem:[#allocation8 + $0x100] sm:$0xf]  ;;  %v5634_v51 = vld [vmem:[#allocation8 + $0x5cc] sm:$0xf0] }
  0x78   :  { %866 = vmatpush.bf16.msrb.mxu1 %v3959_v40  ;;  %v5526_v40 = vld [vmem:[#allocation8 + $0x26c] sm:$0xf0]  ;;  %v4866_v30 = vld [vmem:[#allocation8 + $0x6c0] sm:$0xf] }
  0x79   :  { %844 = vmatpush.bf16.msrb.mxu3 %v3763_v34  ;;  %2465 = vmatpush.bf16.msrb.mxu2 %v4099_v55  ;;  %v4018_v34 = vld [vmem:[#allocation8 + $0x20] sm:$0xf]  ;;  %v5522_v55 = vld [vmem:[#allocation8 + $0x24c] sm:$0xf0] }
  0x7a   :  { %3999 = vmatmul.msk.bf16.vlgmr.msra.gmra.mxu0 %vm641_vm1, %v6157_v49  ;;  %v4019_v37 = vor.u32 %v5454_v35, %v4018_v34  ;;  %v4291_v56 = vor.u32 %v5522_v55, %v4290_v54  ;;  %v4739_v54 = vor.u32 %v5634_v51, %v4738_v47  ;;  %v5614_v47 = vld [vmem:[#allocation8 + $0x52c] sm:$0xf0] }
  0x7c   :  { %3998 = vmatmul.msk.bf16.vlgmr.msra.gmra.mxu2 %vm641_vm1, %v6157_v49  ;;  %867 = vmatpush.bf16.msrb.mxu1 %v3927_v46  ;;  %v4003_v46 = vor.u32 %v5450_v44, %v4002_v43  ;;  %v5662_v43 = vld [vmem:[#allocation8 + $0x6ac] sm:$0xf0] }
  0x7d   :  { %845 = vmatpush.bf16.msrb.mxu3 %v3731_v39  ;;  %2466 = vmatpush.bf16.msrb.mxu2 %v4083_v0  ;;  %v4306_v39 = vld [vmem:[#allocation8 + $0x260] sm:$0xf]  ;;  %v4499_v0 = vor.u32 %v5574_v63, %v4498_v62  ;;  %v5630_v63 = vld [vmem:[#allocation8 + $0x5ac] sm:$0xf0] }
  0x7e   :  { %v4307_v42 = vor.u32 %v5526_v40, %v4306_v39  ;;  %v5562_v40 = vld [vmem:[#allocation8 + $0x38c] sm:$0xf0] }
  0x80   :  { %846 = vmatmul.bf16.vlgmr.msrb.gmra.mxu3 %v6164_v50  ;;  %868 = vmatpush.bf16.msrb.mxu1 %v3895_v60  ;;  %v5602_v60 = vld [vmem:[#allocation8 + $0x4cc] sm:$0xf0] }
  0x81   :  { %2467 = vmatpush.bf16.msrb.mxu2 %v4067_v6  ;;  %2478 = vmatpush.bf16.msra.mxu3 %v4243_v23  ;;  %v4611_v61 = vor.u32 %v5602_v60, %v4610_v59  ;;  %v4163_v6 = vor.u32 %v5490_v5, %v4162_v4  ;;  %v4530_v59 = vld [vmem:[#allocation8 + $0x420] sm:$0xf]  ;;  %v5582_v60 = vld [vmem:[#allocation8 + $0x42c] sm:$0xf0] }
  0x82   :  { %v4531_v62 = vor.u32 %v5582_v60, %v4530_v59  ;;  %v4818_v4 = vld [vmem:[#allocation8 + $0x660] sm:$0xf]  ;;  %v5654_v5 = vld [vmem:[#allocation8 + $0x66c] sm:$0xf0] }
  0x83   :  { %v5610_v59 = vld [vmem:[#allocation8 + $0x50c] sm:$0xf0] }
  0x84   :  { %869 = vmatpush.bf16.msrb.mxu1 %v3863_v3  ;;  %v4275_v3 = vor.u32 %v5518_v2, %v4274_v1  ;;  %v5554_v1 = vld [vmem:[#allocation8 + $0x34c] sm:$0xf0] }
  0x85   :  { %2468 = vmatpush.bf16.msrb.mxu2 %v4051_v20  ;;  %2479 = vmatpush.bf16.msra.mxu3 %v4227_v31  ;;  %v5670_v20 = vld [vmem:[#allocation8 + $0x6ec] sm:$0xf0] }
  0x87   :  { %3997 = vmatmul.msk.bf16.vlgmr.msra.gmra.mxu1 %vm641_vm1, %v6157_v49  ;;  %v5534_v49 = vld [vmem:[#allocation8 + $0x2ac] sm:$0xf0] }
  0x88   :  { %870 = vmatpush.bf16.msrb.mxu1 %v3831_v7  ;;  %v4339_v24 = vor.u32 %v5534_v49, %v4338_v22  ;;  %v4594_v7 = vld [vmem:[#allocation8 + $0x4a0] sm:$0xf]  ;;  %v5594_v22 = vld [vmem:[#allocation8 + $0x48c] sm:$0xf0]  ;;  %v4883_v49 = vor.u32 %v5670_v20, %v4882_v18 }
  0x89   :  { %2469 = vmatpush.bf16.msrb.mxu2 %v4035_v28  ;;  %2480 = vmatpush.bf16.msra.mxu3 %v4211_v41  ;;  %v4595_v9 = vor.u32 %v5598_v8, %v4594_v7  ;;  %v4579_v23 = vor.u32 %v5594_v22, %v4578_v21  ;;  %v5482_v28 = vld [vmem:[#allocation8 + $0x10c] sm:$0xf0]  ;;  %v4451_v41 = vor.u32 %v5562_v40, %v4450_v38  ;;  %v4514_v8 = vld [vmem:[#allocation8 + $0x400] sm:$0xf] }
  0x8a   :  { %2494 = vmatpush.bf16.msrb.mxu0 %v4339_v24  ;;  %v4466_v24 = vld [vmem:[#allocation8 + $0x3a0] sm:$0xf]  ;;  %v4131_v31 = vor.u32 %v5482_v28, %v4130_v27  ;;  %v4819_v7 = vor.u32 %v5654_v5, %v4818_v4  ;;  %v5622_v22 = vld [vmem:[#allocation8 + $0x56c] sm:$0xf0]  ;;  %v5476_v4 = vld [vmem:[#allocation8 + $0xe4] sm:$0xf] }
  0x8b   :  { %v4467_v26 = vor.u32 %v5566_v25, %v4466_v24  ;;  %v4802_v18 = vld [vmem:[#allocation8 + $0x640] sm:$0xf]  ;;  %v5546_v24 = vld [vmem:[#allocation8 + $0x30c] sm:$0xf0]  ;;  %v6201_v25 = vld [vmem:[#allocation7] sm:$0xff] }
  0x8c   :  { %871 = vmatpush.bf16.msrb.mxu1 %v3799_v10  ;;  %v4482_v10 = vld [vmem:[#allocation8 + $0x3c0] sm:$0xf]  ;;  %v5702_v28 = vld [vmem:[#allocation8 + $0x7ec] sm:$0xf0]  ;;  %v4116_v5 = vld [vmem:[#allocation8 + $0xf0] sm:$0xf0] }
  0x8d   :  { %2470 = vmatpush.bf16.msrb.mxu2 %v4019_v37  ;;  %2481 = vmatpush.bf16.msra.mxu3 %v4195_v52  ;;  %v4483_v12 = vor.u32 %v5570_v11, %v4482_v10  ;;  %v5638_v37 = vld [vmem:[#allocation8 + $0x5ec] sm:$0xf0]  ;;  %v4434_v52 = vld [vmem:[#allocation8 + $0x360] sm:$0xf] }
  0x8e   :  { %v4755_v39 = vor.u32 %v5638_v37, %v4754_v36  ;;  %v4706_v10 = vld [vmem:[#allocation8 + $0x580] sm:$0xf]  ;;  %v245_v36 = vperm.slane %v6201_v25, 0  ;;  %v5698_v40 = vld [vmem:[#allocation8 + $0x7cc] sm:$0xf0] }
  0x8f   :  { %v4690_v21 = vld [vmem:[#allocation8 + $0x560] sm:$0xf] }
  0x90   :  { %872 = vmatpush.bf16.msrb.mxu1 %v3767_v13  ;;  %v4258_v13 = vld [vmem:[#allocation8 + $0x200] sm:$0xf] }
  0x91   :  { %2471 = vmatpush.bf16.msrb.mxu2 %v4003_v46  ;;  %2482 = vmatpush.bf16.msra.mxu3 %v4179_v58  ;;  %v4259_v15 = vor.u32 %v5514_v14, %v4258_v13  ;;  %v5586_v46 = vld [vmem:[#allocation8 + $0x44c] sm:$0xf0]  ;;  %v4835_v58 = vor.u32 %v5658_v57, %v4834_v29  ;;  %v4402_v13 = vld [vmem:[#allocation8 + $0x320] sm:$0xf]  ;;  %v246_v29 = vperm.slane %v6201_v25, 1 }
  0x92   :  { %v4547_v48 = vor.u32 %v5586_v46, %v4546_v45  ;;  %v5550_v14 = vld [vmem:[#allocation8 + $0x32c] sm:$0xf0]  ;;  %v5010_v27 = vld [vmem:[#allocation8 + $0x7e0] sm:$0xf] }
  0x93   :  { %v4658_v46 = vld [vmem:[#allocation8 + $0x520] sm:$0xf] }
  0x94   :  { %873 = vmatpush.bf16.msrb.mxu1 %v3735_v16  ;;  %v4146_v16 = vld [vmem:[#allocation8 + $0x120] sm:$0xf]  ;;  %v4659_v51 = vor.u32 %v5614_v47, %v4658_v46 }
  0x95   :  { %2520 = vmatpush.bf16.msra.mxu2 %v4627_v53  ;;  %2483 = vmatpush.bf16.msra.mxu3 %v4163_v6  ;;  %v4147_v19 = vor.u32 %v5486_v17, %v4146_v16  ;;  %v5558_v53 = vld [vmem:[#allocation8 + $0x36c] sm:$0xf0]  ;;  %v4403_v16 = vor.u32 %v5550_v14, %v4402_v13 }
  0x96   :  { %v4435_v55 = vor.u32 %v5558_v53, %v4434_v52  ;;  %v4978_v52 = vld [vmem:[#allocation8 + $0x7a0] sm:$0xf]  ;;  %v5694_v53 = vld [vmem:[#allocation8 + $0x7ac] sm:$0xf0] }
  0x97   :  { %874 = vmatmul.bf16.vlgmr.msrb.gmra.mxu1 %v6164_v50  ;;  %v4323_v50 = vor.u32 %v5530_v33, %v4322_v32  ;;  %v5666_v32 = vld [vmem:[#allocation8 + $0x6cc] sm:$0xf0]  ;;  %v4562_v33 = vld [vmem:[#allocation8 + $0x460] sm:$0xf] }
  0x98   :  { %2506 = vmatpush.bf16.msra.mxu1 %v4499_v0  ;;  %v4867_v34 = vor.u32 %v5666_v32, %v4866_v30  ;;  %v4418_v0 = vld [vmem:[#allocation8 + $0x340] sm:$0xf]  ;;  %v5011_v30 = vor.u32 %v5702_v28, %v5010_v27  ;;  %v5646_v32 = vld [vmem:[#allocation8 + $0x62c] sm:$0xf0]  ;;  %v4244_v27 = vld [vmem:[#allocation8 + $0x1f0] sm:$0xf0] }
  0x99   :  { %2495 = vmatpush.bf16.msrb.mxu0 %v4323_v50  ;;  %2521 = vmatpush.bf16.msra.mxu2 %v4611_v61  ;;  %v5590_v50 = vld [vmem:[#allocation8 + $0x46c] sm:$0xf0]  ;;  %v4722_v61 = vld [vmem:[#allocation8 + $0x5a0] sm:$0xf] }
  0x9a   :  { %2484 = vmatpush.bf16.msra.mxu3 %v4147_v19  ;;  %v4563_v35 = vor.u32 %v5590_v50, %v4562_v33  ;;  %v4723_v2 = vor.u32 %v5630_v63, %v4722_v61  ;;  %v5650_v19 = vld [vmem:[#allocation8 + $0x64c] sm:$0xf0]  ;;  %v247_v63 = vperm.slane %v6201_v25, 2  ;;  %v4930_v28 = vld [vmem:[#allocation8 + $0x740] sm:$0xf] }
  0x9b   :  { %v4803_v20 = vor.u32 %v5650_v19, %v4802_v18  ;;  %v4100_v18 = vld [vmem:[#allocation8 + $0xd0] sm:$0xf0]  ;;  %v5686_v19 = vld [vmem:[#allocation8 + $0x76c] sm:$0xf0] }
  0x9c   :  { %2507 = vmatpush.bf16.msra.mxu1 %v4483_v12  ;;  %v5626_v12 = vld [vmem:[#allocation8 + $0x58c] sm:$0xf0] }
  0x9d   :  { %2496 = vmatpush.bf16.msrb.mxu0 %v4307_v42  ;;  %2522 = vmatpush.bf16.msra.mxu2 %v4595_v9  ;;  %v4850_v42 = vld [vmem:[#allocation8 + $0x6a0] sm:$0xf]  ;;  %v5578_v9 = vld [vmem:[#allocation8 + $0x40c] sm:$0xf0] }
  0x9e   :  { %2485 = vmatpush.bf16.msra.mxu3 %v4131_v31  ;;  %v4851_v44 = vor.u32 %v5662_v43, %v4850_v42  ;;  %v4515_v11 = vor.u32 %v5578_v9, %v4514_v8  ;;  %v4786_v31 = vld [vmem:[#allocation8 + $0x620] sm:$0xf] }
  0x9f   :  { %v4787_v50 = vor.u32 %v5646_v32, %v4786_v31  ;;  %v4770_v43 = vld [vmem:[#allocation8 + $0x600] sm:$0xf] }
  0xa0   :  { %2508 = vmatpush.bf16.msra.mxu1 %v4467_v26 }
  0xa1   :  { %2497 = vmatpush.bf16.msrb.mxu0 %v4291_v56  ;;  %2523 = vmatpush.bf16.msra.mxu2 %v4579_v23  ;;  %v4386_v23 = vld [vmem:[#allocation8 + $0x300] sm:$0xf] }
  0xa2   :  { %2534 = vmatpush.bf16.msrb.mxu3 %v4755_v39  ;;  %v4387_v26 = vor.u32 %v5546_v24, %v4386_v23  ;;  %v4994_v39 = vld [vmem:[#allocation8 + $0x7c0] sm:$0xf] }
  0xa3   :  { %v4995_v42 = vor.u32 %v5698_v40, %v4994_v39  ;;  %v4372_v39 = vld [vmem:[#allocation8 + $0x2f0] sm:$0xf0] }
  0xa4   :  { %2509 = vmatpush.bf16.msra.mxu1 %v4451_v41 }
  0xa5   :  { %2498 = vmatpush.bf16.msrb.mxu0 %v4275_v3  ;;  %2524 = vmatpush.bf16.msra.mxu2 %v4563_v35  ;;  %v4419_v3 = vor.u32 %v5554_v1, %v4418_v0  ;;  %v5618_v35 = vld [vmem:[#allocation8 + $0x54c] sm:$0xf0]  ;;  %v4962_v1 = vld [vmem:[#allocation8 + $0x780] sm:$0xf] }
  0xa6   :  { %2535 = vmatpush.bf16.msrb.mxu3 %v4739_v54 }
  0xa8   :  { %2510 = vmatpush.bf16.msra.mxu1 %v4435_v55  ;;  %v4979_v55 = vor.u32 %v5694_v53, %v4978_v52 }
  0xa9   :  { %2499 = vmatpush.bf16.msrb.mxu0 %v4259_v15  ;;  %2525 = vmatpush.bf16.msra.mxu2 %v4547_v48  ;;  %v4707_v15 = vor.u32 %v5626_v12, %v4706_v10  ;;  %v4119_v12 = vor.u32 %v5476_v4, %v4116_v5 }
  0xaa   :  { %2536 = vmatpush.bf16.msrb.mxu3 %v4723_v2 }
  0xac   :  { %2511 = vmatpush.bf16.msra.mxu1 %v4419_v3 }
  0xad   :  { %2548 = vmatpush.bf16.msra.mxu0 %v4883_v49  ;;  %2526 = vmatpush.bf16.msra.mxu2 %v4531_v62  ;;  %v4691_v49 = vor.u32 %v5622_v22, %v4690_v21 }
  0xae   :  { %2537 = vmatpush.bf16.msrb.mxu3 %v4707_v15 }
  0xb0   :  { %2512 = vmatpush.bf16.msra.mxu1 %v4403_v16  ;;  %v5472_v16 = vld [vmem:[#allocation8 + $0xc4] sm:$0xf] }
  0xb1   :  { %2549 = vmatpush.bf16.msra.mxu0 %v4867_v34  ;;  %2527 = vmatpush.bf16.msra.mxu2 %v4515_v11  ;;  %v4674_v34 = vld [vmem:[#allocation8 + $0x540] sm:$0xf] }
  0xb2   :  { %2538 = vmatpush.bf16.msrb.mxu3 %v4691_v49  ;;  %v4675_v37 = vor.u32 %v5618_v35, %v4674_v34  ;;  %v5508_v49 = vld [vmem:[#allocation8 + $0x1e4] sm:$0xf] }
  0xb3   :  { %v4247_v40 = vor.u32 %v5508_v49, %v4244_v27  ;;  %v4180_v27 = vld [vmem:[#allocation8 + $0x170] sm:$0xf0] }
  0xb4   :  { %v6197_v6 = vpop.f32.mrf.mxu1  ;;  %2513 = vmatpush.bf16.msra.mxu1 %v4387_v26  ;;  %v4103_v26 = vor.u32 %v5472_v16, %v4100_v18  ;;  %v4036_v16 = vld [vmem:[#allocation8 + $0x50] sm:$0xf0] }
  0xb5   :  { %2550 = vmatpush.bf16.msra.mxu0 %v4851_v44  ;;  %v5642_v44 = vld [vmem:[#allocation8 + $0x60c] sm:$0xf0] }
  0xb6   :  { %2539 = vmatpush.bf16.msrb.mxu3 %v4675_v37  ;;  %v4771_v45 = vor.u32 %v5642_v44, %v4770_v43  ;;  %v4228_v44 = vld [vmem:[#allocation8 + $0x1d0] sm:$0xf0] }
  0xb8   :  { %2562 = vmatpush.bf16.msrb.mxu1 %v5011_v30  ;;  %v5682_v30 = vld [vmem:[#allocation8 + $0x74c] sm:$0xf0] }
  0xb9   :  { %2551 = vmatpush.bf16.msra.mxu0 %v4835_v58  ;;  %v4642_v58 = vld [vmem:[#allocation8 + $0x500] sm:$0xf]  ;;  %v4931_v34 = vor.u32 %v5682_v30, %v4930_v28  ;;  %v4020_v30 = vld [vmem:[#allocation8 + $0x30] sm:$0xf0] }
  0xba   :  { %2540 = vmatpush.bf16.msrb.mxu3 %v4659_v51  ;;  %v4643_v62 = vor.u32 %v5610_v59, %v4642_v58  ;;  %v4068_v51 = vld [vmem:[#allocation8 + $0x90] sm:$0xf0] }
  0xbb   :  { %v6195_v56 = vpop.f32.mrf.mxu3 }
  0xbc   :  { %v695_v38 = vpop.f32.mrf.mxu1  ;;  %2563 = vmatpush.bf16.msrb.mxu1 %v4995_v42 }
  0xbd   :  { %2552 = vmatpush.bf16.msra.mxu0 %v4819_v7  ;;  %v5690_v7 = vld [vmem:[#allocation8 + $0x78c] sm:$0xf0] }
  0xbe   :  { %2541 = vmatpush.bf16.msrb.mxu3 %v4643_v62  ;;  %v4963_v9 = vor.u32 %v5690_v7, %v4962_v1  ;;  %v5500_v62 = vld [vmem:[#allocation8 + $0x1a4] sm:$0xf]  ;;  %v4898_v1 = vld [vmem:[#allocation8 + $0x700] sm:$0xf] }
  0xc0   :  { %2564 = vmatpush.bf16.msrb.mxu1 %v4979_v55  ;;  %v248_v55 = vperm.slane %v6201_v25, 3 }
  0xc1   :  { %2553 = vmatpush.bf16.msra.mxu0 %v4803_v20 }
  0xc3   :  { %v6199_v17 = vpop.f32.mrf.mxu3 }
  0xc4   :  { %2565 = vmatpush.bf16.msrb.mxu1 %v4963_v9  ;;  %v4340_v9 = vld [vmem:[#allocation8 + $0x2b0] sm:$0xf0] }
  0xc5   :  { %2554 = vmatpush.bf16.msra.mxu0 %v4787_v50  ;;  %v4084_v50 = vld [vmem:[#allocation8 + $0xb0] sm:$0xf0] }
  0xc7   :  { %v679_v33 = vpop.f32.mrf.mxu0 }
  0xc8   :  { %v680_v48 = vadd.f32 %v679_v33, %v245_v36  ;;  %v5468_v33 = vld [vmem:[#allocation8 + $0xa4] sm:$0xf] }
  0xc9   :  { %2555 = vmatpush.bf16.msra.mxu0 %v4771_v45  ;;  %v4087_v43 = vor.u32 %v5468_v33, %v4084_v50  ;;  %v4914_v45 = vld [vmem:[#allocation8 + $0x720] sm:$0xf] }
  0xca   :  { %v694_v60 = vadd.f32 %v6197_v6, %v680_v48  ;;  %v4946_v6 = vld [vmem:[#allocation8 + $0x760] sm:$0xf]  ;;  %v5464_v48 = vld [vmem:[#allocation8 + $0x84] sm:$0xf] }
  0xcb   :  { %v749_v41 = vpop.f32.mrf.mxu3  ;;  %v4947_v22 = vor.u32 %v5686_v19, %v4946_v6  ;;  %v4196_v6 = vld [vmem:[#allocation8 + $0x190] sm:$0xf0] }
  0xcc   :  { %v894_v10 = vmax.f32 %v694_v60, 0.0  ;;  %v4071_v60 = vor.u32 %v5464_v48, %v4068_v51  ;;  %v249_v48 = vperm.slane %v6201_v25, 4  ;;  %v5520_v51 = vld [vmem:[#allocation8 + $0x244] sm:$0xf] }
  0xcd   :  { %2566 = vmatpush.bf16.msrb.mxu1 %v4947_v22 }
  0xcf   :  { %v707_v54 = vpop.f32.mrf.mxu2  ;;  %v681_v57 = vpop.f32.mrf.mxu0 }
  0xd0   :  { %v682_v61 = vadd.f32 %v681_v57, %v245_v36  ;;  %v708_v8 = vadd.f32 %v707_v54, %v246_v29  ;;  %v4356_v57 = vld [vmem:[#allocation8 + $0x2d0] sm:$0xf0] }
  0xd1   :  { %2567 = vmatpush.bf16.msrb.mxu1 %v4931_v34 }
  0xd2   :  { %v696_v2 = vadd.f32 %v695_v38, %v682_v61  ;;  %v722_v20 = vadd.f32 %v6195_v56, %v708_v8  ;;  %v5540_v38 = vld [vmem:[#allocation8 + $0x2e4] sm:$0xf] }
  0xd3   :  { %v751_v3 = vpop.f32.mrf.mxu3  ;;  %v4375_v52 = vor.u32 %v5540_v38, %v4372_v39  ;;  %v5460_v61 = vld [vmem:[#allocation8 + $0x64] sm:$0xf] }
  0xd4   :  { %v735_v0 = vpop.f32.mrf.mxu1  ;;  %v902_v11 = vmax.f32 %v696_v2, 0.0  ;;  %v895_v56 = vmax.f32 %v722_v20, 0.0  ;;  %v5674_v2 = vld [vmem:[#allocation8 + $0x70c] sm:$0xf0]  ;;  %v5532_v8 = vld [vmem:[#allocation8 + $0x2a4] sm:$0xf] }
  0xd5   :  { %v736_v14 = vadd.f32 %v735_v0, %v247_v63  ;;  %v4052_v0 = vld [vmem:[#allocation8 + $0x70] sm:$0xf0]  ;;  %v4899_v4 = vor.u32 %v5674_v2, %v4898_v1  ;;  %v4343_v18 = vor.u32 %v5532_v8, %v4340_v9  ;;  %v5528_v20 = vld [vmem:[#allocation8 + $0x284] sm:$0xf] }
  0xd6   :  { %v6207_v13 = vpack.c.bf16 %v902_v11, %v894_v10  ;;  %v4055_v11 = vor.u32 %v5460_v61, %v4052_v0  ;;  %v5448_v39 = vld [vmem:[#allocation8 + $0x4] sm:$0xf]  ;;  %v4468_v61 = vld [vmem:[#allocation8 + $0x3b0] sm:$0xf0] }
  0xd7   :  { %v709_v15 = vpop.f32.mrf.mxu2  ;;  %v750_v31 = vadd.f32 %v749_v41, %v736_v14  ;;  %v5678_v41 = vld [vmem:[#allocation8 + $0x72c] sm:$0xf0]  ;;  %v5516_v1 = vld [vmem:[#allocation8 + $0x224] sm:$0xf]  ;;  %v4276_v2 = vld [vmem:[#allocation8 + $0x230] sm:$0xf0] }
  0xd8   :  { %v710_v21 = vadd.f32 %v709_v15, %v246_v29  ;;  %2472 = vmatmul.bf16.vlgmr.msrb.gmra.mxu2 %v6207_v13  ;;  %v4915_v53 = vor.u32 %v5678_v41, %v4914_v45  ;;  %v5536_v29 = vld [vmem:[#allocation8 + $0x2c4] sm:$0xf]  ;;  %v4004_v45 = vld [vmem:[#allocation8 + $0x10] sm:$0xf0] }
  0xd9   :  { %2576 = vmatpush.bf16.msrb.mxu2 %v4119_v12  ;;  %v896_v46 = vmax.f32 %v750_v31, 0.0  ;;  %v5496_v12 = vld [vmem:[#allocation8 + $0x184] sm:$0xf] }
  0xda   :  { %v724_v23 = vadd.f32 %v6199_v17, %v710_v21  ;;  %v5504_v17 = vld [vmem:[#allocation8 + $0x1c4] sm:$0xf]  ;;  %2568 = vmatpush.bf16.msrb.mxu1 %v4915_v53  ;;  %v4324_v21 = vld [vmem:[#allocation8 + $0x290] sm:$0xf0]  ;;  %v4199_v22 = vor.u32 %v5496_v12, %v4196_v6  ;;  %v251_v6 = vperm.slane %v6201_v25, 6 }
  0xdb   :  { %v4231_v58 = vor.u32 %v5504_v17, %v4228_v44  ;;  %v5456_v15 = vld [vmem:[#allocation8 + $0x44] sm:$0xf]  ;;  %v4327_v50 = vor.u32 %v5528_v20, %v4324_v21 }
  0xdc   :  { %v737_v24 = vpop.f32.mrf.mxu1  ;;  %v903_v35 = vmax.f32 %v724_v23, 0.0  ;;  %v4039_v23 = vor.u32 %v5456_v15, %v4036_v16  ;;  %v5572_v31 = vld [vmem:[#allocation8 + $0x3e4] sm:$0xf]  ;;  %v4260_v15 = vld [vmem:[#allocation8 + $0x210] sm:$0xf0] }
  0xdd   :  { %v738_v32 = vadd.f32 %v737_v24, %v247_v63  ;;  %2577 = vmatpush.bf16.msrb.mxu2 %v4103_v26  ;;  %v4212_v63 = vld [vmem:[#allocation8 + $0x1b0] sm:$0xf0]  ;;  %v5452_v24 = vld [vmem:[#allocation8 + $0x24] sm:$0xf] }
  0xde   :  { %v6212_v42 = vpack.c.bf16 %v903_v35, %v895_v56  ;;  %v4215_v10 = vor.u32 %v5500_v62, %v4212_v63  ;;  %2569 = vmatpush.bf16.msrb.mxu1 %v4899_v4  ;;  %v5492_v26 = vld [vmem:[#allocation8 + $0x164] sm:$0xf]  ;;  %v4023_v38 = vor.u32 %v5452_v24, %v4020_v30  ;;  %v4436_v24 = vld [vmem:[#allocation8 + $0x370] sm:$0xf0] }
  0xdf   :  { %v752_v36 = vadd.f32 %v751_v3, %v738_v32  ;;  %v4359_v3 = vor.u32 %v5536_v29, %v4356_v57  ;;  %v4500_v32 = vld [vmem:[#allocation8 + $0x3f0] sm:$0xf0]  ;;  %v5524_v35 = vld [vmem:[#allocation8 + $0x264] sm:$0xf]  ;;  %v4007_v29 = vor.u32 %v5448_v39, %v4004_v45 }
  0xe0   :  { %2486 = vmatmul.bf16.vlgmr.msra.gmra.mxu3 %v6212_v42  ;;  %v5488_v17 = vld [vmem:[#allocation8 + $0x144] sm:$0xf] }
  0xe1   :  { %v904_v47 = vmax.f32 %v752_v36, 0.0  ;;  %2590 = vmatpush.bf16.msra.mxu3 %v4247_v40  ;;  %2578 = vmatpush.bf16.msrb.mxu2 %v4087_v43  ;;  %v4308_v36 = vld [vmem:[#allocation8 + $0x270] sm:$0xf0]  ;;  %v4503_v40 = vor.u32 %v5572_v31, %v4500_v32  ;;  %v5568_v41 = vld [vmem:[#allocation8 + $0x3c4] sm:$0xf] }
  0xe2   :  { %v4164_v43 = vld [vmem:[#allocation8 + $0x150] sm:$0xf0]  ;;  %v5560_v9 = vld [vmem:[#allocation8 + $0x384] sm:$0xf] }
  0xe3   :  { %v763_v37 = vpop.f32.mrf.mxu3  ;;  %v6215_v54 = vpack.c.bf16 %v904_v47, %v896_v46  ;;  %v4484_v46 = vld [vmem:[#allocation8 + $0x3d0] sm:$0xf0]  ;;  %v4311_v47 = vor.u32 %v5524_v35, %v4308_v36  ;;  %v4167_v53 = vor.u32 %v5488_v17, %v4164_v43  ;;  %v5604_v20 = vld [vmem:[#allocation8 + $0x4e4] sm:$0xf] }
  0xe4   :  { %v777_v59 = vpop.f32.mrf.mxu1  ;;  %v764_v5 = vadd.f32 %v763_v37, %v248_v55  ;;  %v4183_v37 = vor.u32 %v5492_v26, %v4180_v27  ;;  %v4487_v57 = vor.u32 %v5568_v41, %v4484_v46  ;;  %v4612_v35 = vld [vmem:[#allocation8 + $0x4d0] sm:$0xf0]  ;;  %v5552_v36 = vld [vmem:[#allocation8 + $0x344] sm:$0xf] }
  0xe5   :  { %2500 = vmatmul.bf16.vlgmr.msrb.gmra.mxu0 %v6215_v54  ;;  %2591 = vmatpush.bf16.msra.mxu3 %v4231_v58  ;;  %v5484_v58 = vld [vmem:[#allocation8 + $0x124] sm:$0xf] }
  0xe6   :  { %2604 = vmatpush.bf16.msrb.mxu0 %v4375_v52  ;;  %2579 = vmatpush.bf16.msrb.mxu2 %v4071_v60  ;;  %v778_v19 = vadd.f32 %v777_v59, %v764_v5  ;;  %v4292_v52 = vld [vmem:[#allocation8 + $0x250] sm:$0xf0]  ;;  %v5564_v60 = vld [vmem:[#allocation8 + $0x3a4] sm:$0xf] }
  0xe7   :  { %v4148_v59 = vld [vmem:[#allocation8 + $0x130] sm:$0xf0]  ;;  %v4295_v63 = vor.u32 %v5520_v51, %v4292_v52  ;;  %v4471_v4 = vor.u32 %v5564_v60, %v4468_v61  ;;  %v5480_v5 = vld [vmem:[#allocation8 + $0x104] sm:$0xf]  ;;  %v819_v26 = vpop.f32.mrf.mxu0 }
  0xe8   :  { %v897_v34 = vmax.f32 %v778_v19, 0.0  ;;  %v5596_v45 = vld [vmem:[#allocation8 + $0x4a4] sm:$0xf]  ;;  %v4404_v51 = vld [vmem:[#allocation8 + $0x330] sm:$0xf0] }
  0xe9   :  { %2592 = vmatpush.bf16.msra.mxu3 %v4215_v10  ;;  %v4452_v10 = vld [vmem:[#allocation8 + $0x390] sm:$0xf0]  ;;  %v5592_v61 = vld [vmem:[#allocation8 + $0x484] sm:$0xf] }
  0xea   :  { %2605 = vmatpush.bf16.msrb.mxu0 %v4359_v3  ;;  %2580 = vmatpush.bf16.msrb.mxu2 %v4055_v11  ;;  %v4151_v3 = vor.u32 %v5484_v58, %v4148_v59  ;;  %v4279_v11 = vor.u32 %v5516_v1, %v4276_v2  ;;  %v4455_v21 = vor.u32 %v5560_v9, %v4452_v10  ;;  %v4884_v58 = vld [vmem:[#allocation8 + $0x6f0] sm:$0xf0]  ;;  %v5544_v1 = vld [vmem:[#allocation8 + $0x304] sm:$0xf] }
  0xeb   :  { %v765_v7 = vpop.f32.mrf.mxu3  ;;  %v4388_v2 = vld [vmem:[#allocation8 + $0x310] sm:$0xf0] }
  0xec   :  { %v766_v14 = vadd.f32 %v765_v7, %v248_v55  ;;  %v779_v49 = vpop.f32.mrf.mxu1  ;;  %v4132_v7 = vld [vmem:[#allocation8 + $0x110] sm:$0xf0] }
  0xed   :  { %2593 = vmatpush.bf16.msra.mxu3 %v4199_v22  ;;  %v4135_v16 = vor.u32 %v5480_v5, %v4132_v7  ;;  %v4868_v9 = vld [vmem:[#allocation8 + $0x6d0] sm:$0xf0] }
  0xee   :  { %v780_v28 = vadd.f32 %v779_v49, %v766_v14  ;;  %2606 = vmatpush.bf16.msrb.mxu0 %v4343_v18  ;;  %2581 = vmatpush.bf16.msrb.mxu2 %v4039_v23  ;;  %v5512_v14 = vld [vmem:[#allocation8 + $0x204] sm:$0xf]  ;;  %v4628_v49 = vld [vmem:[#allocation8 + $0x4f0] sm:$0xf0] }
  0xef   :  { %v791_v33 = vpop.f32.mrf.mxu2  ;;  %v5556_v23 = vld [vmem:[#allocation8 + $0x364] sm:$0xf]  ;;  %v821_v59 = vpop.f32.mrf.mxu0 }
  0xf0   :  { %v905_v56 = vmax.f32 %v780_v28, 0.0  ;;  %v792_v0 = vadd.f32 %v791_v33, %v249_v48  ;;  %v4263_v28 = vor.u32 %v5512_v14, %v4260_v15  ;;  %v4631_v33 = vor.u32 %v5604_v20, %v4628_v49  ;;  %v4564_v15 = vld [vmem:[#allocation8 + $0x470] sm:$0xf0] }
  0xf1   :  { %2594 = vmatpush.bf16.msra.mxu3 %v4183_v37  ;;  %v4420_v37 = vld [vmem:[#allocation8 + $0x350] sm:$0xf0] }
  0xf2   :  { %v6219_v44 = vpack.c.bf16 %v905_v56, %v897_v34  ;;  %2607 = vmatpush.bf16.msrb.mxu0 %v4327_v50  ;;  %2582 = vmatpush.bf16.msrb.mxu2 %v4023_v38  ;;  %v5600_v50 = vld [vmem:[#allocation8 + $0x4c4] sm:$0xf]  ;;  %v4439_v34 = vor.u32 %v5556_v23, %v4436_v24  ;;  %v250_v38 = vperm.slane %v6201_v25, 5  ;;  %v4423_v41 = vor.u32 %v5552_v36, %v4420_v37  ;;  %v4852_v49 = vld [vmem:[#allocation8 + $0x6b0] sm:$0xf0] }
  0xf3   :  { %v4615_v43 = vor.u32 %v5600_v50, %v4612_v35  ;;  %v4836_v50 = vld [vmem:[#allocation8 + $0x690] sm:$0xf0]  ;;  %v252_v35 = vperm.slane %v6201_v25, 7 }
  0xf4   :  { %2514 = vmatmul.bf16.vlgmr.msra.gmra.mxu1 %v6219_v44  ;;  %v805_v55 = vpop.f32.mrf.mxu1  ;;  %v822_v5 = vadd.f32 %v821_v59, %v250_v38  ;;  %v4708_v25 = vld [vmem:[#allocation8 + $0x590] sm:$0xf0]  ;;  %v5648_v59 = vld [vmem:[#allocation8 + $0x644] sm:$0xf] }
  0xf5   :  { %2618 = vmatpush.bf16.msra.mxu1 %v4503_v40  ;;  %2595 = vmatpush.bf16.msra.mxu3 %v4167_v53  ;;  %v806_v12 = vadd.f32 %v805_v55, %v792_v0  ;;  %v820_v53 = vadd.f32 %v819_v26, %v250_v38  ;;  %v5584_v26 = vld [vmem:[#allocation8 + $0x444] sm:$0xf] }
  0xf6   :  { %2608 = vmatpush.bf16.msrb.mxu0 %v4311_v47  ;;  %2583 = vmatpush.bf16.msrb.mxu2 %v4007_v29  ;;  %v4596_v47 = vld [vmem:[#allocation8 + $0x4b0] sm:$0xf0] }
  0xf7   :  { %v793_v62 = vpop.f32.mrf.mxu2  ;;  %v898_v30 = vmax.f32 %v806_v12, 0.0  ;;  %v4599_v60 = vor.u32 %v5596_v45, %v4596_v47  ;;  %v5588_v12 = vld [vmem:[#allocation8 + $0x464] sm:$0xf] }
  0xf8   :  { %v794_v8 = vadd.f32 %v793_v62, %v249_v48  ;;  %v5548_v48 = vld [vmem:[#allocation8 + $0x324] sm:$0xf]  ;;  %v4580_v62 = vld [vmem:[#allocation8 + $0x490] sm:$0xf0]  ;;  %v4567_v23 = vor.u32 %v5588_v12, %v4564_v15 }
  0xf9   :  { %2619 = vmatpush.bf16.msra.mxu1 %v4487_v57  ;;  %2596 = vmatpush.bf16.msra.mxu3 %v4151_v3  ;;  %v5668_v57 = vld [vmem:[#allocation8 + $0x6e4] sm:$0xf]  ;;  %v4788_v15 = vld [vmem:[#allocation8 + $0x630] sm:$0xf0] }
  0xfa   :  { %2609 = vmatpush.bf16.msrb.mxu0 %v4295_v63  ;;  %v4407_v63 = vor.u32 %v5548_v48, %v4404_v51  ;;  %v4887_v3 = vor.u32 %v5668_v57, %v4884_v58  ;;  %v5576_v51 = vld [vmem:[#allocation8 + $0x404] sm:$0xf]  ;;  %v4122_v57 = vld [vmem:[#allocation8 + $0xe8] sm:$0xf]  ;;  %v5479_v58 = vld [vmem:[#allocation8 + $0xf4] sm:$0xf0] }
  0xfc   :  { %v807_v18 = vpop.f32.mrf.mxu1 }
  0xfd   :  { %2620 = vmatpush.bf16.msra.mxu1 %v4471_v4  ;;  %v808_v22 = vadd.f32 %v807_v18, %v794_v8  ;;  %2597 = vmatpush.bf16.msra.mxu3 %v4135_v16  ;;  %v5664_v8 = vld [vmem:[#allocation8 + $0x6c4] sm:$0xf]  ;;  %v4756_v18 = vld [vmem:[#allocation8 + $0x5f0] sm:$0xf0] }
  0xfe   :  { %2610 = vmatpush.bf16.msrb.mxu0 %v4279_v11  ;;  %v4583_v11 = vor.u32 %v5592_v61, %v4580_v62  ;;  %v5636_v16 = vld [vmem:[#allocation8 + $0x5e4] sm:$0xf] }
  0xff   :  { %v861_v27 = vpop.f32.mrf.mxu2  ;;  %v906_v31 = vmax.f32 %v808_v22, 0.0  ;;  %v5660_v22 = vld [vmem:[#allocation8 + $0x6a4] sm:$0xf]  ;;  %v4759_v24 = vor.u32 %v5636_v16, %v4756_v18 }
 0x101   :  { %2621 = vmatpush.bf16.msra.mxu1 %v4455_v21  ;;  %v6224_v56 = vpack.c.bf16 %v906_v31, %v898_v30  ;;  %v5632_v30 = vld [vmem:[#allocation8 + $0x5c4] sm:$0xf]  ;;  %v4740_v31 = vld [vmem:[#allocation8 + $0x5d0] sm:$0xf0] }
 0x102   :  { %2611 = vmatpush.bf16.msrb.mxu0 %v4263_v28  ;;  %v4548_v28 = vld [vmem:[#allocation8 + $0x450] sm:$0xf0]  ;;  %v4743_v38 = vor.u32 %v5632_v30, %v4740_v31 }
 0x103   :  { %v847_v19 = vpop.f32.mrf.mxu3  ;;  %2528 = vmatmul.bf16.vlgmr.msra.gmra.mxu2 %v6224_v56  ;;  %v4551_v37 = vor.u32 %v5584_v26, %v4548_v28  ;;  %v5471_v26 = vld [vmem:[#allocation8 + $0xb4] sm:$0xf0]  ;;  %v5696_v28 = vld [vmem:[#allocation8 + $0x7c4] sm:$0xf]  ;;  %v4996_v31 = vld [vmem:[#allocation8 + $0x7d0] sm:$0xf0] }
 0x104   :  { %v848_v32 = vadd.f32 %v847_v19, %v251_v6  ;;  %2632 = vmatpush.bf16.msra.mxu2 %v4631_v33  ;;  %v833_v40 = vpop.f32.mrf.mxu1  ;;  %v4871_v19 = vor.u32 %v5664_v8, %v4868_v9  ;;  %v5656_v33 = vld [vmem:[#allocation8 + $0x684] sm:$0xf]  ;;  %v4106_v9 = vld [vmem:[#allocation8 + $0xc8] sm:$0xf] }
 0x105   :  { %2622 = vmatpush.bf16.msra.mxu1 %v4439_v34  ;;  %v834_v4 = vadd.f32 %v833_v40, %v820_v53  ;;  %v889_v34 = vpop.f32.mrf.mxu0  ;;  %v4532_v40 = vld [vmem:[#allocation8 + $0x430] sm:$0xf0]  ;;  %v4839_v45 = vor.u32 %v5656_v33, %v4836_v50 }
 0x106   :  { %v862_v39 = vadd.f32 %v861_v27, %v848_v32  ;;  %v4855_v32 = vor.u32 %v5660_v22, %v4852_v49  ;;  %v4516_v53 = vld [vmem:[#allocation8 + $0x410] sm:$0xf0] }
 0x107   :  { %v863_v52 = vpop.f32.mrf.mxu2  ;;  %v899_v20 = vmax.f32 %v834_v4, 0.0  ;;  %v4519_v62 = vor.u32 %v5576_v51, %v4516_v53  ;;  %v4692_v4 = vld [vmem:[#allocation8 + $0x570] sm:$0xf0]  ;;  %v5539_v51 = vld [vmem:[#allocation8 + $0x2d4] sm:$0xf0] }
 0x108   :  { %v900_v55 = vmax.f32 %v862_v39, 0.0  ;;  %2633 = vmatpush.bf16.msra.mxu2 %v4615_v43  ;;  %v5580_v39 = vld [vmem:[#allocation8 + $0x424] sm:$0xf]  ;;  %v4724_v43 = vld [vmem:[#allocation8 + $0x5b0] sm:$0xf0] }
 0x109   :  { %2623 = vmatpush.bf16.msra.mxu1 %v4423_v41  ;;  %v5652_v41 = vld [vmem:[#allocation8 + $0x664] sm:$0xf]  ;;  %v4535_v47 = vor.u32 %v5580_v39, %v4532_v40  ;;  %v4676_v22 = vld [vmem:[#allocation8 + $0x550] sm:$0xf0]  ;;  %v4999_v39 = vor.u32 %v5696_v28, %v4996_v31  ;;  %v4314_v28 = vld [vmem:[#allocation8 + $0x268] sm:$0xf] }
 0x10a   :  { %v4772_v33 = vld [vmem:[#allocation8 + $0x610] sm:$0xf0]  ;;  %v5608_v53 = vld [vmem:[#allocation8 + $0x504] sm:$0xf]  ;;  %v5527_v31 = vld [vmem:[#allocation8 + $0x274] sm:$0xf0] }
 0x10b   :  { %v849_v17 = vpop.f32.mrf.mxu3 }
 0x10c   :  { %v850_v46 = vadd.f32 %v849_v17, %v251_v6  ;;  %2634 = vmatpush.bf16.msra.mxu2 %v4599_v60  ;;  %v835_v10 = vpop.f32.mrf.mxu1  ;;  %v4391_v6 = vor.u32 %v5544_v1, %v4388_v2  ;;  %v5628_v17 = vld [vmem:[#allocation8 + $0x5a4] sm:$0xf]  ;;  %v4804_v60 = vld [vmem:[#allocation8 + $0x650] sm:$0xf0]  ;;  %v4123_v2 = vor.u32 %v5479_v58, %v4122_v57  ;;  %v5463_v57 = vld [vmem:[#allocation8 + $0x74] sm:$0xf0] }
 0x10d   :  { %2624 = vmatpush.bf16.msra.mxu1 %v4407_v63  ;;  %v836_v14 = vadd.f32 %v835_v10, %v822_v5  ;;  %v4727_v48 = vor.u32 %v5628_v17, %v4724_v43  ;;  %v891_v5 = vpop.f32.mrf.mxu0  ;;  %v4807_v8 = vor.u32 %v5648_v59, %v4804_v60  ;;  %v5475_v10 = vld [vmem:[#allocation8 + $0xd4] sm:$0xf0]  ;;  %v4074_v17 = vld [vmem:[#allocation8 + $0x88] sm:$0xf] }
 0x10e   :  { %v864_v29 = vadd.f32 %v863_v52, %v850_v46  ;;  %v4820_v46 = vld [vmem:[#allocation8 + $0x670] sm:$0xf0]  ;;  %v5467_v43 = vld [vmem:[#allocation8 + $0x94] sm:$0xf0]  ;;  %v4250_v58 = vld [vmem:[#allocation8 + $0x1e8] sm:$0xf] }
 0x10f   :  { %v907_v21 = vmax.f32 %v836_v14, 0.0  ;;  %v5644_v14 = vld [vmem:[#allocation8 + $0x624] sm:$0xf]  ;;  %v5511_v59 = vld [vmem:[#allocation8 + $0x1f4] sm:$0xf0] }
 0x110   :  { %v908_v0 = vmax.f32 %v864_v29, 0.0  ;;  %2635 = vmatpush.bf16.msra.mxu2 %v4583_v11  ;;  %v4823_v29 = vor.u32 %v5652_v41, %v4820_v46  ;;  %v5700_v11 = vld [vmem:[#allocation8 + $0x7e4] sm:$0xf]  ;;  %v4980_v46 = vld [vmem:[#allocation8 + $0x7b0] sm:$0xf0] }
 0x111   :  { %2625 = vmatpush.bf16.msra.mxu1 %v4391_v6  ;;  %v6231_v27 = vpack.c.bf16 %v907_v21, %v899_v20  ;;  %v5012_v6 = vld [vmem:[#allocation8 + $0x7f0] sm:$0xf0]  ;;  %v4107_v20 = vor.u32 %v5475_v10, %v4106_v9  ;;  %v5616_v21 = vld [vmem:[#allocation8 + $0x544] sm:$0xf]  ;;  %v4234_v9 = vld [vmem:[#allocation8 + $0x1c8] sm:$0xf] }
 0x112   :  { %v6228_v7 = vpack.c.bf16 %v908_v0, %v900_v55  ;;  %v5624_v55 = vld [vmem:[#allocation8 + $0x584] sm:$0xf]  ;;  %v5015_v49 = vor.u32 %v5700_v11, %v5012_v6  ;;  %v4679_v50 = vor.u32 %v5616_v21, %v4676_v22  ;;  %v5507_v10 = vld [vmem:[#allocation8 + $0x1d4] sm:$0xf0]  ;;  %v4948_v6 = vld [vmem:[#allocation8 + $0x770] sm:$0xf0] }
 0x113   :  { %2542 = vmatmul.bf16.vlgmr.msrb.gmra.mxu3 %v6231_v27  ;;  %2584 = vmatmul.bf16.vlgmr.msrb.gmra.mxu2 %v6207_v13  ;;  %v4711_v63 = vor.u32 %v5624_v55, %v4708_v25  ;;  %v5692_v41 = vld [vmem:[#allocation8 + $0x7a4] sm:$0xf]  ;;  %v4644_v55 = vld [vmem:[#allocation8 + $0x510] sm:$0xf0]  ;;  %v4058_v25 = vld [vmem:[#allocation8 + $0x68] sm:$0xf] }
 0x114   :  { %2556 = vmatmul.bf16.vlgmr.msra.gmra.mxu0 %v6228_v7  ;;  %2636 = vmatpush.bf16.msra.mxu2 %v4567_v23  ;;  %v875_v36 = vpop.f32.mrf.mxu1  ;;  %v4791_v23 = vor.u32 %v5644_v14, %v4788_v15  ;;  %v4330_v14 = vld [vmem:[#allocation8 + $0x288] sm:$0xf]  ;;  %v5531_v15 = vld [vmem:[#allocation8 + $0x294] sm:$0xf0] }
 0x115   :  { %2660 = vmatpush.bf16.msra.mxu0 %v4887_v3  ;;  %2646 = vmatpush.bf16.msrb.mxu3 %v4759_v24  ;;  %v876_v52 = vadd.f32 %v875_v36, %v252_v35  ;;  %v5620_v3 = vld [vmem:[#allocation8 + $0x564] sm:$0xf]  ;;  %v4090_v24 = vld [vmem:[#allocation8 + $0xa8] sm:$0xf]  ;;  %v5503_v22 = vld [vmem:[#allocation8 + $0x1b4] sm:$0xf0] }
 0x116   :  { %v4695_v16 = vor.u32 %v5620_v3, %v4692_v4  ;;  %v4091_v36 = vor.u32 %v5471_v26, %v4090_v24  ;;  %v4251_v3 = vor.u32 %v5511_v59, %v4250_v58  ;;  %v4042_v4 = vld [vmem:[#allocation8 + $0x48] sm:$0xf]  ;;  %v5680_v24 = vld [vmem:[#allocation8 + $0x744] sm:$0xf]  ;;  %v4932_v26 = vld [vmem:[#allocation8 + $0x750] sm:$0xf0] }
 0x117   :  { %v890_v0 = vadd.f32 %v889_v34, %v876_v52  ;;  %v4378_v34 = vld [vmem:[#allocation8 + $0x2e8] sm:$0xf]  ;;  %v4075_v52 = vor.u32 %v5467_v43, %v4074_v17  ;;  %v5607_v17 = vld [vmem:[#allocation8 + $0x4f4] sm:$0xf0]  ;;  %v4916_v43 = vld [vmem:[#allocation8 + $0x730] sm:$0xf0] }
 0x118   :  { %2637 = vmatpush.bf16.msra.mxu2 %v4551_v37  ;;  %v5612_v37 = vld [vmem:[#allocation8 + $0x524] sm:$0xf]  ;;  %v4218_v21 = vld [vmem:[#allocation8 + $0x1a8] sm:$0xf]  ;;  %v4900_v58 = vld [vmem:[#allocation8 + $0x710] sm:$0xf0] }
 0x119   :  { %2661 = vmatpush.bf16.msra.mxu0 %v4871_v19  ;;  %2647 = vmatpush.bf16.msrb.mxu3 %v4743_v38  ;;  %v901_v18 = vmax.f32 %v890_v0, 0.0  ;;  %v4660_v38 = vld [vmem:[#allocation8 + $0x530] sm:$0xf0]  ;;  %v4346_v0 = vld [vmem:[#allocation8 + $0x2a8] sm:$0xf] }
 0x11a   :  { %v4282_v59 = vld [vmem:[#allocation8 + $0x228] sm:$0xf] }
 0x11c   :  { %2638 = vmatpush.bf16.msra.mxu2 %v4535_v47  ;;  %v877_v61 = vpop.f32.mrf.mxu1  ;;  %v4663_v47 = vor.u32 %v5612_v37, %v4660_v38  ;;  %v4935_v37 = vor.u32 %v5680_v24, %v4932_v26  ;;  %v4315_v38 = vor.u32 %v5527_v31, %v4314_v28  ;;  %v4474_v26 = vld [vmem:[#allocation8 + $0x3a8] sm:$0xf]  ;;  %v5567_v31 = vld [vmem:[#allocation8 + $0x3b4] sm:$0xf0] }
 0x11d   :  { %2662 = vmatpush.bf16.msra.mxu0 %v4855_v32  ;;  %2648 = vmatpush.bf16.msrb.mxu3 %v4727_v48  ;;  %v878_v1 = vadd.f32 %v877_v61, %v252_v35  ;;  %v5640_v32 = vld [vmem:[#allocation8 + $0x604] sm:$0xf]  ;;  %v5543_v35 = vld [vmem:[#allocation8 + $0x2f4] sm:$0xf0]  ;;  %v4362_v48 = vld [vmem:[#allocation8 + $0x2c8] sm:$0xf] }
 0x11e   :  { %v4775_v40 = vor.u32 %v5640_v32, %v4772_v33  ;;  %v4363_v60 = vor.u32 %v5539_v51, %v4362_v48  ;;  %v5688_v61 = vld [vmem:[#allocation8 + $0x784] sm:$0xf]  ;;  %v4219_v33 = vor.u32 %v5503_v22, %v4218_v21  ;;  %v4186_v51 = vld [vmem:[#allocation8 + $0x168] sm:$0xf] }
 0x11f   :  { %v892_v12 = vadd.f32 %v891_v5, %v878_v1  ;;  %v5535_v1 = vld [vmem:[#allocation8 + $0x2b4] sm:$0xf0]  ;;  %v4586_v22 = vld [vmem:[#allocation8 + $0x488] sm:$0xf] }
 0x120   :  { %2639 = vmatpush.bf16.msra.mxu2 %v4519_v62  ;;  %v4964_v62 = vld [vmem:[#allocation8 + $0x790] sm:$0xf0]  ;;  %v4347_v11 = vor.u32 %v5535_v1, %v4346_v0  ;;  %v4170_v1 = vld [vmem:[#allocation8 + $0x148] sm:$0xf] }
 0x121   :  { %2663 = vmatpush.bf16.msra.mxu0 %v4839_v45  ;;  %2649 = vmatpush.bf16.msrb.mxu3 %v4711_v63  ;;  %v909_v19 = vmax.f32 %v892_v12, 0.0  ;;  %v4379_v45 = vor.u32 %v5543_v35, %v4378_v34  ;;  %v4647_v63 = vor.u32 %v5608_v53, %v4644_v55  ;;  %v4967_v5 = vor.u32 %v5688_v61, %v4964_v62  ;;  %v5684_v12 = vld [vmem:[#allocation8 + $0x764] sm:$0xf]  ;;  %v5451_v34 = vld [vmem:[#allocation8 + $0x14] sm:$0xf0] }
 0x122   :  { %v4202_v35 = vld [vmem:[#allocation8 + $0x188] sm:$0xf] }
 0x123   :  { %v6237_v30 = vpack.c.bf16 %v909_v19, %v901_v18  ;;  %2598 = vmatmul.bf16.vlgmr.msra.gmra.mxu3 %v6212_v42  ;;  %2640 = vmatmul.bf16.vlgmr.msra.gmra.mxu2 %v6224_v56  ;;  %v4235_v18 = vor.u32 %v5507_v10, %v4234_v9  ;;  %v4026_v19 = vld [vmem:[#allocation8 + $0x28] sm:$0xf] }
 0x124   :  { %2612 = vmatmul.bf16.vlgmr.msrb.gmra.mxu0 %v6215_v54  ;;  %2688 = vmatpush.bf16.msrb.mxu2 %v4123_v2  ;;  %v4059_v2 = vor.u32 %v5463_v57, %v4058_v25  ;;  %v5672_v25 = vld [vmem:[#allocation8 + $0x704] sm:$0xf]  ;;  %v5603_v57 = vld [vmem:[#allocation8 + $0x4d4] sm:$0xf0]  ;;  %v4506_v62 = vld [vmem:[#allocation8 + $0x3e8] sm:$0xf] }
 0x125   :  { %2664 = vmatpush.bf16.msra.mxu0 %v4823_v29  ;;  %2650 = vmatpush.bf16.msrb.mxu3 %v4695_v16  ;;  %v4983_v29 = vor.u32 %v5692_v41, %v4980_v46  ;;  %v5523_v41 = vld [vmem:[#allocation8 + $0x254] sm:$0xf0]  ;;  %v4490_v10 = vld [vmem:[#allocation8 + $0x3c8] sm:$0xf] }
 0x126   :  { %2570 = vmatmul.bf16.vlgmr.msrb.gmra.mxu1 %v6237_v30 }
 0x127   :  { %2674 = vmatpush.bf16.msrb.mxu1 %v5015_v49  ;;  %v4951_v49 = vor.u32 %v5684_v12, %v4948_v6  ;;  %v5515_v12 = vld [vmem:[#allocation8 + $0x214] sm:$0xf0] }
 0x128   :  { %2689 = vmatpush.bf16.msrb.mxu2 %v4107_v20  ;;  %v5455_v20 = vld [vmem:[#allocation8 + $0x34] sm:$0xf0] }
 0x129   :  { %2665 = vmatpush.bf16.msra.mxu0 %v4807_v8  ;;  %2651 = vmatpush.bf16.msrb.mxu3 %v4679_v50  ;;  %v5459_v8 = vld [vmem:[#allocation8 + $0x54] sm:$0xf0]  ;;  %v4027_v32 = vor.u32 %v5455_v20, %v4026_v19  ;;  %v4010_v50 = vld [vmem:[#allocation8 + $0x8] sm:$0xf] }
 0x12a   :  { %v4043_v16 = vor.u32 %v5459_v8, %v4042_v4  ;;  %v4011_v46 = vor.u32 %v5451_v34, %v4010_v50  ;;  %v5599_v8 = vld [vmem:[#allocation8 + $0x4b4] sm:$0xf0]  ;;  %v4154_v19 = vld [vmem:[#allocation8 + $0x128] sm:$0xf] }
 0x12b   :  { %2675 = vmatpush.bf16.msrb.mxu1 %v4999_v39  ;;  %v5676_v39 = vld [vmem:[#allocation8 + $0x724] sm:$0xf]  ;;  %v5487_v20 = vld [vmem:[#allocation8 + $0x134] sm:$0xf0]  ;;  %v4138_v34 = vld [vmem:[#allocation8 + $0x108] sm:$0xf] }
 0x12c   :  { %2690 = vmatpush.bf16.msrb.mxu2 %v4091_v36  ;;  %v5499_v36 = vld [vmem:[#allocation8 + $0x194] sm:$0xf0]  ;;  %v4919_v53 = vor.u32 %v5676_v39, %v4916_v43  ;;  %v4155_v28 = vor.u32 %v5487_v20, %v4154_v19  ;;  %v5477_v20 = vld [vmem:[#allocation8 + $0xec] sm:$0xf] }
 0x12d   :  { %2666 = vmatpush.bf16.msra.mxu0 %v4791_v23  ;;  %2652 = vmatpush.bf16.msrb.mxu3 %v4663_v47  ;;  %v4331_v23 = vor.u32 %v5531_v15, %v4330_v14  ;;  %v4203_v47 = vor.u32 %v5499_v36, %v4202_v35  ;;  %v5571_v14 = vld [vmem:[#allocation8 + $0x3d4] sm:$0xf0]  ;;  %v4890_v15 = vld [vmem:[#allocation8 + $0x6e8] sm:$0xf] }
 0x12e   :  { %v5483_v35 = vld [vmem:[#allocation8 + $0x114] sm:$0xf0]  ;;  %v4570_v36 = vld [vmem:[#allocation8 + $0x468] sm:$0xf] }
 0x12f   :  { %2676 = vmatpush.bf16.msrb.mxu1 %v4983_v29  ;;  %v4618_v29 = vld [vmem:[#allocation8 + $0x4c8] sm:$0xf]  ;;  %v5639_v39 = vld [vmem:[#allocation8 + $0x5f4] sm:$0xf0]  ;;  %v4139_v43 = vor.u32 %v5483_v35, %v4138_v34  ;;  %v5473_v35 = vld [vmem:[#allocation8 + $0xcc] sm:$0xf] }
 0x130   :  { %2691 = vmatpush.bf16.msrb.mxu2 %v4075_v52  ;;  %v5495_v52 = vld [vmem:[#allocation8 + $0x174] sm:$0xf0]  ;;  %v4619_v0 = vor.u32 %v5603_v57, %v4618_v29 }
 0x131   :  { %2667 = vmatpush.bf16.msra.mxu0 %v4775_v40  ;;  %2653 = vmatpush.bf16.msrb.mxu3 %v4647_v63  ;;  %v4634_v40 = vld [vmem:[#allocation8 + $0x4e8] sm:$0xf]  ;;  %v4187_v61 = vor.u32 %v5495_v52, %v4186_v51  ;;  %v5575_v63 = vld [vmem:[#allocation8 + $0x3f4] sm:$0xf0] }
 0x132   :  { %v4635_v48 = vor.u32 %v5607_v17, %v4634_v40  ;;  %v4507_v9 = vor.u32 %v5575_v63, %v4506_v62  ;;  %v4475_v40 = vor.u32 %v5567_v31, %v4474_v26  ;;  %v5663_v51 = vld [vmem:[#allocation8 + $0x6b4] sm:$0xf0]  ;;  %v4554_v52 = vld [vmem:[#allocation8 + $0x448] sm:$0xf] }
 0x133   :  { %2677 = vmatpush.bf16.msrb.mxu1 %v4967_v5  ;;  %v4602_v5 = vld [vmem:[#allocation8 + $0x4a8] sm:$0xf]  ;;  %v5659_v63 = vld [vmem:[#allocation8 + $0x694] sm:$0xf0] }
 0x134   :  { %2668 = vmatmul.bf16.vlgmr.msra.gmra.mxu0 %v6228_v7  ;;  %2692 = vmatpush.bf16.msrb.mxu2 %v4059_v2  ;;  %v5491_v2 = vld [vmem:[#allocation8 + $0x154] sm:$0xf0]  ;;  %v4842_v62 = vld [vmem:[#allocation8 + $0x688] sm:$0xf] }
 0x135   :  { %2716 = vmatpush.bf16.msrb.mxu0 %v4379_v45  ;;  %2702 = vmatpush.bf16.msra.mxu3 %v4251_v3  ;;  %v4298_v45 = vld [vmem:[#allocation8 + $0x248] sm:$0xf]  ;;  %v4903_v3 = vor.u32 %v5672_v25, %v4900_v58  ;;  %v4171_v6 = vor.u32 %v5491_v2, %v4170_v1  ;;  %v5635_v25 = vld [vmem:[#allocation8 + $0x5d4] sm:$0xf0] }
 0x136   :  { %2654 = vmatmul.bf16.vlgmr.msrb.gmra.mxu3 %v6231_v27  ;;  %2626 = vmatmul.bf16.vlgmr.msra.gmra.mxu1 %v6219_v44  ;;  %v4299_v55 = vor.u32 %v5523_v41, %v4298_v45  ;;  %v4458_v45 = vld [vmem:[#allocation8 + $0x388] sm:$0xf]  ;;  %v5563_v41 = vld [vmem:[#allocation8 + $0x394] sm:$0xf0] }
 0x137   :  { %2678 = vmatpush.bf16.msrb.mxu1 %v4951_v49  ;;  %v5595_v49 = vld [vmem:[#allocation8 + $0x494] sm:$0xf0]  ;;  %v4459_v29 = vor.u32 %v5563_v41, %v4458_v45  ;;  %v4442_v58 = vld [vmem:[#allocation8 + $0x368] sm:$0xf] }
 0x138   :  { %2693 = vmatpush.bf16.msrb.mxu2 %v4043_v16  ;;  %v5671_v16 = vld [vmem:[#allocation8 + $0x6f4] sm:$0xf0]  ;;  %v4587_v50 = vor.u32 %v5595_v49, %v4586_v22  ;;  %v4730_v2 = vld [vmem:[#allocation8 + $0x5a8] sm:$0xf] }
 0x139   :  { %2717 = vmatpush.bf16.msrb.mxu0 %v4363_v60  ;;  %2703 = vmatpush.bf16.msra.mxu3 %v4235_v18  ;;  %v5519_v60 = vld [vmem:[#allocation8 + $0x234] sm:$0xf0]  ;;  %v4603_v18 = vor.u32 %v5599_v8, %v4602_v5  ;;  %v4891_v24 = vor.u32 %v5671_v16, %v4890_v15  ;;  %v4843_v5 = vor.u32 %v5659_v63, %v4842_v62  ;;  %v4426_v8 = vld [vmem:[#allocation8 + $0x348] sm:$0xf] }
 0x13a   :  { %v4283_v4 = vor.u32 %v5519_v60, %v4282_v59  ;;  %v5559_v59 = vld [vmem:[#allocation8 + $0x374] sm:$0xf0]  ;;  %v4714_v16 = vld [vmem:[#allocation8 + $0x588] sm:$0xf] }
 0x13b   :  { %2679 = vmatpush.bf16.msrb.mxu1 %v4935_v37  ;;  %v5591_v37 = vld [vmem:[#allocation8 + $0x474] sm:$0xf0]  ;;  %v4410_v49 = vld [vmem:[#allocation8 + $0x328] sm:$0xf] }
 0x13c   :  { %2694 = vmatpush.bf16.msrb.mxu2 %v4027_v32  ;;  %v4874_v32 = vld [vmem:[#allocation8 + $0x6c8] sm:$0xf]  ;;  %v5583_v1 = vld [vmem:[#allocation8 + $0x434] sm:$0xf0] }
 0x13d   :  { %2718 = vmatpush.bf16.msrb.mxu0 %v4347_v11  ;;  %2704 = vmatpush.bf16.msra.mxu3 %v4219_v33  ;;  %v4266_v11 = vld [vmem:[#allocation8 + $0x208] sm:$0xf]  ;;  %v5667_v33 = vld [vmem:[#allocation8 + $0x6d4] sm:$0xf0] }
 0x13e   :  { %v4267_v21 = vor.u32 %v5515_v12, %v4266_v11  ;;  %v4875_v17 = vor.u32 %v5667_v33, %v4874_v32  ;;  %v4826_v12 = vld [vmem:[#allocation8 + $0x668] sm:$0xf]  ;;  %v5579_v15 = vld [vmem:[#allocation8 + $0x414] sm:$0xf0] }
 0x13f   :  { %2680 = vmatpush.bf16.msrb.mxu1 %v4919_v53  ;;  %v5587_v53 = vld [vmem:[#allocation8 + $0x454] sm:$0xf0]  ;;  %v4698_v33 = vld [vmem:[#allocation8 + $0x568] sm:$0xf] }
 0x140   :  { %2695 = vmatpush.bf16.msrb.mxu2 %v4011_v46  ;;  %v4571_v46 = vor.u32 %v5591_v37, %v4570_v36  ;;  %v4555_v60 = vor.u32 %v5587_v53, %v4554_v52  ;;  %v5651_v31 = vld [vmem:[#allocation8 + $0x654] sm:$0xf0]  ;;  %v4108_v36 = vld [vmem:[#allocation8 + $0xd8] sm:$0xf0]  ;;  %v4794_v45 = vld [vmem:[#allocation8 + $0x628] sm:$0xf] }
 0x141   :  { %2719 = vmatpush.bf16.msrb.mxu0 %v4331_v23  ;;  %2705 = vmatpush.bf16.msra.mxu3 %v4203_v47  ;;  %v4491_v23 = vor.u32 %v5571_v14, %v4490_v10  ;;  %v4522_v14 = vld [vmem:[#allocation8 + $0x408] sm:$0xf]  ;;  %v5647_v41 = vld [vmem:[#allocation8 + $0x634] sm:$0xf0]  ;;  %v5469_v52 = vld [vmem:[#allocation8 + $0xac] sm:$0xf] }
 0x142   :  { %v4092_v53 = vld [vmem:[#allocation8 + $0xb8] sm:$0xf0]  ;;  %v5615_v63 = vld [vmem:[#allocation8 + $0x534] sm:$0xf0] }
 0x143   :  { %2696 = vmatmul.bf16.vlgmr.msrb.gmra.mxu2 %v6207_v13  ;;  %2681 = vmatpush.bf16.msrb.mxu1 %v4903_v3  ;;  %v5631_v3 = vld [vmem:[#allocation8 + $0x5b4] sm:$0xf0]  ;;  %v4095_v62 = vor.u32 %v5469_v52, %v4092_v53 }
 0x144   :  { %2744 = vmatpush.bf16.msra.mxu2 %v4635_v48  ;;  %v4858_v48 = vld [vmem:[#allocation8 + $0x6a8] sm:$0xf]  ;;  %v4731_v11 = vor.u32 %v5631_v3, %v4730_v2  ;;  %v5465_v2 = vld [vmem:[#allocation8 + $0x8c] sm:$0xf]  ;;  %v4076_v3 = vld [vmem:[#allocation8 + $0x98] sm:$0xf0] }
 0x145   :  { %2720 = vmatpush.bf16.msrb.mxu0 %v4315_v38  ;;  %2706 = vmatpush.bf16.msra.mxu3 %v4187_v61  ;;  %v4762_v38 = vld [vmem:[#allocation8 + $0x5e8] sm:$0xf]  ;;  %v4859_v57 = vor.u32 %v5663_v51, %v4858_v48  ;;  %v5619_v48 = vld [vmem:[#allocation8 + $0x554] sm:$0xf0] }
 0x146   :  { %2682 = vmatmul.bf16.vlgmr.msrb.gmra.mxu1 %v6237_v30  ;;  %v4763_v47 = vor.u32 %v5639_v39, %v4762_v38  ;;  %v4394_v38 = vld [vmem:[#allocation8 + $0x308] sm:$0xf]  ;;  %v5547_v39 = vld [vmem:[#allocation8 + $0x314] sm:$0xf0] }
 0x147   :  { %2730 = vmatpush.bf16.msra.mxu1 %v4507_v9  ;;  %v5555_v9 = vld [vmem:[#allocation8 + $0x354] sm:$0xf0]  ;;  %v4395_v51 = vor.u32 %v5547_v39, %v4394_v38  ;;  %v4954_v39 = vld [vmem:[#allocation8 + $0x768] sm:$0xf] }
 0x148   :  { %2745 = vmatpush.bf16.msra.mxu2 %v4619_v0  ;;  %v4538_v0 = vld [vmem:[#allocation8 + $0x428] sm:$0xf]  ;;  %v4427_v19 = vor.u32 %v5555_v9, %v4426_v8 }
 0x149   :  { %2721 = vmatpush.bf16.msrb.mxu0 %v4299_v55  ;;  %2707 = vmatpush.bf16.msra.mxu3 %v4171_v6  ;;  %v4746_v55 = vld [vmem:[#allocation8 + $0x5c8] sm:$0xf]  ;;  %v4539_v10 = vor.u32 %v5583_v1, %v4538_v0  ;;  %v5655_v6 = vld [vmem:[#allocation8 + $0x674] sm:$0xf0]  ;;  %v5541_v0 = vld [vmem:[#allocation8 + $0x2ec] sm:$0xf] }
 0x14a   :  { %v4747_v61 = vor.u32 %v5635_v25, %v4746_v55  ;;  %v4827_v22 = vor.u32 %v5655_v6, %v4826_v12  ;;  %v4795_v25 = vor.u32 %v5647_v41, %v4794_v45  ;;  %v4380_v1 = vld [vmem:[#allocation8 + $0x2f8] sm:$0xf0]  ;;  %v4986_v8 = vld [vmem:[#allocation8 + $0x7a8] sm:$0xf]  ;;  %v5611_v6 = vld [vmem:[#allocation8 + $0x514] sm:$0xf0] }
 0x14b   :  { %2731 = vmatpush.bf16.msra.mxu1 %v4491_v23  ;;  %v5551_v23 = vld [vmem:[#allocation8 + $0x334] sm:$0xf0]  ;;  %v4650_v12 = vld [vmem:[#allocation8 + $0x508] sm:$0xf]  ;;  %v5529_v45 = vld [vmem:[#allocation8 + $0x28c] sm:$0xf] }
 0x14c   :  { %2746 = vmatpush.bf16.msra.mxu2 %v4603_v18  ;;  %v5627_v18 = vld [vmem:[#allocation8 + $0x594] sm:$0xf0]  ;;  %v4411_v34 = vor.u32 %v5551_v23, %v4410_v49  ;;  %v4651_v49 = vor.u32 %v5611_v6, %v4650_v12  ;;  %v4332_v41 = vld [vmem:[#allocation8 + $0x298] sm:$0xf0]  ;;  %v5493_v6 = vld [vmem:[#allocation8 + $0x16c] sm:$0xf] }
 0x14d   :  { %2722 = vmatpush.bf16.msrb.mxu0 %v4283_v4  ;;  %2708 = vmatpush.bf16.msra.mxu3 %v4155_v28  ;;  %v4443_v4 = vor.u32 %v5559_v59, %v4442_v58  ;;  %v4715_v26 = vor.u32 %v5627_v18, %v4714_v16  ;;  %v4810_v28 = vld [vmem:[#allocation8 + $0x648] sm:$0xf]  ;;  %v4364_v16 = vld [vmem:[#allocation8 + $0x2d8] sm:$0xf0]  ;;  %v5461_v18 = vld [vmem:[#allocation8 + $0x6c] sm:$0xf]  ;;  %v4335_v53 = vor.u32 %v5529_v45, %v4332_v41 }
 0x14e   :  { %v4811_v37 = vor.u32 %v5651_v31, %v4810_v28  ;;  %v4778_v59 = vld [vmem:[#allocation8 + $0x608] sm:$0xf]  ;;  %v4156_v41 = vld [vmem:[#allocation8 + $0x138] sm:$0xf0] }
 0x14f   :  { %2732 = vmatpush.bf16.msra.mxu1 %v4475_v40  ;;  %v5018_v40 = vld [vmem:[#allocation8 + $0x7e8] sm:$0xf] }
 0x150   :  { %2747 = vmatpush.bf16.msra.mxu2 %v4587_v50  ;;  %v5623_v50 = vld [vmem:[#allocation8 + $0x574] sm:$0xf0] }
 0x151   :  { %2723 = vmatpush.bf16.msrb.mxu0 %v4267_v21  ;;  %2709 = vmatpush.bf16.msra.mxu3 %v4139_v43  ;;  %v4124_v21 = vld [vmem:[#allocation8 + $0xf8] sm:$0xf0]  ;;  %v5703_v43 = vld [vmem:[#allocation8 + $0x7f4] sm:$0xf0] }
 0x152   :  { %v4127_v32 = vor.u32 %v5477_v20, %v4124_v21  ;;  %v5019_v55 = vor.u32 %v5703_v43, %v5018_v40  ;;  %v5509_v20 = vld [vmem:[#allocation8 + $0x1ec] sm:$0xf]  ;;  %v4252_v21 = vld [vmem:[#allocation8 + $0x1f8] sm:$0xf0]  ;;  %v5687_v40 = vld [vmem:[#allocation8 + $0x774] sm:$0xf0] }
 0x153   :  { %2733 = vmatpush.bf16.msra.mxu1 %v4459_v29  ;;  %v5002_v29 = vld [vmem:[#allocation8 + $0x7c8] sm:$0xf]  ;;  %v4255_v31 = vor.u32 %v5509_v20, %v4252_v21  ;;  %v4955_v52 = vor.u32 %v5687_v40, %v4954_v39  ;;  %v5675_v21 = vld [vmem:[#allocation8 + $0x714] sm:$0xf0]  ;;  %v5513_v40 = vld [vmem:[#allocation8 + $0x20c] sm:$0xf] }
 0x154   :  { %2724 = vmatmul.bf16.vlgmr.msrb.gmra.mxu0 %v6215_v54  ;;  %2748 = vmatpush.bf16.msra.mxu2 %v4571_v46  ;;  %v4111_v46 = vor.u32 %v5473_v35, %v4108_v36  ;;  %v5505_v35 = vld [vmem:[#allocation8 + $0x1cc] sm:$0xf]  ;;  %v4236_v36 = vld [vmem:[#allocation8 + $0x1d8] sm:$0xf0]  ;;  %v4906_v20 = vld [vmem:[#allocation8 + $0x708] sm:$0xf] }
 0x155   :  { %2772 = vmatpush.bf16.msra.mxu0 %v4891_v24  ;;  %2758 = vmatpush.bf16.msrb.mxu3 %v4763_v47  ;;  %v4523_v24 = vor.u32 %v5579_v15, %v4522_v14  ;;  %v4682_v47 = vld [vmem:[#allocation8 + $0x548] sm:$0xf]  ;;  %v4079_v14 = vor.u32 %v5465_v2, %v4076_v3  ;;  %v5537_v15 = vld [vmem:[#allocation8 + $0x2cc] sm:$0xf]  ;;  %v4239_v43 = vor.u32 %v5505_v35, %v4236_v36  ;;  %v4636_v2 = vld [vmem:[#allocation8 + $0x4f8] sm:$0xf0] }
 0x156   :  { %2710 = vmatmul.bf16.vlgmr.msra.gmra.mxu3 %v6212_v42  ;;  %v4683_v58 = vor.u32 %v5619_v48, %v4682_v47  ;;  %v4367_v23 = vor.u32 %v5537_v15, %v4364_v16  ;;  %v4028_v47 = vld [vmem:[#allocation8 + $0x38] sm:$0xf0]  ;;  %v5501_v48 = vld [vmem:[#allocation8 + $0x1ac] sm:$0xf] }
 0x157   :  { %2734 = vmatpush.bf16.msra.mxu1 %v4443_v4  ;;  %v5601_v16 = vld [vmem:[#allocation8 + $0x4cc] sm:$0xf] }
 0x158   :  { %2749 = vmatpush.bf16.msra.mxu2 %v4555_v60  ;;  %v5643_v60 = vld [vmem:[#allocation8 + $0x614] sm:$0xf0] }
 0x159   :  { %2773 = vmatpush.bf16.msra.mxu0 %v4875_v17  ;;  %2759 = vmatpush.bf16.msrb.mxu3 %v4747_v61  ;;  %v4699_v17 = vor.u32 %v5623_v50, %v4698_v33  ;;  %v4666_v61 = vld [vmem:[#allocation8 + $0x528] sm:$0xf]  ;;  %v4348_v33 = vld [vmem:[#allocation8 + $0x2b8] sm:$0xf0]  ;;  %v5457_v50 = vld [vmem:[#allocation8 + $0x4c] sm:$0xf] }
 0x15a   :  { %v4667_v9 = vor.u32 %v5615_v63, %v4666_v61  ;;  %v4012_v61 = vld [vmem:[#allocation8 + $0x18] sm:$0xf0] }
 0x15b   :  { %2735 = vmatpush.bf16.msra.mxu1 %v4427_v19  ;;  %v4060_v19 = vld [vmem:[#allocation8 + $0x78] sm:$0xf0] }
 0x15c   :  { %2750 = vmatpush.bf16.msra.mxu2 %v4539_v10  ;;  %v4383_v10 = vor.u32 %v5541_v0, %v4380_v1  ;;  %v4063_v28 = vor.u32 %v5461_v18, %v4060_v19  ;;  %v4204_v63 = vld [vmem:[#allocation8 + $0x198] sm:$0xf0]  ;;  %v5605_v1 = vld [vmem:[#allocation8 + $0x4ec] sm:$0xf] }
 0x15d   :  { %2774 = vmatpush.bf16.msra.mxu0 %v4859_v57  ;;  %2760 = vmatpush.bf16.msrb.mxu3 %v4731_v11  ;;  %v5699_v57 = vld [vmem:[#allocation8 + $0x7d4] sm:$0xf0]  ;;  %v4639_v12 = vor.u32 %v5605_v1, %v4636_v2  ;;  %v4620_v18 = vld [vmem:[#allocation8 + $0x4d8] sm:$0xf0]  ;;  %v5637_v1 = vld [vmem:[#allocation8 + $0x5ec] sm:$0xf] }
 0x15e   :  { %v5003_v4 = vor.u32 %v5699_v57, %v5002_v29  ;;  %v5695_v11 = vld [vmem:[#allocation8 + $0x7b4] sm:$0xf0]  ;;  %v4764_v2 = vld [vmem:[#allocation8 + $0x5f8] sm:$0xf0] }
 0x15f   :  { %2736 = vmatpush.bf16.msra.mxu1 %v4411_v34  ;;  %v4044_v34 = vld [vmem:[#allocation8 + $0x58] sm:$0xf0] }
 0x160   :  { %2751 = vmatpush.bf16.msra.mxu2 %v4523_v24  ;;  %v4970_v24 = vld [vmem:[#allocation8 + $0x788] sm:$0xf] }
 0x161   :  { %2775 = vmatpush.bf16.msra.mxu0 %v4843_v5  ;;  %2761 = vmatpush.bf16.msrb.mxu3 %v4715_v26  ;;  %v4779_v5 = vor.u32 %v5643_v60, %v4778_v59  ;;  %v5691_v26 = vld [vmem:[#allocation8 + $0x794] sm:$0xf0]  ;;  %v4316_v59 = vld [vmem:[#allocation8 + $0x278] sm:$0xf0]  ;;  %v5449_v60 = vld [vmem:[#allocation8 + $0xc] sm:$0xf] }
 0x163   :  { %2752 = vmatmul.bf16.vlgmr.msra.gmra.mxu2 %v6224_v56  ;;  %2737 = vmatpush.bf16.msra.mxu1 %v4395_v51  ;;  %v4220_v51 = vld [vmem:[#allocation8 + $0x1b8] sm:$0xf0] }
 0x164   :  { %2800 = vmatpush.bf16.msrb.mxu2 %v4127_v32  ;;  %v5533_v32 = vld [vmem:[#allocation8 + $0x2ac] sm:$0xf]  ;;  %v4223_v57 = vor.u32 %v5501_v48, %v4220_v51  ;;  %v6254_v48 = vpop.f32.mrf.mxu2 }
 0x165   :  { %2776 = vmatpush.bf16.msra.mxu0 %v4827_v22  ;;  %2762 = vmatpush.bf16.msrb.mxu3 %v4699_v17  ;;  %v4987_v22 = vor.u32 %v5695_v11, %v4986_v8  ;;  %v4351_v38 = vor.u32 %v5533_v32, %v4348_v33  ;;  %v4047_v17 = vor.u32 %v5457_v50, %v4044_v34  ;;  %v4300_v11 = vld [vmem:[#allocation8 + $0x258] sm:$0xf0]  ;;  %v5597_v50 = vld [vmem:[#allocation8 + $0x4ac] sm:$0xf] }
 0x166   :  { %2738 = vmatmul.bf16.vlgmr.msra.gmra.mxu1 %v6219_v44  ;;  %v4015_v8 = vor.u32 %v5449_v60, %v4012_v61  ;;  %v4172_v32 = vld [vmem:[#allocation8 + $0x158] sm:$0xf0]  ;;  %v4907_v33 = vor.u32 %v5675_v21, %v4906_v20  ;;  %v5593_v51 = vld [vmem:[#allocation8 + $0x48c] sm:$0xf] }
 0x167   :  { %2786 = vmatpush.bf16.msrb.mxu1 %v5019_v55  ;;  %v4938_v55 = vld [vmem:[#allocation8 + $0x748] sm:$0xf]  ;;  %v4604_v34 = vld [vmem:[#allocation8 + $0x4b8] sm:$0xf0]  ;;  %v5665_v61 = vld [vmem:[#allocation8 + $0x6cc] sm:$0xf] }
 0x168   :  { %2801 = vmatpush.bf16.msrb.mxu2 %v4111_v46  ;;  %v5453_v46 = vld [vmem:[#allocation8 + $0x2c] sm:$0xf]  ;;  %v4607_v45 = vor.u32 %v5597_v50, %v4604_v34  ;;  %v4748_v20 = vld [vmem:[#allocation8 + $0x5d8] sm:$0xf0] }
 0x169   :  { %2777 = vmatpush.bf16.msra.mxu0 %v4811_v37  ;;  %2763 = vmatpush.bf16.msrb.mxu3 %v4683_v58  ;;  %v4971_v37 = vor.u32 %v5691_v26, %v4970_v24  ;;  %v4031_v29 = vor.u32 %v5453_v46, %v4028_v47  ;;  %v5525_v58 = vld [vmem:[#allocation8 + $0x26c] sm:$0xf]  ;;  %v4284_v26 = vld [vmem:[#allocation8 + $0x238] sm:$0xf0] }
 0x16a   :  { %v4319_v3 = vor.u32 %v5525_v58, %v4316_v59  ;;  %v5517_v24 = vld [vmem:[#allocation8 + $0x22c] sm:$0xf]  ;;  %v4892_v47 = vld [vmem:[#allocation8 + $0x6f8] sm:$0xf0] }
 0x16b   :  { %2787 = vmatpush.bf16.msrb.mxu1 %v5003_v4  ;;  %v4922_v4 = vld [vmem:[#allocation8 + $0x728] sm:$0xf]  ;;  %v4287_v36 = vor.u32 %v5517_v24, %v4284_v26  ;;  %v5669_v46 = vld [vmem:[#allocation8 + $0x6ec] sm:$0xf]  ;;  %v4140_v59 = vld [vmem:[#allocation8 + $0x118] sm:$0xf0] }
 0x16c   :  { %2802 = vmatpush.bf16.msrb.mxu2 %v4095_v62  ;;  %v5497_v62 = vld [vmem:[#allocation8 + $0x18c] sm:$0xf]  ;;  %v4444_v24 = vld [vmem:[#allocation8 + $0x378] sm:$0xf0] }
 0x16d   :  { %2778 = vmatpush.bf16.msra.mxu0 %v4795_v25  ;;  %2764 = vmatpush.bf16.msrb.mxu3 %v4667_v9  ;;  %v5683_v25 = vld [vmem:[#allocation8 + $0x754] sm:$0xf0]  ;;  %v4207_v9 = vor.u32 %v5497_v62, %v4204_v63  ;;  %v5481_v58 = vld [vmem:[#allocation8 + $0x10c] sm:$0xf]  ;;  %v4876_v62 = vld [vmem:[#allocation8 + $0x6d8] sm:$0xf0] }
 0x16e   :  { %v4939_v0 = vor.u32 %v5683_v25, %v4938_v55  ;;  %v5565_v55 = vld [vmem:[#allocation8 + $0x3ac] sm:$0xf]  ;;  %v4732_v34 = vld [vmem:[#allocation8 + $0x5b8] sm:$0xf0] }
 0x16f   :  { %2788 = vmatpush.bf16.msrb.mxu1 %v4987_v22  ;;  %v5573_v22 = vld [vmem:[#allocation8 + $0x3ec] sm:$0xf] }
 0x170   :  { %2803 = vmatpush.bf16.msrb.mxu2 %v4079_v14  ;;  %v4188_v14 = vld [vmem:[#allocation8 + $0x178] sm:$0xf0]  ;;  %v5589_v63 = vld [vmem:[#allocation8 + $0x46c] sm:$0xf] }
 0x171   :  { %2779 = vmatpush.bf16.msra.mxu0 %v4779_v5  ;;  %2765 = vmatpush.bf16.msrb.mxu3 %v4651_v49  ;;  %v5679_v5 = vld [vmem:[#allocation8 + $0x734] sm:$0xf0]  ;;  %v4191_v49 = vor.u32 %v5493_v6, %v4188_v14  ;;  %v5661_v6 = vld [vmem:[#allocation8 + $0x6ac] sm:$0xf]  ;;  %v4860_v14 = vld [vmem:[#allocation8 + $0x6b8] sm:$0xf0] }
 0x172   :  { %v4923_v15 = vor.u32 %v5679_v5, %v4922_v4  ;;  %v4143_v4 = vor.u32 %v5481_v58, %v4140_v59  ;;  %v4879_v5 = vor.u32 %v5665_v61, %v4876_v62  ;;  %v5629_v50 = vld [vmem:[#allocation8 + $0x5ac] sm:$0xf]  ;;  %v6271_v58 = vpop.f32.mrf.mxu1  ;;  %v4812_v62 = vld [vmem:[#allocation8 + $0x658] sm:$0xf0] }
 0x173   :  { %2789 = vmatpush.bf16.msrb.mxu1 %v4971_v37  ;;  %v5569_v37 = vld [vmem:[#allocation8 + $0x3cc] sm:$0xf] }
 0x174   :  { %2780 = vmatmul.bf16.vlgmr.msra.gmra.mxu0 %v6228_v7  ;;  %2804 = vmatpush.bf16.msrb.mxu2 %v4063_v28  ;;  %v4623_v28 = vor.u32 %v5601_v16, %v4620_v18  ;;  %v6259_v16 = vpop.f32.mrf.mxu0  ;;  %v4556_v18 = vld [vmem:[#allocation8 + $0x458] sm:$0xf0]  ;;  %v5649_v61 = vld [vmem:[#allocation8 + $0x64c] sm:$0xf] }
 0x175   :  { %2828 = vmatpush.bf16.msrb.mxu0 %v4383_v10  ;;  %2814 = vmatpush.bf16.msra.mxu3 %v4255_v31  ;;  %v5521_v10 = vld [vmem:[#allocation8 + $0x24c] sm:$0xf] }
 0x176   :  { %2766 = vmatmul.bf16.vlgmr.msrb.gmra.mxu3 %v6231_v27  ;;  %v4303_v19 = vor.u32 %v5521_v10, %v4300_v11  ;;  %v5489_v31 = vld [vmem:[#allocation8 + $0x14c] sm:$0xf]  ;;  %v6257_v10 = vpop.f32.mrf.mxu3 }
 0x177   :  { %2790 = vmatpush.bf16.msrb.mxu1 %v4955_v52  ;;  %v4175_v39 = vor.u32 %v5489_v31, %v4172_v32  ;;  %v5657_v31 = vld [vmem:[#allocation8 + $0x68c] sm:$0xf]  ;;  %v4844_v32 = vld [vmem:[#allocation8 + $0x698] sm:$0xf0] }
 0x178   :  { %2805 = vmatpush.bf16.msrb.mxu2 %v4047_v17  ;;  %v4268_v17 = vld [vmem:[#allocation8 + $0x218] sm:$0xf0] }
 0x179   :  { %2829 = vmatpush.bf16.msrb.mxu0 %v4367_v23  ;;  %2815 = vmatpush.bf16.msra.mxu3 %v4239_v43  ;;  %v4508_v23 = vld [vmem:[#allocation8 + $0x3f8] sm:$0xf0]  ;;  %v5485_v43 = vld [vmem:[#allocation8 + $0x12c] sm:$0xf] }
 0x17a   :  { %v4511_v35 = vor.u32 %v5573_v22, %v4508_v23  ;;  %v4159_v25 = vor.u32 %v5485_v43, %v4156_v41  ;;  %v6262_v22 = vpop.f32.mrf.mxu2  ;;  %v5557_v23 = vld [vmem:[#allocation8 + $0x36c] sm:$0xf]  ;;  %v4828_v43 = vld [vmem:[#allocation8 + $0x678] sm:$0xf0] }
 0x17b   :  { %2791 = vmatpush.bf16.msrb.mxu1 %v4939_v0  ;;  %v4572_v0 = vld [vmem:[#allocation8 + $0x478] sm:$0xf0] }
 0x17c   :  { %2806 = vmatpush.bf16.msrb.mxu2 %v4031_v29  ;;  %v4895_v29 = vor.u32 %v5669_v46, %v4892_v47  ;;  %v4575_v11 = vor.u32 %v5589_v63, %v4572_v0  ;;  %v4524_v41 = vld [vmem:[#allocation8 + $0x418] sm:$0xf0]  ;;  %v5625_v46 = vld [vmem:[#allocation8 + $0x58c] sm:$0xf] }
 0x17d   :  { %2830 = vmatpush.bf16.msrb.mxu0 %v4351_v38  ;;  %2816 = vmatpush.bf16.msra.mxu3 %v4223_v57  ;;  %v4492_v38 = vld [vmem:[#allocation8 + $0x3d8] sm:$0xf0]  ;;  %v5621_v0 = vld [vmem:[#allocation8 + $0x56c] sm:$0xf] }
 0x17e   :  { %v4495_v52 = vor.u32 %v5569_v37, %v4492_v38  ;;  %v4476_v57 = vld [vmem:[#allocation8 + $0x3b8] sm:$0xf0]  ;;  %v5553_v37 = vld [vmem:[#allocation8 + $0x34c] sm:$0xf] }
 0x17f   :  { %2792 = vmatpush.bf16.msrb.mxu1 %v4923_v15  ;;  %v5585_v15 = vld [vmem:[#allocation8 + $0x44c] sm:$0xf]  ;;  %v4428_v38 = vld [vmem:[#allocation8 + $0x358] sm:$0xf0] }
 0x180   :  { %2807 = vmatpush.bf16.msrb.mxu2 %v4015_v8  ;;  %v5561_v8 = vld [vmem:[#allocation8 + $0x38c] sm:$0xf]  ;;  %v4559_v26 = vor.u32 %v5585_v15, %v4556_v18  ;;  %v4716_v47 = vld [vmem:[#allocation8 + $0x598] sm:$0xf0] }
 0x181   :  { %2831 = vmatpush.bf16.msrb.mxu0 %v4335_v53  ;;  %2817 = vmatpush.bf16.msra.mxu3 %v4207_v9  ;;  %v4271_v53 = vor.u32 %v5513_v40, %v4268_v17  ;;  %v4460_v9 = vld [vmem:[#allocation8 + $0x398] sm:$0xf0]  ;;  %v4735_v40 = vor.u32 %v5629_v50, %v4732_v34  ;;  %v5653_v17 = vld [vmem:[#allocation8 + $0x66c] sm:$0xf] }
 0x182   :  { %v4463_v21 = vor.u32 %v5561_v8, %v4460_v9  ;;  %v4815_v8 = vor.u32 %v5649_v61, %v4812_v62  ;;  %v5545_v9 = vld [vmem:[#allocation8 + $0x30c] sm:$0xf]  ;;  %v4796_v18 = vld [vmem:[#allocation8 + $0x638] sm:$0xf0] }
 0x183   :  { %2808 = vmatmul.bf16.vlgmr.msrb.gmra.mxu2 %v6207_v13  ;;  %2793 = vmatpush.bf16.msrb.mxu1 %v4907_v33  ;;  %v4588_v13 = vld [vmem:[#allocation8 + $0x498] sm:$0xf0]  ;;  %v5581_v33 = vld [vmem:[#allocation8 + $0x42c] sm:$0xf] }
 0x184   :  { %2856 = vmatpush.bf16.msra.mxu2 %v4639_v12  ;;  %v4591_v60 = vor.u32 %v5593_v51, %v4588_v13  ;;  %v4767_v12 = vor.u32 %v5637_v1, %v4764_v2  ;;  %v6265_v51 = vpop.f32.mrf.mxu3  ;;  %v4431_v13 = vor.u32 %v5553_v37, %v4428_v38  ;;  %v4700_v1 = vld [vmem:[#allocation8 + $0x578] sm:$0xf0]  ;;  %v6273_v2 = vld [vmem:[#allocation10] sm:$0xf]  ;;  %v5645_v15 = vld [vmem:[#allocation8 + $0x62c] sm:$0xf] }
 0x185   :  { %2832 = vmatpush.bf16.msrb.mxu0 %v4319_v3  ;;  %2818 = vmatpush.bf16.msra.mxu3 %v4191_v49  ;;  %v4479_v3 = vor.u32 %v5565_v55, %v4476_v57  ;;  %v4863_v49 = vor.u32 %v5661_v6, %v4860_v14  ;;  %v4412_v57 = vld [vmem:[#allocation8 + $0x338] sm:$0xf0]  ;;  %v4703_v6 = vor.u32 %v5621_v0, %v4700_v1 }
 0x186   :  { %2794 = vmatmul.bf16.vlgmr.msrb.gmra.mxu1 %v6237_v30  ;;  %v6269_v55 = vpop.f32.mrf.mxu2  ;;  %v5020_v14 = vld [vmem:[#allocation8 + $0x7f8] sm:$0xf0] }
 0x187   :  { %2842 = vmatpush.bf16.msra.mxu1 %v4511_v35  ;;  %v4447_v35 = vor.u32 %v5557_v23, %v4444_v24  ;;  %v5004_v34 = vld [vmem:[#allocation8 + $0x7d8] sm:$0xf0] }
 0x188   :  { %2857 = vmatpush.bf16.msra.mxu2 %v4623_v28  ;;  %v5711_v61 = vld [vmem:[#allocation11 + $0x34] sm:$0xf0] }
 0x189   :  { %2833 = vmatpush.bf16.msrb.mxu0 %v4303_v19  ;;  %2819 = vmatpush.bf16.msra.mxu3 %v4175_v39  ;;  %v5633_v19 = vld [vmem:[#allocation8 + $0x5cc] sm:$0xf]  ;;  %v5735_v62 = vld [vmem:[#allocation11 + $0xf4] sm:$0xf0] }
 0x18a   :  { %v4751_v28 = vor.u32 %v5633_v19, %v4748_v20  ;;  %v5617_v20 = vld [vmem:[#allocation8 + $0x54c] sm:$0xf] }
 0x18b   :  { %2843 = vmatpush.bf16.msra.mxu1 %v4495_v52  ;;  %v5719_v52 = vld [vmem:[#allocation11 + $0x74] sm:$0xf0] }
 0x18c   :  { %2858 = vmatpush.bf16.msra.mxu2 %v4607_v45  ;;  %v5577_v45 = vld [vmem:[#allocation8 + $0x40c] sm:$0xf] }
 0x18d   :  { %2834 = vmatpush.bf16.msrb.mxu0 %v4287_v36  ;;  %2820 = vmatpush.bf16.msra.mxu3 %v4159_v25  ;;  %v4847_v36 = vor.u32 %v5657_v31, %v4844_v32  ;;  %v4831_v25 = vor.u32 %v5653_v17, %v4828_v43  ;;  %v4527_v59 = vor.u32 %v5577_v45, %v4524_v41  ;;  %v4668_v17 = vld [vmem:[#allocation8 + $0x538] sm:$0xf0]  ;;  %v2517_v45 = vpop.f32.mrf.mxu1  ;;  %v5713_v41 = vld [vmem:[#allocation11 + $0x44] sm:$0xf0] }
 0x18e   :  { %v2531_v38 = vpop.f32.mrf.mxu2 }
 0x18f   :  { %2844 = vmatpush.bf16.msra.mxu1 %v4479_v3 }
 0x190   :  { %2859 = vmatpush.bf16.msra.mxu2 %v4591_v60  ;;  %v4719_v60 = vor.u32 %v5625_v46, %v4716_v47 }
 0x191   :  { %2835 = vmatpush.bf16.msrb.mxu0 %v4271_v53  ;;  %2821 = vmatpush.bf16.msra.mxu3 %v4143_v4  ;;  %v6267_v53 = vpop.f32.mrf.mxu0  ;;  %v5074_v4 = vld [vmem:[#allocation11 + $0x60] sm:$0xf] }
 0x193   :  { %2845 = vmatpush.bf16.msra.mxu1 %v4463_v21  ;;  %v4684_v21 = vld [vmem:[#allocation8 + $0x558] sm:$0xf0] }
 0x194   :  { %2836 = vmatmul.bf16.vlgmr.msrb.gmra.mxu0 %v6215_v54  ;;  %2860 = vmatpush.bf16.msra.mxu2 %v4575_v11  ;;  %v4540_v54 = vld [vmem:[#allocation8 + $0x438] sm:$0xf0]  ;;  %v4687_v50 = vor.u32 %v5617_v20, %v4684_v21  ;;  %v5685_v21 = vld [vmem:[#allocation8 + $0x76c] sm:$0xf] }
 0x195   :  { %2884 = vmatpush.bf16.msra.mxu0 %v4895_v29  ;;  %2870 = vmatpush.bf16.msrb.mxu3 %v4767_v12  ;;  %v4543_v39 = vor.u32 %v5581_v33, %v4540_v54  ;;  %v5549_v29 = vld [vmem:[#allocation8 + $0x32c] sm:$0xf]  ;;  %v4396_v11 = vld [vmem:[#allocation8 + $0x318] sm:$0xf0]  ;;  %v4799_v33 = vor.u32 %v5645_v15, %v4796_v18 }
 0x196   :  { %2822 = vmatmul.bf16.vlgmr.msra.gmra.mxu3 %v6212_v42  ;;  %v5082_v42 = vld [vmem:[#allocation11 + $0x70] sm:$0xf]  ;;  %v4415_v3 = vor.u32 %v5549_v29, %v4412_v57  ;;  %v5701_v12 = vld [vmem:[#allocation8 + $0x7ec] sm:$0xf]  ;;  %v6276_v23 = vpop.f32.mrf.mxu3  ;;  %v4399_v24 = vor.u32 %v5545_v9, %v4396_v11  ;;  %v4652_v57 = vld [vmem:[#allocation8 + $0x518] sm:$0xf0] }
 0x197   :  { %2846 = vmatpush.bf16.msra.mxu1 %v4447_v35  ;;  %v5083_v63 = vor.u32 %v5719_v52, %v5082_v42  ;;  %v5023_v32 = vor.u32 %v5701_v12, %v5020_v14  ;;  %v5697_v54 = vld [vmem:[#allocation8 + $0x7cc] sm:$0xf]  ;;  %v5042_v11 = vld [vmem:[#allocation11 + $0x20] sm:$0xf] }
 0x198   :  { %2861 = vmatpush.bf16.msra.mxu2 %v4559_v26  ;;  %v5066_v26 = vld [vmem:[#allocation11 + $0x50] sm:$0xf]  ;;  %v5641_v35 = vld [vmem:[#allocation8 + $0x60c] sm:$0xf]  ;;  %v5007_v47 = vor.u32 %v5697_v54, %v5004_v34  ;;  %v5138_v14 = vld [vmem:[#allocation11 + $0xe0] sm:$0xf] }
 0x199   :  { %2885 = vmatpush.bf16.msra.mxu0 %v4879_v5  ;;  %2871 = vmatpush.bf16.msrb.mxu3 %v4751_v28  ;;  %v5717_v5 = vld [vmem:[#allocation11 + $0x64] sm:$0xf0]  ;;  %v5715_v28 = vld [vmem:[#allocation11 + $0x54] sm:$0xf0]  ;;  %v6278_v31 = vpop.f32.mrf.mxu0  ;;  %v5130_v54 = vld [vmem:[#allocation11 + $0xd0] sm:$0xf] }
 0x19a   :  { %v5075_v19 = vor.u32 %v5717_v5, %v5074_v4  ;;  %v5693_v52 = vld [vmem:[#allocation8 + $0x7ac] sm:$0xf] }
 0x19b   :  { %2847 = vmatpush.bf16.msra.mxu1 %v4431_v13  ;;  %v5609_v29 = vld [vmem:[#allocation8 + $0x50c] sm:$0xf] }
 0x19c   :  { %2862 = vmatpush.bf16.msra.mxu2 %v4543_v39  ;;  %v5067_v39 = vor.u32 %v5715_v28, %v5066_v26  ;;  %v4655_v1 = vor.u32 %v5609_v29, %v4652_v57  ;;  %v5733_v15 = vld [vmem:[#allocation11 + $0xe4] sm:$0xf0]  ;;  %v5114_v57 = vld [vmem:[#allocation11 + $0xb0] sm:$0xf] }
 0x19d   :  { %2886 = vmatpush.bf16.msra.mxu0 %v4863_v49  ;;  %2872 = vmatpush.bf16.msrb.mxu3 %v4735_v40  ;;  %v1176_v49 = vperm.slane %v6273_v2, 0  ;;  %v5613_v40 = vld [vmem:[#allocation8 + $0x52c] sm:$0xf]  ;;  %v5139_v26 = vor.u32 %v5733_v15, %v5138_v14 }
 0x19e   :  { %v5681_v34 = vld [vmem:[#allocation8 + $0x74c] sm:$0xf] }
 0x19f   :  { %2848 = vmatpush.bf16.msra.mxu1 %v4415_v3  ;;  %v2476_v37 = vadd.f32 %v6262_v22, %v1176_v49  ;;  %v2474_v43 = vadd.f32 %v6254_v48, %v1176_v49  ;;  %v4671_v22 = vor.u32 %v5613_v40, %v4668_v17  ;;  %v5689_v3 = vld [vmem:[#allocation8 + $0x78c] sm:$0xf]  ;;  %v4956_v49 = vld [vmem:[#allocation8 + $0x778] sm:$0xf0] }
 0x1a0   :  { %2863 = vmatpush.bf16.msra.mxu2 %v4527_v59  ;;  %v5050_v59 = vld [vmem:[#allocation11 + $0x30] sm:$0xf]  ;;  %v5705_v17 = vld [vmem:[#allocation11 + $0x4] sm:$0xf0] }
 0x1a1   :  { %2887 = vmatpush.bf16.msra.mxu0 %v4847_v36  ;;  %2873 = vmatpush.bf16.msrb.mxu3 %v4719_v60  ;;  %v4780_v36 = vld [vmem:[#allocation8 + $0x618] sm:$0xf0]  ;;  %v2490_v46 = vadd.f32 %v6265_v51, %v2476_v37  ;;  %v2488_v42 = vadd.f32 %v6257_v10, %v2474_v43  ;;  %v2545_v60 = vpop.f32.mrf.mxu3  ;;  %v5146_v51 = vld [vmem:[#allocation11 + $0xf0] sm:$0xf]  ;;  %v2559_v5 = vpop.f32.mrf.mxu0  ;;  %v5122_v43 = vld [vmem:[#allocation11 + $0xc0] sm:$0xf] }
 0x1a2   :  { %v4783_v13 = vor.u32 %v5641_v35, %v4780_v36  ;;  %v5147_v9 = vor.u32 %v5735_v62, %v5146_v51  ;;  %v4940_v35 = vld [vmem:[#allocation8 + $0x758] sm:$0xf0]  ;;  %v5716_v51 = vld [vmem:[#allocation11 + $0x64] sm:$0xf]  ;;  %v5076_v62 = vld [vmem:[#allocation11 + $0x68] sm:$0xf0] }
 0x1a3   :  { %2864 = vmatmul.bf16.vlgmr.msra.gmra.mxu2 %v6224_v56  ;;  %2849 = vmatpush.bf16.msra.mxu1 %v4399_v24  ;;  %v5058_v56 = vld [vmem:[#allocation11 + $0x40] sm:$0xf]  ;;  %v2502_v0 = vadd.f32 %v6259_v16, %v2488_v42  ;;  %v6290_v16 = vpop.f32.mrf.mxu2  ;;  %v5677_v42 = vld [vmem:[#allocation8 + $0x72c] sm:$0xf] }
 0x1a4   :  { %3314 = vmatpush.bf16.msrb.mxu2 %v5083_v63  ;;  %v5059_v48 = vor.u32 %v5713_v41, %v5058_v56  ;;  %v2504_v63 = vadd.f32 %v6267_v53, %v2490_v46  ;;  %v2571_v53 = vpop.f32.mrf.mxu1  ;;  %v4943_v46 = vor.u32 %v5681_v34, %v4940_v35  ;;  %v5052_v35 = vld [vmem:[#allocation11 + $0x38] sm:$0xf0] }
 0x1a5   :  { %2888 = vmatpush.bf16.msra.mxu0 %v4831_v25  ;;  %2874 = vmatpush.bf16.msrb.mxu3 %v4703_v6  ;;  %v4988_v25 = vld [vmem:[#allocation8 + $0x7b8] sm:$0xf0]  ;;  %v2516_v12 = vadd.f32 %v6271_v58, %v2502_v0  ;;  %v5709_v6 = vld [vmem:[#allocation11 + $0x24] sm:$0xf0] }
 0x1a6   :  { %2850 = vmatmul.bf16.vlgmr.msra.gmra.mxu1 %v6219_v44  ;;  %v4991_v10 = vor.u32 %v5693_v52, %v4988_v25  ;;  %v4972_v44 = vld [vmem:[#allocation8 + $0x798] sm:$0xf0]  ;;  %v2518_v4 = vadd.f32 %v2517_v45, %v2504_v63  ;;  %v5043_v58 = vor.u32 %v5709_v6, %v5042_v11  ;;  %v5729_v45 = vld [vmem:[#allocation11 + $0xc4] sm:$0xf0]  ;;  %v1177_v63 = vperm.slane %v6273_v2, 1 }
 0x1a7   :  { %2898 = vmatpush.bf16.msrb.mxu1 %v5023_v32  ;;  %v2530_v20 = vadd.f32 %v6269_v55, %v2516_v12  ;;  %v4959_v55 = vor.u32 %v5685_v21, %v4956_v49  ;;  %v5673_v0 = vld [vmem:[#allocation8 + $0x70c] sm:$0xf]  ;;  %v5714_v12 = vld [vmem:[#allocation11 + $0x54] sm:$0xf]  ;;  %v5098_v21 = vld [vmem:[#allocation11 + $0x90] sm:$0xf] }
 0x1a8   :  { %3315 = vmatpush.bf16.msrb.mxu2 %v5075_v19  ;;  %v2532_v18 = vadd.f32 %v2531_v38, %v2518_v4  ;;  %v4975_v19 = vor.u32 %v5689_v3, %v4972_v44  ;;  %v5079_v4 = vor.u32 %v5716_v51, %v5076_v62  ;;  %v2586_v6 = vadd.f32 %v6290_v16, %v1177_v63  ;;  %v5723_v49 = vld [vmem:[#allocation11 + $0x94] sm:$0xf0]  ;;  %v5730_v62 = vld [vmem:[#allocation11 + $0xd4] sm:$0xf] }
 0x1a9   :  { %2889 = vmatpush.bf16.msra.mxu0 %v4815_v8  ;;  %2875 = vmatpush.bf16.msrb.mxu3 %v4687_v50  ;;  %v5051_v8 = vor.u32 %v5711_v61, %v5050_v59  ;;  %v2544_v28 = vadd.f32 %v6276_v23, %v2530_v20  ;;  %v6294_v32 = vpop.f32.mrf.mxu3  ;;  %v5731_v50 = vld [vmem:[#allocation11 + $0xd4] sm:$0xf0]  ;;  %v2613_v56 = vpop.f32.mrf.mxu0  ;;  %v5099_v16 = vor.u32 %v5723_v49, %v5098_v21 }
 0x1aa   :  { %v2546_v24 = vadd.f32 %v2545_v60, %v2532_v18  ;;  %v5131_v38 = vor.u32 %v5731_v50, %v5130_v54  ;;  %v5727_v59 = vld [vmem:[#allocation11 + $0xb4] sm:$0xf0]  ;;  %v5090_v50 = vld [vmem:[#allocation11 + $0x80] sm:$0xf] }
 0x1ab   :  { %2899 = vmatpush.bf16.msrb.mxu1 %v5007_v47  ;;  %v2558_v40 = vadd.f32 %v6278_v31, %v2544_v28  ;;  %v5084_v47 = vld [vmem:[#allocation11 + $0x78] sm:$0xf0]  ;;  %v2587_v52 = vpop.f32.mrf.mxu2  ;;  %v5115_v3 = vor.u32 %v5727_v59, %v5114_v57  ;;  %v5706_v57 = vld [vmem:[#allocation11 + $0x14] sm:$0xf] }
 0x1ac   :  { %3316 = vmatpush.bf16.msrb.mxu2 %v5067_v39  ;;  %v2560_v36 = vadd.f32 %v2559_v5, %v2546_v24  ;;  %v5026_v39 = vld [vmem:[#allocation11] sm:$0xf]  ;;  %v2573_v23 = vpop.f32.mrf.mxu1  ;;  %v2588_v18 = vadd.f32 %v2587_v52, %v1177_v63  ;;  %v5036_v59 = vld [vmem:[#allocation11 + $0x18] sm:$0xf0] }
 0x1ad   :  { %2890 = vmatpush.bf16.msra.mxu0 %v4799_v33  ;;  %2876 = vmatpush.bf16.msrb.mxu3 %v4671_v22  ;;  %v5707_v33 = vld [vmem:[#allocation11 + $0x14] sm:$0xf0]  ;;  %v5027_v25 = vor.u32 %v5705_v17, %v5026_v39  ;;  %v5106_v5 = vld [vmem:[#allocation11 + $0xa0] sm:$0xf]  ;;  %v5132_v63 = vld [vmem:[#allocation11 + $0xd8] sm:$0xf0] }
 0x1ae   :  { %v2574_v41 = vadd.f32 %v2573_v23, %v2560_v36  ;;  %v4924_v22 = vld [vmem:[#allocation8 + $0x738] sm:$0xf0]  ;;  %v5734_v36 = vld [vmem:[#allocation11 + $0xf4] sm:$0xf]  ;;  %v5210_v23 = vld [vmem:[#allocation11 + $0x170] sm:$0xf] }
 0x1af   :  { %2900 = vmatpush.bf16.msrb.mxu1 %v4991_v10  ;;  %v4927_v61 = vor.u32 %v5677_v42, %v4924_v22  ;;  %v5751_v17 = vld [vmem:[#allocation11 + $0x174] sm:$0xf0] }
 0x1b0   :  { %3317 = vmatpush.bf16.msrb.mxu2 %v5059_v48  ;;  %v5123_v48 = vor.u32 %v5729_v45, %v5122_v43  ;;  %v2916_v29 = vmax.f32 %v2574_v41, 0.0  ;;  %v5044_v41 = vld [vmem:[#allocation11 + $0x28] sm:$0xf0] }
 0x1b1   :  { %2891 = vmatpush.bf16.msra.mxu0 %v4783_v13  ;;  %2877 = vmatpush.bf16.msrb.mxu3 %v4655_v1  ;;  %v2572_v13 = vadd.f32 %v2571_v53, %v2558_v40  ;;  %v2601_v60 = vpop.f32.mrf.mxu3  ;;  %v4908_v1 = vld [vmem:[#allocation8 + $0x718] sm:$0xf0]  ;;  %v5068_v53 = vld [vmem:[#allocation11 + $0x58] sm:$0xf0]  ;;  %v2615_v14 = vpop.f32.mrf.mxu0 }
 0x1b2   :  { %v4911_v11 = vor.u32 %v5673_v0, %v4908_v1  ;;  %v5071_v20 = vor.u32 %v5714_v12, %v5068_v53  ;;  %v5039_v0 = vor.u32 %v5706_v57, %v5036_v59  ;;  %v5704_v1 = vld [vmem:[#allocation11 + $0x4] sm:$0xf]  ;;  %v5124_v12 = vld [vmem:[#allocation11 + $0xc8] sm:$0xf0]  ;;  %v5746_v59 = vld [vmem:[#allocation11 + $0x154] sm:$0xf] }
 0x1b3   :  { %2901 = vmatpush.bf16.msrb.mxu1 %v4975_v19  ;;  %v2912_v10 = vmax.f32 %v2572_v13, 0.0  ;;  %v2600_v19 = vadd.f32 %v6294_v32, %v2586_v6  ;;  %v2641_v24 = vpop.f32.mrf.mxu2  ;;  %v5710_v32 = vld [vmem:[#allocation11 + $0x34] sm:$0xf]  ;;  %v5140_v13 = vld [vmem:[#allocation11 + $0xe8] sm:$0xf0] }
 0x1b4   :  { %2892 = vmatmul.bf16.vlgmr.msra.gmra.mxu0 %v6228_v7  ;;  %3318 = vmatpush.bf16.msrb.mxu2 %v5051_v8  ;;  %v5034_v7 = vld [vmem:[#allocation11 + $0x10] sm:$0xf]  ;;  %v5725_v8 = vld [vmem:[#allocation11 + $0xa4] sm:$0xf0]  ;;  %v5055_v45 = vor.u32 %v5710_v32, %v5052_v35  ;;  %v5724_v35 = vld [vmem:[#allocation11 + $0xa4] sm:$0xf] }
 0x1b5   :  { %3328 = vmatpush.bf16.msra.mxu3 %v5147_v9  ;;  %v5035_v37 = vor.u32 %v5707_v33, %v5034_v7  ;;  %v6299_v44 = vpack.c.bf16 %v2916_v29, %v2912_v10  ;;  %v2627_v9 = vpop.f32.mrf.mxu1  ;;  %v5107_v15 = vor.u32 %v5725_v8, %v5106_v5  ;;  %v2602_v7 = vadd.f32 %v2601_v60, %v2588_v18 }
 0x1b6   :  { %2878 = vmatmul.bf16.vlgmr.msrb.gmra.mxu3 %v6231_v27  ;;  %v5718_v27 = vld [vmem:[#allocation11 + $0x74] sm:$0xf]  ;;  %v2614_v33 = vadd.f32 %v2613_v56, %v2600_v19  ;;  %v5135_v8 = vor.u32 %v5730_v62, %v5132_v63  ;;  %v5186_v19 = vld [vmem:[#allocation11 + $0x140] sm:$0xf]  ;;  %v5188_v62 = vld [vmem:[#allocation11 + $0x148] sm:$0xf0] }
 0x1b7   :  { %2902 = vmatpush.bf16.msrb.mxu1 %v4959_v55  ;;  %v5087_v31 = vor.u32 %v5718_v27, %v5084_v47  ;;  %v5721_v55 = vld [vmem:[#allocation11 + $0x84] sm:$0xf0]  ;;  %v2616_v39 = vadd.f32 %v2615_v14, %v2602_v7  ;;  %v5732_v47 = vld [vmem:[#allocation11 + $0xe4] sm:$0xf]  ;;  %v5726_v7 = vld [vmem:[#allocation11 + $0xb4] sm:$0xf] }
 0x1b8   :  { %3319 = vmatpush.bf16.msrb.mxu2 %v5043_v58  ;;  %v5712_v58 = vld [vmem:[#allocation11 + $0x44] sm:$0xf]  ;;  %v5091_v40 = vor.u32 %v5721_v55, %v5090_v50 }
 0x1b9   :  { %3329 = vmatpush.bf16.msra.mxu3 %v5139_v26  ;;  %v5060_v26 = vld [vmem:[#allocation11 + $0x48] sm:$0xf0]  ;;  %v2655_v28 = vpop.f32.mrf.mxu3  ;;  %v2669_v27 = vpop.f32.mrf.mxu0 }
 0x1ba   :  { %v5063_v54 = vor.u32 %v5712_v58, %v5060_v26 }
 0x1bb   :  { %2903 = vmatpush.bf16.msrb.mxu1 %v4943_v46  ;;  %v5211_v46 = vor.u32 %v5751_v17, %v5210_v23  ;;  %v2643_v22 = vpop.f32.mrf.mxu2  ;;  %v5739_v23 = vld [vmem:[#allocation11 + $0x114] sm:$0xf0] }
 0x1bc   :  { %3320 = vmatpush.bf16.msrb.mxu2 %v5035_v37  ;;  %v5148_v37 = vld [vmem:[#allocation11 + $0xf8] sm:$0xf0] }
 0x1bd   :  { %3330 = vmatpush.bf16.msra.mxu3 %v5131_v38  ;;  %v2629_v34 = vpop.f32.mrf.mxu1  ;;  %v2628_v38 = vadd.f32 %v2627_v9, %v2614_v33  ;;  %v5151_v56 = vor.u32 %v5734_v36, %v5148_v37  ;;  %3342 = vmatpush.bf16.msrb.mxu0 %v5211_v46  ;;  %v5028_v9 = vld [vmem:[#allocation11 + $0x8] sm:$0xf0]  ;;  %v5743_v33 = vld [vmem:[#allocation11 + $0x134] sm:$0xf0]  ;;  %v5170_v37 = vld [vmem:[#allocation11 + $0x120] sm:$0xf] }
 0x1be   :  { %v2630_v43 = vadd.f32 %v2629_v34, %v2616_v39  ;;  %v5108_v36 = vld [vmem:[#allocation11 + $0xa8] sm:$0xf0]  ;;  %v5162_v39 = vld [vmem:[#allocation11 + $0x110] sm:$0xf] }
 0x1bf   :  { %2904 = vmatpush.bf16.msrb.mxu1 %v4927_v61  ;;  %v2642_v42 = vadd.f32 %v2641_v24, %v2628_v38  ;;  %v5741_v38 = vld [vmem:[#allocation11 + $0x124] sm:$0xf0]  ;;  %v5111_v17 = vor.u32 %v5724_v35, %v5108_v36  ;;  %v5092_v46 = vld [vmem:[#allocation11 + $0x88] sm:$0xf0] }
 0x1c0   :  { %3321 = vmatpush.bf16.msrb.mxu2 %v5027_v25  ;;  %v5202_v25 = vld [vmem:[#allocation11 + $0x160] sm:$0xf]  ;;  %v2644_v29 = vadd.f32 %v2643_v22, %v2630_v43  ;;  %v5722_v43 = vld [vmem:[#allocation11 + $0x94] sm:$0xf] }
 0x1c1   :  { %3331 = vmatpush.bf16.msra.mxu3 %v5123_v48  ;;  %v5749_v48 = vld [vmem:[#allocation11 + $0x164] sm:$0xf0]  ;;  %v2657_v61 = vpop.f32.mrf.mxu3  ;;  %v2656_v10 = vadd.f32 %v2655_v28, %v2642_v42  ;;  %v2671_v14 = vpop.f32.mrf.mxu0  ;;  %v5116_v28 = vld [vmem:[#allocation11 + $0xb8] sm:$0xf0] }
 0x1c2   :  { %v5203_v60 = vor.u32 %v5749_v48, %v5202_v25  ;;  %v2658_v5 = vadd.f32 %v2657_v61, %v2644_v29  ;;  %v5119_v32 = vor.u32 %v5726_v7, %v5116_v28  ;;  %v5212_v42 = vld [vmem:[#allocation11 + $0x178] sm:$0xf0]  ;;  %v5748_v25 = vld [vmem:[#allocation11 + $0x164] sm:$0xf]  ;;  %v5204_v48 = vld [vmem:[#allocation11 + $0x168] sm:$0xf0] }
 0x1c3   :  { %3322 = vmatmul.bf16.vlgmr.msrb.gmra.mxu2 %v6299_v44  ;;  %2905 = vmatpush.bf16.msrb.mxu1 %v4911_v11  ;;  %v5728_v11 = vld [vmem:[#allocation11 + $0xc4] sm:$0xf]  ;;  %v2670_v6 = vadd.f32 %v2669_v27, %v2656_v10  ;;  %v5154_v27 = vld [vmem:[#allocation11 + $0x100] sm:$0xf] }
 0x1c4   :  { %3370 = vmatpush.bf16.msra.mxu2 %v5087_v31  ;;  %v5143_v31 = vor.u32 %v5732_v47, %v5140_v13  ;;  %3343 = vmatpush.bf16.msrb.mxu0 %v5203_v60  ;;  %v5127_v18 = vor.u32 %v5728_v11, %v5124_v12  ;;  %v2672_v49 = vadd.f32 %v2671_v14, %v2658_v5  ;;  %v5737_v47 = vld [vmem:[#allocation11 + $0x104] sm:$0xf0]  ;;  %v5750_v13 = vld [vmem:[#allocation11 + $0x174] sm:$0xf]  ;;  %v5196_v60 = vld [vmem:[#allocation11 + $0x158] sm:$0xf0] }
 0x1c5   :  { %3332 = vmatpush.bf16.msra.mxu3 %v5115_v3  ;;  %v2683_v51 = vpop.f32.mrf.mxu1  ;;  %v5194_v3 = vld [vmem:[#allocation11 + $0x150] sm:$0xf]  ;;  %v5199_v61 = vor.u32 %v5746_v59, %v5196_v60  ;;  %v5740_v11 = vld [vmem:[#allocation11 + $0x124] sm:$0xf]  ;;  %v5172_v12 = vld [vmem:[#allocation11 + $0x128] sm:$0xf0] }
 0x1c6   :  { %2906 = vmatmul.bf16.vlgmr.msrb.gmra.mxu1 %v6237_v30  ;;  %v5708_v30 = vld [vmem:[#allocation11 + $0x24] sm:$0xf]  ;;  %v2684_v21 = vadd.f32 %v2683_v51, %v2670_v6  ;;  %v2697_v29 = vpop.f32.mrf.mxu2  ;;  %v5175_v6 = vor.u32 %v5740_v11, %v5172_v12  ;;  %v5164_v14 = vld [vmem:[#allocation11 + $0x118] sm:$0xf0] }
 0x1c7   :  { %v5047_v52 = vor.u32 %v5708_v30, %v5044_v41  ;;  %v5720_v41 = vld [vmem:[#allocation11 + $0x84] sm:$0xf]  ;;  %v5276_v11 = vld [vmem:[#allocation11 + $0x1f8] sm:$0xf0] }
 0x1c8   :  { %3371 = vmatpush.bf16.msra.mxu2 %v5079_v4  ;;  %v5747_v4 = vld [vmem:[#allocation11 + $0x154] sm:$0xf0]  ;;  %v5095_v22 = vor.u32 %v5720_v41, %v5092_v46  ;;  %v5744_v51 = vld [vmem:[#allocation11 + $0x144] sm:$0xf] }
 0x1c9   :  { %3333 = vmatpush.bf16.msra.mxu3 %v5107_v15  ;;  %v5195_v53 = vor.u32 %v5747_v4, %v5194_v3  ;;  %v5031_v15 = vor.u32 %v5704_v1, %v5028_v9  ;;  %v5191_v10 = vor.u32 %v5744_v51, %v5188_v62  ;;  %v5742_v1 = vld [vmem:[#allocation11 + $0x134] sm:$0xf]  ;;  %v5180_v3 = vld [vmem:[#allocation11 + $0x138] sm:$0xf0]  ;;  %v1178_v9 = vperm.slane %v6273_v2, 2 }
 0x1ca   :  { %v5736_v28 = vld [vmem:[#allocation11 + $0x104] sm:$0xf]  ;;  %v5763_v41 = vld [vmem:[#allocation11 + $0x1d4] sm:$0xf0]  ;;  %v5234_v62 = vld [vmem:[#allocation11 + $0x1a0] sm:$0xf] }
 0x1cb   :  { %3344 = vmatpush.bf16.msrb.mxu0 %v5195_v53  ;;  %v5738_v53 = vld [vmem:[#allocation11 + $0x114] sm:$0xf] }
 0x1cc   :  { %3372 = vmatpush.bf16.msra.mxu2 %v5071_v20  ;;  %v5745_v20 = vld [vmem:[#allocation11 + $0x144] sm:$0xf0] }
 0x1cd   :  { %3334 = vmatpush.bf16.msra.mxu3 %v5099_v16  ;;  %v5187_v24 = vor.u32 %v5745_v20, %v5186_v19  ;;  %v2685_v58 = vpop.f32.mrf.mxu1  ;;  %v5178_v16 = vld [vmem:[#allocation11 + $0x130] sm:$0xf]  ;;  %v5167_v20 = vor.u32 %v5738_v53, %v5164_v14  ;;  %v5764_v53 = vld [vmem:[#allocation11 + $0x1e4] sm:$0xf] }
 0x1ce   :  { %v2686_v26 = vadd.f32 %v2685_v58, %v2672_v49  ;;  %v5179_v55 = vor.u32 %v5743_v33, %v5178_v16  ;;  %v5156_v16 = vld [vmem:[#allocation11 + $0x108] sm:$0xf0] }
 0x1cf   :  { %3345 = vmatpush.bf16.msrb.mxu0 %v5187_v24  ;;  %v5159_v33 = vor.u32 %v5736_v28, %v5156_v16  ;;  %v5758_v28 = vld [vmem:[#allocation11 + $0x1b4] sm:$0xf]  ;;  %v5244_v16 = vld [vmem:[#allocation11 + $0x1b8] sm:$0xf0] }
 0x1d0   :  { %3373 = vmatpush.bf16.msra.mxu2 %v5063_v54  ;;  %v2913_v54 = vmax.f32 %v2684_v21, 0.0  ;;  %v2917_v50 = vmax.f32 %v2686_v26, 0.0 }
 0x1d1   :  { %3335 = vmatpush.bf16.msra.mxu3 %v5091_v40  ;;  %v5171_v40 = vor.u32 %v5741_v38, %v5170_v37  ;;  %v2725_v63 = vpop.f32.mrf.mxu0  ;;  %v5266_v38 = vld [vmem:[#allocation11 + $0x1e0] sm:$0xf] }
 0x1d2   :  { %v2921_v34 = vpack.c.bf16 %v2917_v50, %v2913_v54  ;;  %v5274_v54 = vld [vmem:[#allocation11 + $0x1f0] sm:$0xf]  ;;  %v5767_v50 = vld [vmem:[#allocation11 + $0x1f4] sm:$0xf0] }
 0x1d3   :  { %3346 = vmatpush.bf16.msrb.mxu0 %v5179_v55 }
 0x1d4   :  { %3374 = vmatpush.bf16.msra.mxu2 %v5055_v45  ;;  %3336 = vmatmul.bf16.vlgmr.msra.gmra.mxu3 %v2921_v34  ;;  %v5100_v45 = vld [vmem:[#allocation11 + $0x98] sm:$0xf0] }
 0x1d5   :  { %3384 = vmatpush.bf16.msrb.mxu3 %v5151_v56  ;;  %v5163_v56 = vor.u32 %v5739_v23, %v5162_v39  ;;  %v5103_v30 = vor.u32 %v5722_v43, %v5100_v45  ;;  %v5765_v39 = vld [vmem:[#allocation11 + $0x1e4] sm:$0xf0] }
 0x1d6   :  { %v5267_v23 = vor.u32 %v5765_v39, %v5266_v38 }
 0x1d7   :  { %3347 = vmatpush.bf16.msrb.mxu0 %v5171_v40 }
 0x1d8   :  { %3375 = vmatpush.bf16.msra.mxu2 %v5047_v52  ;;  %v5215_v52 = vor.u32 %v5750_v13, %v5212_v42  ;;  %v5250_v13 = vld [vmem:[#allocation11 + $0x1c0] sm:$0xf]  ;;  %v5761_v42 = vld [vmem:[#allocation11 + $0x1c4] sm:$0xf0] }
 0x1d9   :  { %3385 = vmatpush.bf16.msrb.mxu3 %v5143_v31  ;;  %v5207_v31 = vor.u32 %v5748_v25, %v5204_v48  ;;  %v2711_v57 = vpop.f32.mrf.mxu3  ;;  %v5251_v25 = vor.u32 %v5761_v42, %v5250_v13 }
 0x1db   :  { %3348 = vmatpush.bf16.msrb.mxu0 %v5163_v56 }
 0x1dc   :  { %3376 = vmatpush.bf16.msra.mxu2 %v5039_v0  ;;  %v2699_v0 = vpop.f32.mrf.mxu2 }
 0x1dd   :  { %3386 = vmatpush.bf16.msrb.mxu3 %v5135_v8  ;;  %v5183_v8 = vor.u32 %v5742_v1, %v5180_v3  ;;  %v2700_v21 = vadd.f32 %v2699_v0, %v1178_v9  ;;  %v5755_v1 = vld [vmem:[#allocation11 + $0x194] sm:$0xf0] }
 0x1e0   :  { %3377 = vmatpush.bf16.msra.mxu2 %v5031_v15  ;;  %v2698_v15 = vadd.f32 %v2697_v29, %v1178_v9  ;;  %v5766_v9 = vld [vmem:[#allocation11 + $0x1f4] sm:$0xf] }
 0x1e1   :  { %3387 = vmatpush.bf16.msrb.mxu3 %v5127_v18  ;;  %v2713_v4 = vpop.f32.mrf.mxu3  ;;  %v2727_v18 = vpop.f32.mrf.mxu0  ;;  %v5279_v12 = vor.u32 %v5766_v9, %v5276_v11  ;;  %v5771_v9 = vld [vmem:[#allocation13 + $0x18] sm:$0xff] }
 0x1e2   :  { %v2712_v49 = vadd.f32 %v2711_v57, %v2698_v15  ;;  %v2714_v58 = vadd.f32 %v2713_v4, %v2700_v21  ;;  %v5759_v57 = vld [vmem:[#allocation11 + $0x1b4] sm:$0xf0]  ;;  %v5218_v4 = vld [vmem:[#allocation11 + $0x180] sm:$0xf] }
 0x1e3   :  { %3378 = vmatmul.bf16.vlgmr.msra.gmra.mxu2 %v6299_v44  ;;  %v5155_v44 = vor.u32 %v5737_v47, %v5154_v27  ;;  %v2739_v5 = vpop.f32.mrf.mxu1  ;;  %v5783_v11 = vld [vmem:[#allocation13 + $0x78] sm:$0xff] }
 0x1e4   :  { %v2726_v7 = vadd.f32 %v2725_v63, %v2712_v49  ;;  %v5757_v63 = vld [vmem:[#allocation11 + $0x1a4] sm:$0xf0]  ;;  %v5760_v49 = vld [vmem:[#allocation11 + $0x1c4] sm:$0xf] }
 0x1e5   :  { %3388 = vmatpush.bf16.msrb.mxu3 %v5119_v32  ;;  %3349 = vmatpush.bf16.msrb.mxu0 %v5155_v44  ;;  %v2728_v32 = vadd.f32 %v2727_v18, %v2714_v58  ;;  %v5235_v0 = vor.u32 %v5757_v63, %v5234_v62 }
 0x1e6   :  { %v2753_v19 = vpop.f32.mrf.mxu2  ;;  %v2740_v55 = vadd.f32 %v2739_v5, %v2726_v7  ;;  %v5753_v5 = vld [vmem:[#allocation11 + $0x184] sm:$0xf0] }
 0x1e8   :  { %v2754_v40 = vadd.f32 %v2753_v19, %v2740_v55  ;;  %v5762_v19 = vld [vmem:[#allocation11 + $0x1d4] sm:$0xf]  ;;  %v1179_v55 = vperm.slane %v6273_v2, 3 }
 0x1e9   :  { %3389 = vmatpush.bf16.msrb.mxu3 %v5111_v17  ;;  %3398 = vmatpush.bf16.msra.mxu0 %v5215_v52 }
 0x1eb   :  { %v2741_v26 = vpop.f32.mrf.mxu1 }
 0x1ec   :  { %v2742_v36 = vadd.f32 %v2741_v26, %v2728_v32  ;;  %v5756_v32 = vld [vmem:[#allocation11 + $0x1a4] sm:$0xf] }
 0x1ed   :  { %3390 = vmatpush.bf16.msrb.mxu3 %v5103_v30  ;;  %3399 = vmatpush.bf16.msra.mxu0 %v5207_v31  ;;  %v5258_v30 = vld [vmem:[#allocation11 + $0x1d0] sm:$0xf] }
 0x1ee   :  { %v2755_v37 = vpop.f32.mrf.mxu2  ;;  %v5259_v27 = vor.u32 %v5763_v41, %v5258_v30  ;;  %v5242_v31 = vld [vmem:[#allocation11 + $0x1b0] sm:$0xf] }
 0x1ef   :  { %v2756_v45 = vadd.f32 %v2755_v37, %v2742_v36  ;;  %v5754_v36 = vld [vmem:[#allocation11 + $0x194] sm:$0xf]  ;;  %v5228_v37 = vld [vmem:[#allocation11 + $0x198] sm:$0xf0] }
 0x1f1   :  { %3391 = vmatpush.bf16.msrb.mxu3 %v5095_v22  ;;  %3400 = vmatpush.bf16.msra.mxu0 %v5199_v61  ;;  %v2781_v35 = vpop.f32.mrf.mxu0  ;;  %v5243_v61 = vor.u32 %v5759_v57, %v5242_v31 }
 0x1f4   :  { %3392 = vmatmul.bf16.vlgmr.msrb.gmra.mxu3 %v2921_v34  ;;  %v5275_v34 = vor.u32 %v5767_v50, %v5274_v54  ;;  %v5247_v50 = vor.u32 %v5758_v28, %v5244_v16 }
 0x1f5   :  { %3401 = vmatpush.bf16.msra.mxu0 %v5191_v10  ;;  %v5226_v10 = vld [vmem:[#allocation11 + $0x190] sm:$0xf]  ;;  %3578 = vmatpush.bf16.msra.mxu3 %v5783_v11 }
 0x1f6   :  { %3356 = vmatpush.bf16.msra.mxu1 %v5275_v34  ;;  %v5227_v3 = vor.u32 %v5755_v1, %v5226_v10  ;;  %v5236_v34 = vld [vmem:[#allocation11 + $0x1a8] sm:$0xf0] }
 0x1f9   :  { %3402 = vmatpush.bf16.msra.mxu0 %v5183_v8  ;;  %v2767_v24 = vpop.f32.mrf.mxu3  ;;  %v2783_v44 = vpop.f32.mrf.mxu0  ;;  %v5219_v8 = vor.u32 %v5753_v5, %v5218_v4  ;;  %v5774_v4 = vld [vmem:[#allocation13 + $0x30] sm:$0xff]  ;;  %v5773_v5 = vld [vmem:[#allocation13 + $0x28] sm:$0xff] }
 0x1fa   :  { %v2768_v56 = vadd.f32 %v2767_v24, %v2754_v40  ;;  %3357 = vmatpush.bf16.msra.mxu1 %v5267_v23  ;;  %v5252_v24 = vld [vmem:[#allocation11 + $0x1c8] sm:$0xf0]  ;;  %v5231_v23 = vor.u32 %v5754_v36, %v5228_v37 }
 0x1fb   :  { %v5255_v26 = vor.u32 %v5760_v49, %v5252_v24 }
 0x1fc   :  { %v2782_v47 = vadd.f32 %v2781_v35, %v2768_v56  ;;  %v5239_v35 = vor.u32 %v5756_v32, %v5236_v34  ;;  %v5220_v56 = vld [vmem:[#allocation11 + $0x188] sm:$0xf0] }
 0x1fd   :  { %3403 = vmatpush.bf16.msra.mxu0 %v5175_v6  ;;  %v5268_v6 = vld [vmem:[#allocation11 + $0x1e8] sm:$0xf0] }
 0x1fe   :  { %3358 = vmatpush.bf16.msra.mxu1 %v5259_v27  ;;  %v5271_v15 = vor.u32 %v5764_v53, %v5268_v6  ;;  %v5782_v53 = vld [vmem:[#allocation13 + $0x70] sm:$0xff]  ;;  %v5769_v6 = vld [vmem:[#allocation13 + $0x8] sm:$0xff] }
 0x1ff   :  { %3579 = vmatpush.bf16.msra.mxu3 %v5782_v53 }
 0x201   :  { %3404 = vmatpush.bf16.msra.mxu0 %v5167_v20  ;;  %v2769_v17 = vpop.f32.mrf.mxu3  ;;  %v5260_v20 = vld [vmem:[#allocation11 + $0x1d8] sm:$0xf0] }
 0x202   :  { %v2770_v46 = vadd.f32 %v2769_v17, %v2756_v45  ;;  %3359 = vmatpush.bf16.msra.mxu1 %v5251_v25  ;;  %v5263_v21 = vor.u32 %v5762_v19, %v5260_v20  ;;  %v5752_v45 = vld [vmem:[#allocation11 + $0x184] sm:$0xf]  ;;  %v5779_v19 = vld [vmem:[#allocation13 + $0x58] sm:$0xff]  ;;  %v5778_v20 = vld [vmem:[#allocation13 + $0x50] sm:$0xff] }
 0x203   :  { %v2795_v43 = vpop.f32.mrf.mxu1  ;;  %v5223_v2 = vor.u32 %v5752_v45, %v5220_v56 }
 0x204   :  { %v2796_v22 = vadd.f32 %v2795_v43, %v2782_v47  ;;  %v2784_v52 = vadd.f32 %v2783_v44, %v2770_v46 }
 0x205   :  { %3405 = vmatpush.bf16.msra.mxu0 %v5159_v33 }
 0x206   :  { %v2914_v59 = vmax.f32 %v2796_v22, 0.0  ;;  %3360 = vmatpush.bf16.msra.mxu1 %v5243_v61  ;;  %v2809_v14 = vpop.f32.mrf.mxu2 }
 0x207   :  { %v2810_v38 = vadd.f32 %v2809_v14, %v1179_v55  ;;  %v5781_v14 = vld [vmem:[#allocation13 + $0x68] sm:$0xff] }
 0x208   :  { %3580 = vmatpush.bf16.msra.mxu3 %v5781_v14 }
 0x20a   :  { %3361 = vmatpush.bf16.msra.mxu1 %v5235_v0 }
 0x20b   :  { %v2797_v48 = vpop.f32.mrf.mxu1 }
 0x20c   :  { %v2798_v29 = vadd.f32 %v2797_v48, %v2784_v52 }
 0x20e   :  { %v2918_v60 = vmax.f32 %v2798_v29, 0.0  ;;  %3362 = vmatpush.bf16.msra.mxu1 %v5227_v3  ;;  %v2811_v7 = vpop.f32.mrf.mxu2  ;;  %v5775_v3 = vld [vmem:[#allocation13 + $0x38] sm:$0xff] }
 0x20f   :  { %v2812_v17 = vadd.f32 %v2811_v7, %v1179_v55  ;;  %3564 = vmatpush.bf16.msrb.mxu2 %v5775_v3  ;;  %v5776_v7 = vld [vmem:[#allocation13 + $0x40] sm:$0xff] }
 0x210   :  { %v2922_v51 = vpack.c.bf16 %v2918_v60, %v2914_v59  ;;  %v5784_v3 = vld [vmem:[#allocation14] sm:$0xff] }
 0x211   :  { %v2837_v58 = vpop.f32.mrf.mxu0 }
 0x212   :  { %3350 = vmatmul.bf16.vlgmr.msrb.gmra.mxu0 %v2922_v51  ;;  %3363 = vmatpush.bf16.msra.mxu1 %v5219_v8  ;;  %v5772_v8 = vld [vmem:[#allocation13 + $0x20] sm:$0xff] }
 0x213   :  { %3565 = vmatpush.bf16.msrb.mxu2 %v5774_v4 }
 0x216   :  { %3412 = vmatpush.bf16.msrb.mxu1 %v5279_v12  ;;  %v5770_v12 = vld [vmem:[#allocation13 + $0x10] sm:$0xff] }
 0x217   :  { %3566 = vmatpush.bf16.msrb.mxu2 %v5773_v5 }
 0x219   :  { %v2823_v18 = vpop.f32.mrf.mxu3  ;;  %v2839_v39 = vpop.f32.mrf.mxu0 }
 0x21a   :  { %3413 = vmatpush.bf16.msrb.mxu1 %v5271_v15  ;;  %v2824_v43 = vadd.f32 %v2823_v18, %v2810_v38  ;;  %v5768_v15 = vld [vmem:[#allocation13] sm:$0xff] }
 0x21b   :  { %3567 = vmatpush.bf16.msrb.mxu2 %v5772_v8  ;;  %v5780_v18 = vld [vmem:[#allocation13 + $0x60] sm:$0xff]  ;;  %v5814_v8 = vld [vmem:[%s6331_s8] ss:$0 sm:$0xff] }
 0x21c   :  { %v2838_v27 = vadd.f32 %v2837_v58, %v2824_v43  ;;  %3581 = vmatpush.bf16.msra.mxu3 %v5780_v18  ;;  %v5777_v58 = vld [vmem:[#allocation13 + $0x48] sm:$0xff] }
 0x21e   :  { %3414 = vmatpush.bf16.msrb.mxu1 %v5263_v21 }
 0x21f   :  { %3568 = vmatpush.bf16.msrb.mxu2 %v5771_v9 }
 0x220   :  { %3582 = vmatpush.bf16.msra.mxu3 %v5779_v19 }
 0x221   :  { %v2825_v33 = vpop.f32.mrf.mxu3 }
 0x222   :  { %3406 = vmatmul.bf16.vlgmr.msra.gmra.mxu0 %v2922_v51  ;;  %3415 = vmatpush.bf16.msrb.mxu1 %v5255_v26  ;;  %v2826_v41 = vadd.f32 %v2825_v33, %v2812_v17  ;;  %v2988_v26 = vld [vmem:[%s6329_s6] sm:$0x3] }
 0x223   :  { %v2851_v54 = vpop.f32.mrf.mxu1  ;;  %3569 = vmatpush.bf16.msrb.mxu2 %v5770_v12  ;;  %v2990_v28 = vperm.slane %v2988_v26, 0 }
 0x224   :  { %v2852_v47 = vadd.f32 %v2851_v54, %v2838_v27  ;;  %v2840_v44 = vadd.f32 %v2839_v39, %v2826_v41  ;;  %3583 = vmatpush.bf16.msra.mxu3 %v5778_v20 }
 0x226   :  { %3416 = vmatpush.bf16.msrb.mxu1 %v5247_v50  ;;  %v2865_v40 = vpop.f32.mrf.mxu2 }
 0x227   :  { %v2866_v52 = vadd.f32 %v2865_v40, %v2852_v47  ;;  %3570 = vmatpush.bf16.msrb.mxu2 %v5769_v6 }
 0x228   :  { %3584 = vmatpush.bf16.msra.mxu3 %v5777_v58 }
 0x22a   :  { %3417 = vmatpush.bf16.msrb.mxu1 %v5239_v35 }
 0x22b   :  { %v2853_v46 = vpop.f32.mrf.mxu1  ;;  %3571 = vmatpush.bf16.msrb.mxu2 %v5768_v15 }
 0x22c   :  { %v2854_v42 = vadd.f32 %v2853_v46, %v2840_v44  ;;  %3585 = vmatpush.bf16.msra.mxu3 %v5776_v7 }
 0x22e   :  { %3418 = vmatpush.bf16.msrb.mxu1 %v5231_v23  ;;  %v2867_v22 = vpop.f32.mrf.mxu2 }
 0x22f   :  { %v2868_v29 = vadd.f32 %v2867_v22, %v2854_v42 }
 0x231   :  { %v2893_v13 = vpop.f32.mrf.mxu0 }
 0x232   :  { %3419 = vmatpush.bf16.msrb.mxu1 %v5223_v2 }
 0x239   :  { %v2879_v30 = vpop.f32.mrf.mxu3  ;;  %v2895_v60 = vpop.f32.mrf.mxu0 }
 0x23a   :  { %v2880_v31 = vadd.f32 %v2879_v30, %v2866_v52  ;;  %v2991_v30 = vperm.slane %v2988_v26, 1 }
 0x23c   :  { %v2894_v59 = vadd.f32 %v2893_v13, %v2880_v31 }
 0x241   :  { %v2881_v25 = vpop.f32.mrf.mxu3 }
 0x242   :  { %v2882_v57 = vadd.f32 %v2881_v25, %v2868_v29 }
 0x243   :  { %v2907_v48 = vpop.f32.mrf.mxu1 }
 0x244   :  { %v2908_v61 = vadd.f32 %v2907_v48, %v2894_v59  ;;  %v2896_v51 = vadd.f32 %v2895_v60, %v2882_v57 }
 0x246   :  { %v2915_v10 = vmax.f32 %v2908_v61, 0.0  ;;  %v3323_v21 = vpop.f32.mrf.mxu2  ;;  %v5791_v61 = vld [vmem:[#allocation14 + $0x38] sm:$0xff] }
 0x247   :  { %v3324_v55 = vadd.f32 %v3323_v21, %v2990_v28  ;;  %3663 = vmatpush.bf16.msrb.mxu0 %v5791_v61  ;;  %v5815_v21 = vld [vmem:[%s6333_s10] ss:$0 sm:$0xff] }
 0x24b   :  { %v2909_v62 = vpop.f32.mrf.mxu1 }
 0x24c   :  { %v2910_v63 = vadd.f32 %v2909_v62, %v2896_v51  ;;  %v5790_v51 = vld [vmem:[#allocation14 + $0x30] sm:$0xff]  ;;  %v5789_v62 = vld [vmem:[#allocation14 + $0x28] sm:$0xff] }
 0x24d   :  { %3664 = vmatpush.bf16.msrb.mxu0 %v5790_v51 }
 0x24e   :  { %v2919_v0 = vmax.f32 %v2910_v63, 0.0  ;;  %v3325_v16 = vpop.f32.mrf.mxu2  ;;  %v5788_v63 = vld [vmem:[#allocation14 + $0x20] sm:$0xff] }
 0x24f   :  { %v3326_v32 = vadd.f32 %v3325_v16, %v2990_v28 }
 0x250   :  { %v2923_v1 = vpack.c.bf16 %v2919_v0, %v2915_v10  ;;  %v5787_v10 = vld [vmem:[#allocation14 + $0x18] sm:$0xff]  ;;  %v5786_v0 = vld [vmem:[#allocation14 + $0x10] sm:$0xff] }
 0x251   :  { %3665 = vmatpush.bf16.msrb.mxu0 %v5789_v62 }
 0x252   :  { %3364 = vmatmul.bf16.vlgmr.msra.gmra.mxu1 %v2923_v1 }
 0x255   :  { %3666 = vmatpush.bf16.msrb.mxu0 %v5788_v63 }
 0x257   :  { %v3337_v49 = vpop.f32.mrf.mxu3 }
 0x258   :  { %v3338_v34 = vadd.f32 %v3337_v49, %v3324_v55 }
 0x259   :  { %3667 = vmatpush.bf16.msrb.mxu0 %v5787_v10 }
 0x25d   :  { %3668 = vmatpush.bf16.msrb.mxu0 %v5786_v0 }
 0x25f   :  { %v3339_v33 = vpop.f32.mrf.mxu3 }
 0x260   :  { %v3340_v35 = vadd.f32 %v3339_v33, %v3326_v32 }
 0x262   :  { %3420 = vmatmul.bf16.vlgmr.msrb.gmra.mxu1 %v2923_v1  ;;  %v5785_v1 = vld [vmem:[#allocation14 + $0x8] sm:$0xff] }
 0x263   :  { %3669 = vmatpush.bf16.msrb.mxu0 %v5785_v1 }
 0x266   :  { %v3379_v37 = vpop.f32.mrf.mxu2 }
 0x267   :  { %v3380_v27 = vadd.f32 %v3379_v37, %v2991_v30  ;;  %3670 = vmatpush.bf16.msrb.mxu0 %v5784_v3 }
 0x26e   :  { %v3381_v46 = vpop.f32.mrf.mxu2 }
 0x26f   :  { %v3382_v44 = vadd.f32 %v3381_v46, %v2991_v30 }
 0x277   :  { %v3393_v40 = vpop.f32.mrf.mxu3 }
 0x278   :  { %v3394_v13 = vadd.f32 %v3393_v40, %v3380_v27 }
 0x27f   :  { %v3395_v47 = vpop.f32.mrf.mxu3 }
 0x280   :  { %v3396_v22 = vadd.f32 %v3395_v47, %v3382_v44 }
 0x28f   :  { %v3351_v24 = vpop.f32.mrf.mxu0 }
 0x290   :  { %v3352_v36 = vadd.f32 %v3351_v24, %v3338_v34 }
 0x297   :  { %v3353_v54 = vpop.f32.mrf.mxu0 }
 0x298   :  { %v3354_v38 = vadd.f32 %v3353_v54, %v3340_v35 }
 0x29f   :  { %v3407_v43 = vpop.f32.mrf.mxu0 }
 0x2a0   :  { %v3408_v52 = vadd.f32 %v3407_v43, %v3394_v13 }
 0x2a7   :  { %v3409_v42 = vpop.f32.mrf.mxu0 }
 0x2a8   :  { %v3410_v25 = vadd.f32 %v3409_v42, %v3396_v22 }
 0x2cf   :  { %v3365_v50 = vpop.f32.mrf.mxu1 }
 0x2d0   :  { %v3366_v39 = vadd.f32 %v3365_v50, %v3352_v36 }
 0x2d2   :  { %v3426_v45 = vmax.f32 %v3366_v39, 0.0 }
 0x2d7   :  { %v3367_v23 = vpop.f32.mrf.mxu1 }
 0x2d8   :  { %v3368_v17 = vadd.f32 %v3367_v23, %v3354_v38 }
 0x2da   :  { %v3428_v56 = vmax.f32 %v3368_v17, 0.0 }
 0x2dc   :  { %v3430_v41 = vpack.c.bf16 %v3428_v56, %v3426_v45 }
 0x2de   :  { %3572 = vmatmul.bf16.vlgmr.msrb.gmra.mxu2 %v3430_v41 }
 0x2df   :  { %v3421_v2 = vpop.f32.mrf.mxu1 }
 0x2e0   :  { %v3422_v48 = vadd.f32 %v3421_v2, %v3408_v52 }
 0x2e2   :  { %v3427_v57 = vmax.f32 %v3422_v48, 0.0 }
 0x2e7   :  { %v3423_v29 = vpop.f32.mrf.mxu1 }
 0x2e8   :  { %v3424_v31 = vadd.f32 %v3423_v29, %v3410_v25 }
 0x2ea   :  { %v3429_v59 = vmax.f32 %v3424_v31, 0.0 }
 0x2ec   :  { %v3431_v60 = vpack.c.bf16 %v3429_v59, %v3427_v57 }
 0x2ee   :  { %3586 = vmatmul.bf16.vlgmr.msra.gmra.mxu3 %v3431_v60 }
 0x361   :  { %v3573_v4 = vpop.f32.mrf.mxu2 }
 0x362   :  { %v3574_v11 = vadd.f32 %v5814_v8, %v3573_v4 }
 0x369   :  { %v3575_v9 = vpop.f32.mrf.mxu2 }
 0x36a   :  { %v3576_v12 = vadd.f32 %v5814_v8, %v3575_v9 }
 0x371   :  { %v3587_v5 = vpop.f32.mrf.mxu3 }
 0x372   :  { %v3588_v53 = vadd.f32 %v3587_v5, %v3574_v11 }
 0x374   :  { %v3592_v15 = vmax.f32 %v3588_v53, 0.0 }
 0x379   :  { %v3589_v6 = vpop.f32.mrf.mxu3 }
 0x37a   :  { %v3590_v14 = vadd.f32 %v3589_v6, %v3576_v12 }
 0x37c   :  { %v3593_v18 = vmax.f32 %v3590_v14, 0.0 }
 0x37e   :  { %v3594_v19 = vpack.c.bf16 %v3593_v18, %v3592_v15 }
 0x380   :  { %3671 = vmatmul.bf16.vlgmr.msrb.gmra.mxu0 %v3594_v19 }
 0x3fd   :  { %v3672_v20 = vpop.f32.mrf.mxu0 }
 0x3fe   :  { %v3673_v24 = vadd.f32 %v5815_v21, %v3672_v20 }
 0x405   :  { %v3674_v49 = vpop.f32.mrf.mxu0 }
 0x406   :  { %v3675_v58 = vadd.f32 %v5815_v21, %v3674_v49 }
 0x408   :  { %v5795_v26 = vpack.c.bf16 %v3675_v58, %v3673_v24 }
 0x40a   :  { %5796 = vst [vmem:[#allocation16] sm:$0xff] %v5795_v26  }
 0x40b   :  { %3684 = vsyncadd [#allocation4], 64  ;;  %s3687_s5 = sshll.u32 %s6334_s11, 4  ;;  %s6060_s23 = smov [#allocation16]   ;;  %s3688_s5 = int_to_ptr.hbm [resolvable:$true] %s3687_s5 }
 0x40c   :  { %s3685_s24 = sshll.u32 %s6060_s23, 4  ;;  %s3686_s24 = int_to_ptr.vmem [resolvable:$true] %s3685_s24 }
 0x40d   :  { %3693 = dma.vmem_to_hbm [thread:$0]  %s3686_s24, 64, %s3688_s5, [#allocation4], %s6057_s16, %s6057_s16, %s6058_s17  }
 0x40e   :  { %6042 = dma.done.wait [#allocation4], 128  }
 0x40f   :  { %6043 = vsyncadd [#allocation4], 4294967168 }
 0x410   :  { %3698 = vsyncpa [#allocation3], 1 }
 0x411   :  { %3699 = vsyncpa [#allocation6], 1 }
 0x412   :  { %3700 = vsyncpa [#allocation9], 1 }
 0x413   :  { %3701 = vsyncpa [#allocation12], 1 }
 0x414   :  { %3702 = vsyncpa [#allocation15], 1 }
 0x415   :  { %3703 = vsyncpa [#allocation4], 1 }

</bundles_post_ra>
